<compile_context>
chip_gen: v7x
topology: tpu7x:2x2x1
jax: 0.10.0
libtpu: 0.0.40
codegen_flags: <defaults>
</compile_context>

<pallas_src>
import functools

import jax
import jax.numpy as jnp
from jax.experimental import pallas as pl
from jax.experimental.pallas import tpu as pltpu


def _ru(x, m):
    return -(-x // m) * m


# --------------------------------------------------------------------------
# Pallas kernel 1: M-tiled matmul + bias (+ReLU) on the MXU  (conv hot path)
# --------------------------------------------------------------------------

def _matmul_bias_kernel(a_ref, b_ref, bias_ref, o_ref, *, relu):
    acc = jnp.dot(a_ref[...], b_ref[...], preferred_element_type=jnp.float32)
    acc = acc + bias_ref[...]                      # (1, N) broadcast over rows
    if relu:
        acc = jnp.maximum(acc, 0.0)
    o_ref[...] = acc


def matmul_bias(a, b, bias, relu=False, tile_m=512):
    """(M,K) @ (K,N) + bias with optional fused ReLU.

    A is bf16, row-tiled over a 1-D grid (double-buffered by Pallas); K and N
    are left at their true sizes (full-dim blocks, Mosaic masks the lanes).
    """
    M, K = a.shape
    K2, N = b.shape
    assert K == K2

    tm = min(tile_m, _ru(M, 16))        # multiple of 16 (bf16 sublane packing)
    Mp = _ru(M, tm)

    a_bf = a.astype(jnp.bfloat16)
    if Mp != M:
        a_bf = jnp.pad(a_bf, ((0, Mp - M), (0, 0)))
    b_bf = b.astype(jnp.bfloat16)
    bias2 = bias.astype(jnp.float32).reshape(1, N)

    grid = (Mp // tm,)
    cost = pl.CostEstimate(
        flops=2 * Mp * K * N,
        transcendentals=0,
        bytes_accessed=Mp * K * 2 + K * N * 2 + N * 4 + Mp * N * 4,
    )
    out = pl.pallas_call(
        functools.partial(_matmul_bias_kernel, relu=relu),
        out_shape=jax.ShapeDtypeStruct((Mp, N), jnp.float32),
        grid_spec=pltpu.PrefetchScalarGridSpec(
            num_scalar_prefetch=0,
            grid=grid,
            in_specs=[
                pl.BlockSpec((tm, K), lambda i: (i, 0)),   # row tile of A
                pl.BlockSpec((K, N), lambda i: (0, 0)),    # whole B (resident)
                pl.BlockSpec((1, N), lambda i: (0, 0)),    # bias
            ],
            out_specs=pl.BlockSpec((tm, N), lambda i: (i, 0)),
        ),
        compiler_params=pltpu.CompilerParams(
            dimension_semantics=("parallel",),
            vmem_limit_bytes=64 * 1024 * 1024,
        ),
        cost_estimate=cost,
    )(a_bf, b_bf, bias2)
    if Mp != M:
        out = out[:M]
    return out


# --------------------------------------------------------------------------
# Pallas kernel 2: fused loss reductions (pixel L1 + perceptual L1 +
#                  resnet-fc + BCEWithLogits + colorfulness) -> one scalar
# --------------------------------------------------------------------------

def _fused_loss_kernel(ab_img_ref, ab_gt_ref, rgb_ref, feat_ref, pooled_ref,
                       fcw_ref, fcb_ref, o_ref, *, batch, hw, n_pix,
                       pixel_w, perceptual_w, adversarial_w, colorfulness_w):
    # ----- PixelLoss: mean |image_ab - ground_truth_ab| -----
    pixel = jnp.sum(jnp.abs(ab_img_ref[...] - ab_gt_ref[...])) / n_pix

    # ----- PerceptualLoss: L1 between pooled VGG features -----
    # feat rows [0:batch] = image, [batch:2*batch] = ground truth
    feats = feat_ref[...]
    perceptual = jnp.mean(jnp.abs(feats[:batch] - feats[batch:]))

    # ----- AdversarialLoss: tiny fc (VPU dot) + BCEWithLogitsLoss -----
    # pooled rows [0:batch] = image (fake), [batch:2*batch] = ground truth (real)
    logits = (jnp.sum(pooled_ref[...] * fcw_ref[...], axis=1, keepdims=True)
              + fcb_ref[...])
    fake_logits = logits[:batch]
    real_logits = logits[batch:]

    def softplus(z):  # numerically stable, as in BCEWithLogitsLoss
        return jnp.maximum(z, 0.0) + jnp.log1p(jnp.exp(-jnp.abs(z)))

    adversarial = 0.5 * (jnp.mean(softplus(-real_logits))     # labels = 1
                         + jnp.mean(softplus(fake_logits)))   # labels = 0

    # ----- ColorfulnessLoss -----
    # rgb_ref is (3, B, H*W), channel 0 = b, 1 = g, 2 = r (torch convention).
    rgb = rgb_ref[...]
    b = rgb[0]
    g = rgb[1]
    r = rgb[2]
    rg = r - g
    yb = 0.5 * (r + g) - b
    # single-pass mean / unbiased variance (sum & sum-of-squares) per batch row
    s_rg = jnp.sum(rg, axis=1, keepdims=True)
    s_yb = jnp.sum(yb, axis=1, keepdims=True)
    ss_rg = jnp.sum(rg * rg, axis=1, keepdims=True)
    ss_yb = jnp.sum(yb * yb, axis=1, keepdims=True)
    rg_mean = s_rg / hw
    yb_mean = s_yb / hw
    rg_var = jnp.maximum(ss_rg - hw * rg_mean * rg_mean, 0.0) / (hw - 1.0)
    yb_var = jnp.maximum(ss_yb - hw * yb_mean * yb_mean, 0.0) / (hw - 1.0)
    std_rgyb = jnp.sqrt(rg_var + yb_var)
    mean_rgyb = jnp.sqrt(rg_mean * rg_mean + yb_mean * yb_mean)
    colorfulness = 1.0 - jnp.mean((std_rgyb + 0.3 * mean_rgyb) / 109.0)

    o_ref[0, 0] = (pixel_w * pixel + perceptual_w * perceptual
                   + adversarial_w * adversarial
                   + colorfulness_w * colorfulness)


def fused_losses(ab_img, ab_gt, rgb_cbw, feats, pooled, fcw, fcb, *,
                 batch, hw, pixel_w, perceptual_w, adversarial_w,
                 colorfulness_w):
    # TODO(synk): for production resolutions, grid this kernel over H*W tiles
    # with an SMEM accumulator (pl.when init/finalize) so the operands never
    # have to be fully VMEM-resident (v7x 32 MiB scoped VMEM).
    out = pl.pallas_call(
        functools.partial(
            _fused_loss_kernel,
            batch=batch, hw=float(hw), n_pix=float(ab_img.size),
            pixel_w=float(pixel_w), perceptual_w=float(perceptual_w),
            adversarial_w=float(adversarial_w),
            colorfulness_w=float(colorfulness_w)),
        out_shape=jax.ShapeDtypeStruct((1, 1), jnp.float32),
        in_specs=[pl.BlockSpec(memory_space=pltpu.MemorySpace.VMEM)] * 7,
        out_specs=pl.BlockSpec(memory_space=pltpu.MemorySpace.SMEM),
    )(ab_img, ab_gt, rgb_cbw, feats, pooled, fcw, fcb)
    return out[0, 0]


# --------------------------------------------------------------------------
# Glue: NHWC im2col conv (Pallas matmul), pooling, synthetic backbones
# --------------------------------------------------------------------------

def conv2d_nhwc(x, w, b, stride=1, pad=1, relu=True):
    """Conv2d via im2col + M-tiled Pallas matmul. x: (B,H,W,Cin) NHWC,
    w: (Cout,Cin,kh,kw) (torch layout). Returns NHWC."""
    # TODO(synk): at production resolutions, move the patch extraction into
    # the kernel (pl.ds gathers from an NHWC VMEM tile) to avoid the 9x
    # im2col HBM amplification; at these toy sizes it is negligible.
    B, H, W, Cin = x.shape
    Cout, Cin2, kh, kw = w.shape
    assert Cin == Cin2
    xp = jnp.pad(x, ((0, 0), (pad, pad), (pad, pad), (0, 0)))
    Hp, Wp = xp.shape[1], xp.shape[2]
    Ho = (Hp - kh) // stride + 1
    Wo = (Wp - kw) // stride + 1
    cols = []
    for i in range(kh):
        for j in range(kw):
            cols.append(xp[:, i:i + stride * Ho:stride,
                           j:j + stride * Wo:stride, :])
    patches = jnp.concatenate(cols, axis=-1).reshape(B * Ho * Wo, kh * kw * Cin)
    w2 = jnp.transpose(w, (2, 3, 1, 0)).reshape(kh * kw * Cin, Cout)
    out = matmul_bias(patches, w2, b, relu=relu)
    return out.reshape(B, Ho, Wo, Cout)


def maxpool2_nhwc(x):
    B, H, W, C = x.shape
    return x.reshape(B, H // 2, 2, W // 2, 2, C).max(axis=(2, 4))


def vgg_like_features(x_nhwc, p):
    # Synthetic stand-in for vgg.features -> AdaptiveAvgPool2d(7) -> MaxPool2d(7)
    h = conv2d_nhwc(x_nhwc, p["vgg_w1"], p["vgg_b1"], relu=True)
    h = maxpool2_nhwc(h)                                  # 28 -> 14
    h = conv2d_nhwc(h, p["vgg_w2"], p["vgg_b2"], relu=True)
    h = maxpool2_nhwc(h)                                  # 14 -> 7
    # AdaptiveAvgPool2d((7,7)) is identity at 7x7; MaxPool2d(7) = global max
    return h.max(axis=(1, 2))                             # (B', 32)


def resnet_like_pooled(x_nhwc, p):
    # Synthetic stand-in for a frozen resnet18 trunk; fc + BCE are fused into
    # the loss kernel.
    h = conv2d_nhwc(x_nhwc, p["res_w1"], p["res_b1"], stride=2, pad=1,
                    relu=True)
    return h.mean(axis=(1, 2))                            # (B', 16)


def init_params():
    key = jax.random.PRNGKey(42)
    ks = jax.random.split(key, 4)
    return {
        "vgg_w1": 0.1 * jax.random.normal(ks[0], (16, 3, 3, 3), jnp.float32),
        "vgg_b1": jnp.zeros((16,), jnp.float32),
        "vgg_w2": 0.1 * jax.random.normal(ks[1], (32, 16, 3, 3), jnp.float32),
        "vgg_b2": jnp.zeros((32,), jnp.float32),
        "res_w1": 0.1 * jax.random.normal(ks[2], (16, 3, 3, 3), jnp.float32),
        "res_b1": jnp.zeros((16,), jnp.float32),
        "res_fc_w": 0.1 * jax.random.normal(ks[3], (16, 1), jnp.float32),
        "res_fc_b": jnp.zeros((1,), jnp.float32),
    }


# --------------------------------------------------------------------------
# CombinedLoss forward
# --------------------------------------------------------------------------

def combined_loss(image_ab, image_rgb, ground_truth_ab, ground_truth_rgb,
                  params, pixel_weight=0.1, perceptual_weight=5.0,
                  adversarial_weight=1.0, colorfulness_weight=0.5):
    assert image_ab.shape == ground_truth_ab.shape
    assert image_rgb.shape == ground_truth_rgb.shape
    assert image_ab.ndim == 4 and image_ab.shape[1] == 2
    assert image_rgb.shape[1] == 3
    assert image_ab.shape[0] == image_rgb.shape[0]

    B, _, H, W = image_rgb.shape

    # One NCHW -> NHWC transpose per RGB input; everything downstream is NHWC.
    img_nhwc = jnp.transpose(image_rgb, (0, 2, 3, 1)).astype(jnp.float32)
    gt_nhwc = jnp.transpose(ground_truth_rgb, (0, 2, 3, 1)).astype(jnp.float32)
    # Batch image + ground-truth through each backbone in a single pass.
    both = jnp.concatenate([img_nhwc, gt_nhwc], axis=0)   # (2B, H, W, 3)

    feats = vgg_like_features(both, params)               # (2B, 32)
    pooled = resnet_like_pooled(both, params)             # (2B, 16)

    ab_img = image_ab.reshape(B, -1).astype(jnp.float32)
    ab_gt = ground_truth_ab.reshape(B, -1).astype(jnp.float32)
    # (3, B, H*W): channel on the leading axis so the loss kernel slices the
    # loaded value along dim 0 (no middle-axis integer ref indexing).
    rgb_cbw = jnp.transpose(image_rgb, (1, 0, 2, 3)) \
                 .reshape(3, B, H * W).astype(jnp.float32)
    fcw = jnp.transpose(params["res_fc_w"]).astype(jnp.float32)    # (1, 16)
    fcb = params["res_fc_b"].reshape(1, 1).astype(jnp.float32)

    return fused_losses(
        ab_img, ab_gt, rgb_cbw, feats, pooled, fcw, fcb,
        batch=B, hw=H * W,
        pixel_w=pixel_weight, perceptual_w=perceptual_weight,
        adversarial_w=adversarial_weight, colorfulness_w=colorfulness_weight)


if __name__ == "__main__":
    key = jax.random.PRNGKey(0)
    k1, k2, k3, k4 = jax.random.split(key, 4)
    B, H, W = 2, 28, 28
    image_ab = jax.random.normal(k1, (B, 2, H, W), jnp.float32)
    ground_truth_ab = jax.random.normal(k2, (B, 2, H, W), jnp.float32)
    image_rgb = jax.random.uniform(k3, (B, 3, H, W), jnp.float32)
    ground_truth_rgb = jax.random.uniform(k4, (B, 3, H, W), jnp.float32)
    params = init_params()

    loss_fn = jax.jit(combined_loss)
    loss = loss_fn(image_ab, image_rgb, ground_truth_ab, ground_truth_rgb,
                   params)
    jax.block_until_ready(loss)
    assert loss.shape == () and bool(jnp.isfinite(loss))
    print("KERNEL_OK")
</pallas_src>

<mosaic_0001>
module attributes {stable_mosaic.version = 11 : i64} {
  func.func @_matmul_bias_kernel(%arg0: i32, %arg1: memref<512x27xbf16, #tpu.memory_space<vmem>>, %arg2: memref<27x16xbf16, #tpu.memory_space<vmem>>, %arg3: memref<1x16xf32, #tpu.memory_space<vmem>>, %arg4: memref<512x16xf32, #tpu.memory_space<vmem>>) attributes {dimension_semantics = [#tpu.dimension_semantics<parallel>], iteration_bounds = array<i64: 2>, scalar_prefetch = 0 : i64, scratch_operands = 0 : i64, tpu.core_type = #tpu.core_type<tc>, window_params = [{transform_indices = @transform_0, window_bounds = array<i64: 512, 27>}, {pipeline_mode = #tpu.pipeline_mode<synchronous>, transform_indices = @transform_1, window_bounds = array<i64: 27, 16>}, {pipeline_mode = #tpu.pipeline_mode<synchronous>, transform_indices = @transform_2, window_bounds = array<i64: 1, 16>}, {transform_indices = @transform_3, window_bounds = array<i64: 512, 16>}]} {
    %c0 = arith.constant 0 : index
    %c0_0 = arith.constant 0 : index
    %0 = vector.load %arg1[%c0, %c0_0] : memref<512x27xbf16, #tpu.memory_space<vmem>>, vector<512x27xbf16>
    %c0_1 = arith.constant 0 : index
    %c0_2 = arith.constant 0 : index
    %1 = vector.load %arg2[%c0_1, %c0_2] : memref<27x16xbf16, #tpu.memory_space<vmem>>, vector<27x16xbf16>
    %cst = arith.constant dense<0.000000e+00> : vector<512x16xf32>
    %2 = tpu.matmul %0, %1, %cst {dimension_numbers = #tpu.dot_dimension_numbers<[1], [0], [0], [1], [0, 0, 1, 1], [], []>} : vector<512x27xbf16>, vector<27x16xbf16>, vector<512x16xf32> -> vector<512x16xf32>
    %c0_3 = arith.constant 0 : index
    %c0_4 = arith.constant 0 : index
    %3 = vector.load %arg3[%c0_3, %c0_4] : memref<1x16xf32, #tpu.memory_space<vmem>>, vector<1x16xf32>
    %4 = vector.broadcast %3 : vector<1x16xf32> to vector<512x16xf32>
    %5 = arith.addf %2, %4 : vector<512x16xf32>
    %cst_5 = arith.constant 0.000000e+00 : f32
    %6 = vector.broadcast %cst_5 : f32 to vector<512x16xf32>
    %7 = arith.maximumf %5, %6 : vector<512x16xf32>
    %c0_6 = arith.constant 0 : index
    %c0_7 = arith.constant 0 : index
    %8 = vector.load %arg4[%c0_6, %c0_7] : memref<512x16xf32, #tpu.memory_space<vmem>>, vector<512x16xf32>
    tpu.vector_store %arg4[%c0_6, %c0_7], %7 {strides = array<i32>} : memref<512x16xf32, #tpu.memory_space<vmem>>, vector<512x16xf32>,
    return
  }
  func.func @transform_0(%arg0: i32) -> (i32, i32) {
    %c0_i32 = arith.constant 0 : i32
    %c0_i32_0 = arith.constant 0 : i32
    return %arg0, %c0_i32 : i32, i32
  }
  func.func @transform_1(%arg0: i32) -> (i32, i32) {
    %c0_i32 = arith.constant 0 : i32
    %c0_i32_0 = arith.constant 0 : i32
    %c0_i32_1 = arith.constant 0 : i32
    return %c0_i32, %c0_i32_0 : i32, i32
  }
  func.func @transform_2(%arg0: i32) -> (i32, i32) {
    %c0_i32 = arith.constant 0 : i32
    %c0_i32_0 = arith.constant 0 : i32
    %c0_i32_1 = arith.constant 0 : i32
    return %c0_i32, %c0_i32_0 : i32, i32
  }
  func.func @transform_3(%arg0: i32) -> (i32, i32) {
    %c0_i32 = arith.constant 0 : i32
    %c0_i32_0 = arith.constant 0 : i32
    return %arg0, %c0_i32 : i32, i32
  }
}

module attributes {stable_mosaic.version = 11 : i64} {
  func.func @_matmul_bias_kernel(%arg0: i32, %arg1: memref<512x27xbf16, #tpu.memory_space<vmem>>, %arg2: memref<27x16xbf16, #tpu.memory_space<vmem>>, %arg3: memref<1x16xf32, #tpu.memory_space<vmem>>, %arg4: memref<512x16xf32, #tpu.memory_space<vmem>>) attributes {dimension_semantics = [#tpu.dimension_semantics<parallel>], iteration_bounds = array<i64: 7>, scalar_prefetch = 0 : i64, scratch_operands = 0 : i64, tpu.core_type = #tpu.core_type<tc>, window_params = [{transform_indices = @transform_0, window_bounds = array<i64: 512, 27>}, {pipeline_mode = #tpu.pipeline_mode<synchronous>, transform_indices = @transform_1, window_bounds = array<i64: 27, 16>}, {pipeline_mode = #tpu.pipeline_mode<synchronous>, transform_indices = @transform_2, window_bounds = array<i64: 1, 16>}, {transform_indices = @transform_3, window_bounds = array<i64: 512, 16>}]} {
    %c0 = arith.constant 0 : index
    %c0_0 = arith.constant 0 : index
    %0 = vector.load %arg1[%c0, %c0_0] : memref<512x27xbf16, #tpu.memory_space<vmem>>, vector<512x27xbf16>
    %c0_1 = arith.constant 0 : index
    %c0_2 = arith.constant 0 : index
    %1 = vector.load %arg2[%c0_1, %c0_2] : memref<27x16xbf16, #tpu.memory_space<vmem>>, vector<27x16xbf16>
    %cst = arith.constant dense<0.000000e+00> : vector<512x16xf32>
    %2 = tpu.matmul %0, %1, %cst {dimension_numbers = #tpu.dot_dimension_numbers<[1], [0], [0], [1], [0, 0, 1, 1], [], []>} : vector<512x27xbf16>, vector<27x16xbf16>, vector<512x16xf32> -> vector<512x16xf32>
    %c0_3 = arith.constant 0 : index
    %c0_4 = arith.constant 0 : index
    %3 = vector.load %arg3[%c0_3, %c0_4] : memref<1x16xf32, #tpu.memory_space<vmem>>, vector<1x16xf32>
    %4 = vector.broadcast %3 : vector<1x16xf32> to vector<512x16xf32>
    %5 = arith.addf %2, %4 : vector<512x16xf32>
    %cst_5 = arith.constant 0.000000e+00 : f32
    %6 = vector.broadcast %cst_5 : f32 to vector<512x16xf32>
    %7 = arith.maximumf %5, %6 : vector<512x16xf32>
    %c0_6 = arith.constant 0 : index
    %c0_7 = arith.constant 0 : index
    %8 = vector.load %arg4[%c0_6, %c0_7] : memref<512x16xf32, #tpu.memory_space<vmem>>, vector<512x16xf32>
    tpu.vector_store %arg4[%c0_6, %c0_7], %7 {strides = array<i32>} : memref<512x16xf32, #tpu.memory_space<vmem>>, vector<512x16xf32>,
    return
  }
  func.func @transform_0(%arg0: i32) -> (i32, i32) {
    %c0_i32 = arith.constant 0 : i32
    %c0_i32_0 = arith.constant 0 : i32
    return %arg0, %c0_i32 : i32, i32
  }
  func.func @transform_1(%arg0: i32) -> (i32, i32) {
    %c0_i32 = arith.constant 0 : i32
    %c0_i32_0 = arith.constant 0 : i32
    %c0_i32_1 = arith.constant 0 : i32
    return %c0_i32, %c0_i32_0 : i32, i32
  }
  func.func @transform_2(%arg0: i32) -> (i32, i32) {
    %c0_i32 = arith.constant 0 : i32
    %c0_i32_0 = arith.constant 0 : i32
    %c0_i32_1 = arith.constant 0 : i32
    return %c0_i32, %c0_i32_0 : i32, i32
  }
  func.func @transform_3(%arg0: i32) -> (i32, i32) {
    %c0_i32 = arith.constant 0 : i32
    %c0_i32_0 = arith.constant 0 : i32
    return %arg0, %c0_i32 : i32, i32
  }
}

module attributes {stable_mosaic.version = 11 : i64} {
  func.func @_matmul_bias_kernel(%arg0: i32, %arg1: memref<512x144xbf16, #tpu.memory_space<vmem>>, %arg2: memref<144x32xbf16, #tpu.memory_space<vmem>>, %arg3: memref<1x32xf32, #tpu.memory_space<vmem>>, %arg4: memref<512x32xf32, #tpu.memory_space<vmem>>) attributes {dimension_semantics = [#tpu.dimension_semantics<parallel>], iteration_bounds = array<i64: 2>, scalar_prefetch = 0 : i64, scratch_operands = 0 : i64, tpu.core_type = #tpu.core_type<tc>, window_params = [{transform_indices = @transform_0, window_bounds = array<i64: 512, 144>}, {pipeline_mode = #tpu.pipeline_mode<synchronous>, transform_indices = @transform_1, window_bounds = array<i64: 144, 32>}, {pipeline_mode = #tpu.pipeline_mode<synchronous>, transform_indices = @transform_2, window_bounds = array<i64: 1, 32>}, {transform_indices = @transform_3, window_bounds = array<i64: 512, 32>}]} {
    %c0 = arith.constant 0 : index
    %c0_0 = arith.constant 0 : index
    %0 = vector.load %arg1[%c0, %c0_0] : memref<512x144xbf16, #tpu.memory_space<vmem>>, vector<512x144xbf16>
    %c0_1 = arith.constant 0 : index
    %c0_2 = arith.constant 0 : index
    %1 = vector.load %arg2[%c0_1, %c0_2] : memref<144x32xbf16, #tpu.memory_space<vmem>>, vector<144x32xbf16>
    %cst = arith.constant dense<0.000000e+00> : vector<512x32xf32>
    %2 = tpu.matmul %0, %1, %cst {dimension_numbers = #tpu.dot_dimension_numbers<[1], [0], [0], [1], [0, 0, 1, 1], [], []>} : vector<512x144xbf16>, vector<144x32xbf16>, vector<512x32xf32> -> vector<512x32xf32>
    %c0_3 = arith.constant 0 : index
    %c0_4 = arith.constant 0 : index
    %3 = vector.load %arg3[%c0_3, %c0_4] : memref<1x32xf32, #tpu.memory_space<vmem>>, vector<1x32xf32>
    %4 = vector.broadcast %3 : vector<1x32xf32> to vector<512x32xf32>
    %5 = arith.addf %2, %4 : vector<512x32xf32>
    %cst_5 = arith.constant 0.000000e+00 : f32
    %6 = vector.broadcast %cst_5 : f32 to vector<512x32xf32>
    %7 = arith.maximumf %5, %6 : vector<512x32xf32>
    %c0_6 = arith.constant 0 : index
    %c0_7 = arith.constant 0 : index
    %8 = vector.load %arg4[%c0_6, %c0_7] : memref<512x32xf32, #tpu.memory_space<vmem>>, vector<512x32xf32>
    tpu.vector_store %arg4[%c0_6, %c0_7], %7 {strides = array<i32>} : memref<512x32xf32, #tpu.memory_space<vmem>>, vector<512x32xf32>,
    return
  }
  func.func @transform_0(%arg0: i32) -> (i32, i32) {
    %c0_i32 = arith.constant 0 : i32
    %c0_i32_0 = arith.constant 0 : i32
    return %arg0, %c0_i32 : i32, i32
  }
  func.func @transform_1(%arg0: i32) -> (i32, i32) {
    %c0_i32 = arith.constant 0 : i32
    %c0_i32_0 = arith.constant 0 : i32
    %c0_i32_1 = arith.constant 0 : i32
    return %c0_i32, %c0_i32_0 : i32, i32
  }
  func.func @transform_2(%arg0: i32) -> (i32, i32) {
    %c0_i32 = arith.constant 0 : i32
    %c0_i32_0 = arith.constant 0 : i32
    %c0_i32_1 = arith.constant 0 : i32
    return %c0_i32, %c0_i32_0 : i32, i32
  }
  func.func @transform_3(%arg0: i32) -> (i32, i32) {
    %c0_i32 = arith.constant 0 : i32
    %c0_i32_0 = arith.constant 0 : i32
    return %arg0, %c0_i32 : i32, i32
  }
}

module attributes {stable_mosaic.version = 11 : i64} {
  func.func @_fused_loss_kernel(%arg0: memref<2x1568xf32, #tpu.memory_space<vmem>>, %arg1: memref<2x1568xf32, #tpu.memory_space<vmem>>, %arg2: memref<3x2x784xf32, #tpu.memory_space<vmem>>, %arg3: memref<4x32xf32, #tpu.memory_space<vmem>>, %arg4: memref<4x16xf32, #tpu.memory_space<vmem>>, %arg5: memref<1x16xf32, #tpu.memory_space<vmem>>, %arg6: memref<1x1xf32, #tpu.memory_space<vmem>>, %arg7: memref<1x1xf32, #tpu.memory_space<smem>>) attributes {dimension_semantics = [], scalar_prefetch = 0 : i64, scratch_operands = 0 : i64, tpu.core_type = #tpu.core_type<tc>} {
    %c0 = arith.constant 0 : index
    %c0_0 = arith.constant 0 : index
    %0 = vector.load %arg0[%c0, %c0_0] : memref<2x1568xf32, #tpu.memory_space<vmem>>, vector<2x1568xf32>
    %c0_1 = arith.constant 0 : index
    %c0_2 = arith.constant 0 : index
    %1 = vector.load %arg1[%c0_1, %c0_2] : memref<2x1568xf32, #tpu.memory_space<vmem>>, vector<2x1568xf32>
    %2 = arith.subf %0, %1 : vector<2x1568xf32>
    %3 = math.absf %2 : vector<2x1568xf32>
    %4 = vector.shape_cast %3 : vector<2x1568xf32> to vector<1x2x1568xf32>
    %cst = arith.constant dense<0.000000e+00> : vector<1xf32>
    %5 = vector.multi_reduction <add>, %4, %cst [1, 2] : vector<1x2x1568xf32> to vector<1xf32>
    %6 = vector.shape_cast %5 : vector<1xf32> to vector<1x1x1xf32>
    %7 = vector.extract %6[0, 0, 0] : f32 from vector<1x1x1xf32>
    %cst_3 = arith.constant 3.136000e+03 : f32
    %8 = arith.divf %7, %cst_3 : f32
    %c0_4 = arith.constant 0 : index
    %c0_5 = arith.constant 0 : index
    %9 = vector.load %arg3[%c0_4, %c0_5] : memref<4x32xf32, #tpu.memory_space<vmem>>, vector<4x32xf32>
    %10 = vector.extract_strided_slice %9 {offsets = [0, 0], sizes = [2, 32], strides = [1, 1]} : vector<4x32xf32> to vector<2x32xf32>
    %11 = vector.extract_strided_slice %9 {offsets = [2, 0], sizes = [2, 32], strides = [1, 1]} : vector<4x32xf32> to vector<2x32xf32>
    %12 = arith.subf %10, %11 : vector<2x32xf32>
    %13 = math.absf %12 : vector<2x32xf32>
    %14 = vector.shape_cast %13 : vector<2x32xf32> to vector<1x2x32xf32>
    %cst_6 = arith.constant dense<0.000000e+00> : vector<1xf32>
    %15 = vector.multi_reduction <add>, %14, %cst_6 [1, 2] : vector<1x2x32xf32> to vector<1xf32>
    %16 = vector.shape_cast %15 : vector<1xf32> to vector<1x1x1xf32>
    %17 = vector.extract %16[0, 0, 0] : f32 from vector<1x1x1xf32>
    %cst_7 = arith.constant 6.400000e+01 : f32
    %18 = arith.divf %17, %cst_7 : f32
    %c0_8 = arith.constant 0 : index
    %c0_9 = arith.constant 0 : index
    %19 = vector.load %arg4[%c0_8, %c0_9] : memref<4x16xf32, #tpu.memory_space<vmem>>, vector<4x16xf32>
    %c0_10 = arith.constant 0 : index
    %c0_11 = arith.constant 0 : index
    %20 = vector.load %arg5[%c0_10, %c0_11] : memref<1x16xf32, #tpu.memory_space<vmem>>, vector<1x16xf32>
    %21 = vector.broadcast %20 : vector<1x16xf32> to vector<4x16xf32>
    %22 = arith.mulf %19, %21 : vector<4x16xf32>
    %cst_12 = arith.constant dense<0.000000e+00> : vector<4xf32>
    %23 = vector.multi_reduction <add>, %22, %cst_12 [1] : vector<4x16xf32> to vector<4xf32>
    %24 = vector.shape_cast %23 : vector<4xf32> to vector<4x1xf32>
    %c0_13 = arith.constant 0 : index
    %c0_14 = arith.constant 0 : index
    %25 = vector.load %arg6[%c0_13, %c0_14] : memref<1x1xf32, #tpu.memory_space<vmem>>, vector<1x1xf32>
    %26 = vector.broadcast %25 : vector<1x1xf32> to vector<4x1xf32>
    %27 = arith.addf %24, %26 : vector<4x1xf32>
    %28 = vector.extract_strided_slice %27 {offsets = [0, 0], sizes = [2, 1], strides = [1, 1]} : vector<4x1xf32> to vector<2x1xf32>
    %29 = vector.extract_strided_slice %27 {offsets = [2, 0], sizes = [2, 1], strides = [1, 1]} : vector<4x1xf32> to vector<2x1xf32>
    %cst_15 = arith.constant 0.000000e+00 : f32
    %30 = vector.broadcast %cst_15 : f32 to vector<2x1xf32>
    %31 = arith.subf %30, %29 : vector<2x1xf32>
    %cst_16 = arith.constant 0.000000e+00 : f32
    %32 = vector.broadcast %cst_16 : f32 to vector<2x1xf32>
    %33 = arith.maximumf %31, %32 : vector<2x1xf32>
    %34 = math.absf %31 : vector<2x1xf32>
    %cst_17 = arith.constant 0.000000e+00 : f32
    %35 = vector.broadcast %cst_17 : f32 to vector<2x1xf32>
    %36 = arith.subf %35, %34 : vector<2x1xf32>
    %37 = math.exp %36 : vector<2x1xf32>
    %38 = math.log1p %37 : vector<2x1xf32>
    %39 = arith.addf %33, %38 : vector<2x1xf32>
    %40 = vector.shape_cast %39 : vector<2x1xf32> to vector<1x2x1xf32>
    %cst_18 = arith.constant dense<0.000000e+00> : vector<1xf32>
    %41 = vector.multi_reduction <add>, %40, %cst_18 [1, 2] : vector<1x2x1xf32> to vector<1xf32>
    %42 = vector.shape_cast %41 : vector<1xf32> to vector<1x1x1xf32>
    %43 = vector.extract %42[0, 0, 0] : f32 from vector<1x1x1xf32>
    %cst_19 = arith.constant 2.000000e+00 : f32
    %44 = arith.divf %43, %cst_19 : f32
    %cst_20 = arith.constant 0.000000e+00 : f32
    %45 = vector.broadcast %cst_20 : f32 to vector<2x1xf32>
    %46 = arith.maximumf %28, %45 : vector<2x1xf32>
    %47 = math.absf %28 : vector<2x1xf32>
    %cst_21 = arith.constant 0.000000e+00 : f32
    %48 = vector.broadcast %cst_21 : f32 to vector<2x1xf32>
    %49 = arith.subf %48, %47 : vector<2x1xf32>
    %50 = math.exp %49 : vector<2x1xf32>
    %51 = math.log1p %50 : vector<2x1xf32>
    %52 = arith.addf %46, %51 : vector<2x1xf32>
    %53 = vector.shape_cast %52 : vector<2x1xf32> to vector<1x2x1xf32>
    %cst_22 = arith.constant dense<0.000000e+00> : vector<1xf32>
    %54 = vector.multi_reduction <add>, %53, %cst_22 [1, 2] : vector<1x2x1xf32> to vector<1xf32>
    %55 = vector.shape_cast %54 : vector<1xf32> to vector<1x1x1xf32>
    %56 = vector.extract %55[0, 0, 0] : f32 from vector<1x1x1xf32>
    %cst_23 = arith.constant 2.000000e+00 : f32
    %57 = arith.divf %56, %cst_23 : f32
    %58 = arith.addf %44, %57 : f32
    %cst_24 = arith.constant 5.000000e-01 : f32
    %59 = arith.mulf %cst_24, %58 : f32
    %c0_25 = arith.constant 0 : index
    %c0_26 = arith.constant 0 : index
    %c0_27 = arith.constant 0 : index
    %60 = vector.load %arg2[%c0_25, %c0_26, %c0_27] : memref<3x2x784xf32, #tpu.memory_space<vmem>>, vector<3x2x784xf32>
    %61 = vector.extract_strided_slice %60 {offsets = [0, 0, 0], sizes = [1, 2, 784], strides = [1, 1, 1]} : vector<3x2x784xf32> to vector<1x2x784xf32>
    %62 = vector.shape_cast %61 : vector<1x2x784xf32> to vector<2x784xf32>
    %63 = vector.extract_strided_slice %60 {offsets = [1, 0, 0], sizes = [1, 2, 784], strides = [1, 1, 1]} : vector<3x2x784xf32> to vector<1x2x784xf32>
    %64 = vector.shape_cast %63 : vector<1x2x784xf32> to vector<2x784xf32>
    %65 = vector.extract_strided_slice %60 {offsets = [2, 0, 0], sizes = [1, 2, 784], strides = [1, 1, 1]} : vector<3x2x784xf32> to vector<1x2x784xf32>
    %66 = vector.shape_cast %65 : vector<1x2x784xf32> to vector<2x784xf32>
    %67 = arith.subf %66, %64 : vector<2x784xf32>
    %68 = arith.addf %66, %64 : vector<2x784xf32>
    %cst_28 = arith.constant 5.000000e-01 : f32
    %69 = vector.broadcast %cst_28 : f32 to vector<2x784xf32>
    %70 = arith.mulf %69, %68 : vector<2x784xf32>
    %71 = arith.subf %70, %62 : vector<2x784xf32>
    %cst_29 = arith.constant dense<0.000000e+00> : vector<2xf32>
    %72 = vector.multi_reduction <add>, %67, %cst_29 [1] : vector<2x784xf32> to vector<2xf32>
    %73 = vector.shape_cast %72 : vector<2xf32> to vector<2x1xf32>
    %cst_30 = arith.constant dense<0.000000e+00> : vector<2xf32>
    %74 = vector.multi_reduction <add>, %71, %cst_30 [1] : vector<2x784xf32> to vector<2xf32>
    %75 = vector.shape_cast %74 : vector<2xf32> to vector<2x1xf32>
    %76 = arith.mulf %67, %67 : vector<2x784xf32>
    %cst_31 = arith.constant dense<0.000000e+00> : vector<2xf32>
    %77 = vector.multi_reduction <add>, %76, %cst_31 [1] : vector<2x784xf32> to vector<2xf32>
    %78 = vector.shape_cast %77 : vector<2xf32> to vector<2x1xf32>
    %79 = arith.mulf %71, %71 : vector<2x784xf32>
    %cst_32 = arith.constant dense<0.000000e+00> : vector<2xf32>
    %80 = vector.multi_reduction <add>, %79, %cst_32 [1] : vector<2x784xf32> to vector<2xf32>
    %81 = vector.shape_cast %80 : vector<2xf32> to vector<2x1xf32>
    %cst_33 = arith.constant 7.840000e+02 : f32
    %82 = vector.broadcast %cst_33 : f32 to vector<2x1xf32>
    %83 = arith.divf %73, %82 : vector<2x1xf32>
    %cst_34 = arith.constant 7.840000e+02 : f32
    %84 = vector.broadcast %cst_34 : f32 to vector<2x1xf32>
    %85 = arith.divf %75, %84 : vector<2x1xf32>
    %cst_35 = arith.constant 7.840000e+02 : f32
    %86 = vector.broadcast %cst_35 : f32 to vector<2x1xf32>
    %87 = arith.mulf %86, %83 : vector<2x1xf32>
    %88 = arith.mulf %87, %83 : vector<2x1xf32>
    %89 = arith.subf %78, %88 : vector<2x1xf32>
    %cst_36 = arith.constant 0.000000e+00 : f32
    %90 = vector.broadcast %cst_36 : f32 to vector<2x1xf32>
    %91 = arith.maximumf %89, %90 : vector<2x1xf32>
    %cst_37 = arith.constant 7.830000e+02 : f32
    %92 = vector.broadcast %cst_37 : f32 to vector<2x1xf32>
    %93 = arith.divf %91, %92 : vector<2x1xf32>
    %cst_38 = arith.constant 7.840000e+02 : f32
    %94 = vector.broadcast %cst_38 : f32 to vector<2x1xf32>
    %95 = arith.mulf %94, %85 : vector<2x1xf32>
    %96 = arith.mulf %95, %85 : vector<2x1xf32>
    %97 = arith.subf %81, %96 : vector<2x1xf32>
    %cst_39 = arith.constant 0.000000e+00 : f32
    %98 = vector.broadcast %cst_39 : f32 to vector<2x1xf32>
    %99 = arith.maximumf %97, %98 : vector<2x1xf32>
    %cst_40 = arith.constant 7.830000e+02 : f32
    %100 = vector.broadcast %cst_40 : f32 to vector<2x1xf32>
    %101 = arith.divf %99, %100 : vector<2x1xf32>
    %102 = arith.addf %93, %101 : vector<2x1xf32>
    %103 = math.sqrt %102 : vector<2x1xf32>
    %104 = arith.mulf %83, %83 : vector<2x1xf32>
    %105 = arith.mulf %85, %85 : vector<2x1xf32>
    %106 = arith.addf %104, %105 : vector<2x1xf32>
    %107 = math.sqrt %106 : vector<2x1xf32>
    %cst_41 = arith.constant 3.000000e-01 : f32
    %108 = vector.broadcast %cst_41 : f32 to vector<2x1xf32>
    %109 = arith.mulf %108, %107 : vector<2x1xf32>
    %110 = arith.addf %103, %109 : vector<2x1xf32>
    %cst_42 = arith.constant 1.090000e+02 : f32
    %111 = vector.broadcast %cst_42 : f32 to vector<2x1xf32>
    %112 = arith.divf %110, %111 : vector<2x1xf32>
    %113 = vector.shape_cast %112 : vector<2x1xf32> to vector<1x2x1xf32>
    %cst_43 = arith.constant dense<0.000000e+00> : vector<1xf32>
    %114 = vector.multi_reduction <add>, %113, %cst_43 [1, 2] : vector<1x2x1xf32> to vector<1xf32>
    %115 = vector.shape_cast %114 : vector<1xf32> to vector<1x1x1xf32>
    %116 = vector.extract %115[0, 0, 0] : f32 from vector<1x1x1xf32>
    %cst_44 = arith.constant 2.000000e+00 : f32
    %117 = arith.divf %116, %cst_44 : f32
    %cst_45 = arith.constant 1.000000e+00 : f32
    %118 = arith.subf %cst_45, %117 : f32
    %cst_46 = arith.constant 1.000000e-01 : f32
    %119 = arith.mulf %cst_46, %8 : f32
    %cst_47 = arith.constant 5.000000e+00 : f32
    %120 = arith.mulf %cst_47, %18 : f32
    %121 = arith.addf %119, %120 : f32
    %cst_48 = arith.constant 1.000000e+00 : f32
    %122 = arith.mulf %cst_48, %59 : f32
    %123 = arith.addf %121, %122 : f32
    %cst_49 = arith.constant 5.000000e-01 : f32
    %124 = arith.mulf %cst_49, %118 : f32
    %125 = arith.addf %123, %124 : f32
    %c0_50 = arith.constant 0 : index
    %c0_51 = arith.constant 0 : index
    %126 = memref.load %arg7[%c0_50, %c0_51] : memref<1x1xf32, #tpu.memory_space<smem>>
    memref.store %125, %arg7[%c0_50, %c0_51] : memref<1x1xf32, #tpu.memory_space<smem>>
    return
  }
}

</mosaic_0001>

<bundles_post_ra>
// kernel: combined_loss.6
= control target key start
LH: loop header
LB: loop body
LE: loop exit
PB: predicated region body
PF: predicated region fallthrough
CT: control target
= control target key end

     0   :  { %8 = vsyncpa [#allocation3], 0  ;;  %s2084_s0 = inlined_call_operand.hbm [shape: bf16[1024,27], index: 0, kind: input, shape index: {}]   ;;  %s2085_s1 = inlined_call_operand.hbm [shape: bf16[27,16], index: 1, kind: input, shape index: {}]   ;;  %s2086_s2 = inlined_call_operand.hbm [shape: f32[1,16], index: 2, kind: input, shape index: {}]   ;;  %s2087_s3 = inlined_call_operand.hbm [shape: f32[1024,16], index: 3, kind: output, shape index: {}]  }
   0x1   :  { %10 = vsyncpa [#allocation3 + $0x1], 0 }
   0x2   :  { %11 = vsyncpa [#allocation6], 0 }
   0x3   :  { %12 = vsyncpa [#allocation4], 0 }
   0x4   :  { %14 = vsyncpa [#allocation4 + $0x1], 0  ;;  %s1579_s12 = smov 0   ;;  %s1581_s13 = smov 0  }
   0x5   :  { %s1583_s14 = smov 0   ;;  %s1585_s15 = smov 0  }
   0x6 LB: > { %s1600_s16 = sadd.s32 4294967295, %s1548_s15   ;;  %s1093_s17 = sadd.s32 4294967294, %s1548_s15   ;;  %s1548_s15 = sphi %s1585_s15, %s2107_s15   ;;  %s1544_s14 = sphi %s1583_s14, %s2106_s14   ;;  %s1540_s13 = sphi %s1581_s13, %s2105_s13   ;;  %s1536_s12 = sphi %s1579_s12, %s2104_s12  }
   0x7   : > { %p40_p0 = scmp.ne.s32.totalorder %s1540_s13, %s1536_s12  ;;  %p2088_p1 = scmp.eq.s32.totalorder %s1600_s16, 0 }
   0x8   : > { %p112_p3 = scmp.eq.s32.totalorder %s1093_s17, 1  ;;  %p1094_p5 = scmp.ge.s32.totalorder %s1548_s15, 1 }
   0x9   : > { %p1609_p4 = por %p2088_p1, %p40_p0  ;;  %p119_p7 = scmp.lt.s32.totalorder %s1548_s15, 3 }
   0xa   : > { %p1614_p6 = por %p112_p3, %p40_p0  ;;  %s1550_s21 = smov [#allocation5]  }
   0xb   : > { %s2091_s18 = scalar_select %p1609_p4, 1, 0 }
   0xc   : > { %s2092_s19 = scalar_select %p1614_p6, 1, 0 }
   0xd   : > { %p1619_p8 = pnand %p1094_p5, %p119_p7  ;;  %s131_s22 = sshll.u32 %s1550_s21, 4  ;;  %s1623_s22 = int_to_ptr.vmem [resolvable:$true] %s131_s22 }
   0xe   : > { %s1551_s24 = smov [#allocation7]   ;;  %s1392_s28 = scalar_lea.hbm %s2085_s1, 256 }
   0xf   : > { %p1298_p9 = pneg %p1619_p8  ;;  %s145_s25 = sshll.u32 %s1551_s24, 4  ;;  %s1634_s25 = int_to_ptr.vmem [resolvable:$true] %s145_s25 }
  0x10   : > { %p1393_p12 = scmp.ne.s32.totalorder %s2085_s1, %s1392_s28  ;;  %p1399_p5 = scmp.lt.u32.totalorder %s1392_s28, %s2085_s1 }
  0x11   : > { %p1630_p11 = pnand %p1298_p9, %p2088_p1 }
  0x13   : > { %p1394_p13 = pneg %p1630_p11 }
  0x15   : > { %p1395_p0 = pnand %p1394_p13, %p1393_p12 }
  0x17   : > { %p1396_p3 = pneg %p1395_p0 }
  0x19   : > { %p1401_p7 = pnand %p1399_p5, %p1396_p3 }
  0x1b   : > { %1404 = shalt.err (!%p1401_p7)
}
  0x1c   : > { %s1405_s6 = scalar_lea.vmem %s1623_s22, 256  ;;  %p1413_p2 = scmp.lt.s32.totalorder %s1623_s22, %s1623_s22 }
  0x1d   : > { %p1406_p9 = scmp.ne.s32.totalorder %s1623_s22, %s1405_s6  ;;  %p1414_p12 = scmp.lt.s32.totalorder %s1405_s6, %s1405_s6 }
  0x1f   : > { %p1408_p10 = pnand %p1406_p9, %p1394_p13  ;;  %p1415_p0 = por %p1414_p12, %p1413_p2 }
  0x21   : > { %p1409_p1 = pneg %p1408_p10 }
  0x23   : > { %p1416_p6 = pnand %p1415_p0, %p1409_p1 }
  0x25   : > { %1419 = shalt.err (!%p1416_p6)
}
  0x26   : > { %s1552_s7 = smov 64   ;;  %s1553_s8 = smov 4  }
  0x27   : > { %1301 = dma.hbm_to_vmem [thread:$0]  (!%p1630_p11), %s2085_s1, 256, %s1623_s22, [#allocation6], %s1552_s7, %s1552_s7, %s1553_s8  }
  0x28   : > { %s1420_s21 = scalar_lea.hbm %s2086_s2, 16 }
  0x29   : > { %p1421_p1 = scmp.ne.s32.totalorder %s2086_s2, %s1420_s21  ;;  %p1427_p10 = scmp.lt.u32.totalorder %s1420_s21, %s2086_s2 }
  0x2b   : > { %p1423_p2 = pnand %p1421_p1, %p1394_p13 }
  0x2d   : > { %p1424_p6 = pneg %p1423_p2 }
  0x2f   : > { %p1429_p3 = pnand %p1427_p10, %p1424_p6 }
  0x31   : > { %1432 = shalt.err (!%p1429_p3)
}
  0x32   : > { %s1433_s22 = scalar_lea.vmem %s1634_s25, 16  ;;  %s1440_s29 = scalar_lea.vmem %s1634_s25, 32 }
  0x33   : > { %p1434_p5 = scmp.ne.s32.totalorder %s1634_s25, %s1433_s22  ;;  %p1441_p12 = scmp.lt.s32.totalorder %s1634_s25, %s1634_s25 }
  0x34   : > { %p1442_p0 = scmp.lt.s32.totalorder %s1440_s29, %s1433_s22 }
  0x35   : > { %p1436_p7 = pnand %p1434_p5, %p1394_p13 }
  0x36   : > { %p1443_p1 = por %p1442_p0, %p1441_p12 }
  0x37   : > { %p1437_p9 = pneg %p1436_p7 }
  0x39   : > { %p1444_p2 = pnand %p1443_p1, %p1437_p9 }
  0x3b   : > { %1447 = shalt.err (!%p1444_p2)
}
  0x3c   : > { %1304 = dma.hbm_to_vmem [thread:$0]  (!%p1630_p11), %s2086_s2, 16, %s1634_s25, [#allocation6]  }
  0x3d   : > { %s1693_s5 = sadd.s32 1, %s1548_s15   ;;  %s27_s23 = sadd.s32 1, %s1544_s14 }
  0x3e   : > { %s24_s6 = ssub.s32 %s1548_s15, %s1693_s5  ;;  %p34_p13 = scmp.ne.s32.totalorder %s1544_s14, %s1540_s13 }
  0x3f   : > { %p25_p6 = scmp.eq.s32.totalorder %s24_s6, 0  ;;  %p35_p10 = scmp.eq.s32.totalorder %s1548_s15, 0 }
  0x40   : > { %p2095_p3 = scmp.eq.s32.totalorder %s1600_s16, 1  ;;  %p1315_p7 = scmp.lt.s32.totalorder %s1548_s15, 2 }
  0x41   : > { %s1709_s10 = scalar_select %p25_p6, %s1544_s14, %s27_s23  }
  0x42   : > { %p1703_p5 = por %p2095_p3, %p34_p13  ;;  %p36_p9 = por %p35_p10, %p34_p13 }
  0x43   : > { %s156_s11 = sand.u32 1, %s1544_s14   ;;  %s1178_s25 = sshll.u32 %s1548_s15, 12 }
  0x44   : > { %s2096_s9 = scalar_select %p1703_p5, 1, 0 }
  0x45   : > { %s1098_s17 = sshll.u32 %s156_s11, 8  ;;  %s1716_s26 = scalar_lea.hbm %s2084_s0, %s1178_s25 }
  0x46   : > { %s160_s27 = scalar_lea.vmem [#allocation2], %s1098_s17  ;;  %p1720_p11 = pnand %p1315_p7, %p36_p9 }
  0x47   : > { %s167_s28 = sshll.u32 %s160_s27, 4  ;;  %s1724_s29 = scalar_lea.sflag [#allocation3], %s156_s11  ;;  %s1718_s28 = int_to_ptr.vmem [resolvable:$true] %s167_s28 }
  0x48   : > { %s1448_s30 = scalar_lea.hbm %s1716_s26, 4096  ;;  %p1450_p0 = pneg %p1720_p11 }
  0x49   : > { %p1449_p12 = scmp.ne.s32.totalorder %s1716_s26, %s1448_s30  ;;  %s1453_s6 = scalar_lea.hbm %s2084_s0, 8192 }
  0x4a   : > { %p1454_p13 = scmp.lt.u32.totalorder %s1716_s26, %s2084_s0  ;;  %p1455_p6 = scmp.lt.u32.totalorder %s1453_s6, %s1448_s30 }
  0x4b   : > { %p1451_p1 = pnand %p1450_p0, %p1449_p12  ;;  %p1457_p3 = scmp.lt.u32.totalorder %s1448_s30, %s1716_s26 }
  0x4c   : > { %p1456_p10 = por %p1455_p6, %p1454_p13 }
  0x4d   : > { %p1452_p2 = pneg %p1451_p1 }
  0x4e   : > { %p1458_p7 = por %p1457_p3, %p1456_p10 }
  0x50   : > { %p1459_p9 = pnand %p1458_p7, %p1452_p2 }
  0x52   : > { %1462 = shalt.err (!%p1459_p9)
}
  0x53   : > { %s1463_s11 = scalar_lea.vmem %s1718_s28, 4096  ;;  %s1554_s21 = smov [#allocation2]  }
  0x54   : > { %p1464_p12 = scmp.ne.s32.totalorder %s1718_s28, %s1463_s11  ;;  %s1468_s24 = sshll.u32 %s1554_s21, 4  ;;  %s1469_s24 = int_to_ptr.vmem [resolvable:$false] %s1468_s24 }
  0x55   : > { %s1470_s27 = scalar_lea.vmem %s1469_s24, 8192  ;;  %p1471_p4 = scmp.lt.s32.totalorder %s1718_s28, %s1469_s24 }
  0x56   : > { %p1466_p1 = pnand %p1464_p12, %p1450_p0  ;;  %p1472_p13 = scmp.lt.s32.totalorder %s1470_s27, %s1463_s11 }
  0x58   : > { %p1467_p5 = pneg %p1466_p1  ;;  %p1473_p6 = por %p1472_p13, %p1471_p4 }
  0x5a   : > { %p1474_p10 = pnand %p1473_p6, %p1467_p5 }
  0x5c   : > { %1477 = shalt.err (!%p1474_p10)
}
  0x5d   : > { %1308 = dma.hbm_to_vmem [thread:$0]  (!%p1720_p11), %s1716_s26, 4096, %s1718_s28, %s1724_s29, %s1552_s7, %s1552_s7, %s1553_s8  }
  0x5e   : > { %179 = sbr.rel (%p1619_p8) target bundleno = 404 (0x194), region = 32  ;;  %s1758_s30 = sand.u32 (!%p1619_p8), 1, %s1540_s13  }
  0x5f   : > { %s1102_s4 = sshll.u32 (!%p1619_p8), %s1758_s30, 8  ;;  %s182_s23 = scalar_lea.sflag (!%p1619_p8), [#allocation3], %s1758_s30 }
  0x60   : > { %s1762_s6 = scalar_lea.vmem (!%p1619_p8), [#allocation2], %s1102_s4  ;;  %p2098_p4 = scmp.ne.s32.totalorder (!%p1619_p8), %s2091_s18, 0 }
  0x65   : > { %1523 = dma.done.wait (%p2098_p4), %s182_s23, 4096  }
  0x66   : > { %1525 = vsyncadd (%p2098_p4), %s182_s23, 4294963200  ;;  %p2099_p5 = scmp.eq.s32.totalorder %s1600_s16, 0 }
  0x68   : > { %1527 = dma.done.wait (%p2099_p5), [#allocation6], 272   ;;  %p2100_p8 = pmov %p2099_p5 }
  0x69   : > { %vm562_vm0 = vcmask 1044480   ;;  %vm563_vm1 = vcmask 1045504   ;;  %v1555_v0 = vmov 65535   ;;  %vm465_vm2 = vcmask 220160   ;;  %v1358_v2 = vld [vmem:[#allocation5] sm:$0xff]   ;;  %v1362_v8 = vld [vmem:[%s1762_s6 + $0x8] sm:$0xff]  }
  0x6a   : > { %1529 = vsyncadd (%p2100_p8), [#allocation6], 4294967024  ;;  %v564_v1 = vsel %vm562_vm0, 4294967295, %v1555_v0  ;;  %v1359_v4 = vld [vmem:[#allocation5 + $0x8] sm:$0x3f]   ;;  %1214 = vmatprep.subr.bf16.mxu0 %v1358_v2  ;;  %1282 = vmatprep.subr.bf16.mxu1 %v1358_v2  ;;  %v1360_v5 = vld [vmem:[%s1762_s6] sm:$0xff]  }
  0x6b   : > { %v565_v3 = vsel %vm563_vm1, %v564_v1, 0  ;;  %1215 = vmatpush3.bf16.msra.mxu0 %v1358_v2  ;;  %1284 = vmatpush3.bf16.msra.mxu1 %v1358_v2  ;;  %v1361_v7 = vld [vmem:[%s1762_s6 + $0x80] sm:$0xff]   ;;  %v1363_v9 = vld [vmem:[%s1762_s6 + $0x88] sm:$0xff]   ;;  %v1364_v10 = vld [vmem:[%s1762_s6 + $0x10] sm:$0xff]   ;;  %s1105_s18 = sshll.u32 %s1758_s30, 9  ;;  %vm922_vm3 = vcmask 130048  }
  0x6c   : > { %v567_v6 = vand.u32 %v1359_v4, %v565_v3  ;;  %1218 = vmatprep.mubr.msk.bf16.mxu0 %vm465_vm2, %v1360_v5  ;;  %1250 = vmatprep.mubr.msk.bf16.mxu1 %vm465_vm2, %v1361_v7  ;;  %v1365_v11 = vld [vmem:[%s1762_s6 + $0x90] sm:$0xff]   ;;  %v1366_v12 = vld [vmem:[%s1762_s6 + $0x18] sm:$0xff]   ;;  %v1368_v14 = vld [vmem:[%s1762_s6 + $0x20] sm:$0xff]   ;;  %s1847_s20 = scalar_lea.vmem [#allocation8], %s1105_s18  ;;  %s1179_s7 = sshll.u32 %s1600_s16, 13 }
  0x6d   : > { %v1367_v13 = vld [vmem:[%s1762_s6 + $0x98] sm:$0xff]   ;;  %v1369_v15 = vld [vmem:[%s1762_s6 + $0xa0] sm:$0xff]   ;;  %v1370_v16 = vld [vmem:[%s1762_s6 + $0x28] sm:$0xff]   ;;  %s1001_s8 = sshll.u32 %s1847_s20, 4  ;;  %s2026_s28 = scalar_lea.hbm %s2087_s3, %s1179_s7  ;;  %s2028_s8 = int_to_ptr.vmem [resolvable:$true] %s1001_s8 }
  0x6e   : > { %1216 = vmatprep.subr.bf16.mxu0 %v567_v6  ;;  %1283 = vmatprep.subr.bf16.mxu1 %v567_v6  ;;  %v1371_v17 = vld [vmem:[%s1762_s6 + $0xa8] sm:$0xff]   ;;  %v1372_v18 = vld [vmem:[%s1762_s6 + $0x30] sm:$0xff]   ;;  %v1374_v20 = vld [vmem:[%s1762_s6 + $0x38] sm:$0xff]   ;;  %s988_s22 = scalar_lea.sflag [#allocation4], %s1758_s30  ;;  %s1478_s29 = scalar_lea.vmem %s2028_s8, 8192 }
  0x6f   : > { %1217 = vmatpush3.bf16.msra.mxu0 %v567_v6  ;;  %1285 = vmatpush3.bf16.msra.mxu1 %v567_v6  ;;  %v1373_v19 = vld [vmem:[%s1762_s6 + $0xb0] sm:$0xff]   ;;  %v1375_v21 = vld [vmem:[%s1762_s6 + $0xb8] sm:$0xff]   ;;  %v1376_v22 = vld [vmem:[%s1762_s6 + $0x40] sm:$0xff]   ;;  %p1479_p11 = scmp.ne.s32.totalorder %s2028_s8, %s1478_s29  ;;  %p2101_p0 = scmp.ne.s32.totalorder %s2096_s9, 0 }
  0x70   : > { %v1377_v23 = vld [vmem:[%s1762_s6 + $0xc0] sm:$0xff]   ;;  %v1378_v24 = vld [vmem:[%s1762_s6 + $0x48] sm:$0xff]   ;;  %v1380_v26 = vld [vmem:[%s1762_s6 + $0x50] sm:$0xff]   ;;  %s1556_s17 = smov [#allocation8]  }
  0x71   : > { %v1379_v25 = vld [vmem:[%s1762_s6 + $0xc8] sm:$0xff]   ;;  %v1381_v27 = vld [vmem:[%s1762_s6 + $0xd0] sm:$0xff]   ;;  %v1382_v28 = vld [vmem:[%s1762_s6 + $0x58] sm:$0xff]   ;;  %p1480_p2 = pnand %p1479_p11, %p2101_p0  ;;  %s1482_s25 = sshll.u32 %s1556_s17, 4  ;;  %s1483_s25 = int_to_ptr.vmem [resolvable:$false] %s1482_s25 }
  0x72   : > { %1219 = vmatmul.mubr.msk.bf16.vlgmr.msra.gmra.mrb[0].mxu0 %vm465_vm2, %v1362_v8  ;;  %1251 = vmatmul.mubr.msk.bf16.vlgmr.msra.gmra.mrb[0].mxu1 %vm465_vm2, %v1363_v9  ;;  %v1383_v29 = vld [vmem:[%s1762_s6 + $0xd8] sm:$0xff]   ;;  %v1384_v30 = vld [vmem:[%s1762_s6 + $0x60] sm:$0xff]   ;;  %v1386_v32 = vld [vmem:[%s1762_s6 + $0x68] sm:$0xff]   ;;  %s1484_s11 = scalar_lea.vmem %s1483_s25, 16384  ;;  %p1485_p7 = scmp.lt.s32.totalorder %s2028_s8, %s1483_s25 }
  0x73   : > { %1222 = vmatprep.mubr.msk.bf16.mxu0 %vm465_vm2, %v1364_v10  ;;  %1254 = vmatprep.mubr.msk.bf16.mxu1 %vm465_vm2, %v1365_v11  ;;  %v1385_v31 = vld [vmem:[%s1762_s6 + $0xe0] sm:$0xff]   ;;  %v1387_v33 = vld [vmem:[%s1762_s6 + $0xe8] sm:$0xff]   ;;  %v1388_v34 = vld [vmem:[%s1762_s6 + $0x70] sm:$0xff]   ;;  %p1481_p3 = pneg %p1480_p2  ;;  %p1486_p9 = scmp.lt.s32.totalorder %s1484_s11, %s1478_s29 }
  0x74   : > { %v1389_v35 = vld [vmem:[%s1762_s6 + $0xf0] sm:$0xff]   ;;  %v1390_v36 = vld [vmem:[%s1762_s6 + $0x78] sm:$0xff]  }
  0x75   : > { %v1391_v37 = vld [vmem:[%s1762_s6 + $0xf8] sm:$0xff]   ;;  %v1836_v38 = vld [vmem:[#allocation7] ss:$0 sm:$0xff]  ;;  %p1487_p12 = por %p1486_p9, %p1485_p7 }
  0x77   : > { %p1488_p1 = pnand %p1487_p12, %p1481_p3 }
  0x7a   : > { %1223 = vmatmul.mubr.msk.bf16.gmra.mrb[4].mxu0 %vm465_vm2, %v1366_v12  ;;  %1255 = vmatmul.mubr.msk.bf16.gmra.mrb[4].mxu1 %vm465_vm2, %v1367_v13 }
  0x7b   : > { %1226 = vmatprep.mubr.msk.bf16.mxu0 %vm465_vm2, %v1368_v14  ;;  %1258 = vmatprep.mubr.msk.bf16.mxu1 %vm465_vm2, %v1369_v15 }
  0x82   : > { %1227 = vmatmul.mubr.msk.bf16.gmra.mrb[8].mxu0 %vm465_vm2, %v1370_v16  ;;  %1259 = vmatmul.mubr.msk.bf16.gmra.mrb[8].mxu1 %vm465_vm2, %v1371_v17 }
  0x83   : > { %1230 = vmatprep.mubr.msk.bf16.mxu0 %vm465_vm2, %v1372_v18  ;;  %1262 = vmatprep.mubr.msk.bf16.mxu1 %vm465_vm2, %v1373_v19 }
  0x8a   : > { %1231 = vmatmul.mubr.msk.bf16.gmra.mrb[12].mxu0 %vm465_vm2, %v1374_v20  ;;  %1263 = vmatmul.mubr.msk.bf16.gmra.mrb[12].mxu1 %vm465_vm2, %v1375_v21 }
  0x8b   : > { %1234 = vmatprep.mubr.msk.bf16.mxu0 %vm465_vm2, %v1376_v22  ;;  %1266 = vmatprep.mubr.msk.bf16.mxu1 %vm465_vm2, %v1377_v23 }
  0x92   : > { %1235 = vmatmul.mubr.msk.bf16.gmra.mrb[16].mxu0 %vm465_vm2, %v1378_v24  ;;  %1267 = vmatmul.mubr.msk.bf16.gmra.mrb[16].mxu1 %vm465_vm2, %v1379_v25 }
  0x93   : > { %1238 = vmatprep.mubr.msk.bf16.mxu0 %vm465_vm2, %v1380_v26  ;;  %1270 = vmatprep.mubr.msk.bf16.mxu1 %vm465_vm2, %v1381_v27 }
  0x9a   : > { %1239 = vmatmul.mubr.msk.bf16.gmra.mrb[20].mxu0 %vm465_vm2, %v1382_v28  ;;  %1271 = vmatmul.mubr.msk.bf16.gmra.mrb[20].mxu1 %vm465_vm2, %v1383_v29 }
  0x9b   : > { %1242 = vmatprep.mubr.msk.bf16.mxu0 %vm465_vm2, %v1384_v30  ;;  %1274 = vmatprep.mubr.msk.bf16.mxu1 %vm465_vm2, %v1385_v31 }
  0xa2   : > { %1243 = vmatmul.mubr.msk.bf16.gmra.mrb[24].mxu0 %vm465_vm2, %v1386_v32  ;;  %1275 = vmatmul.mubr.msk.bf16.gmra.mrb[24].mxu1 %vm465_vm2, %v1387_v33 }
  0xa3   : > { %1246 = vmatprep.mubr.msk.bf16.mxu0 %vm465_vm2, %v1388_v34  ;;  %1278 = vmatprep.mubr.msk.bf16.mxu1 %vm465_vm2, %v1389_v35 }
  0xaa   : > { %1247 = vmatmul.mubr.msk.bf16.gmra.mrb[28].mxu0 %vm465_vm2, %v1390_v36  ;;  %1279 = vmatmul.mubr.msk.bf16.gmra.mrb[28].mxu1 %vm465_vm2, %v1391_v37 }
 0x145   : > { %v1220_v39 = vpop.f32.mrb[0].mxu0  ;;  %v1252_v40 = vpop.f32.mrb[0].mxu1 }
 0x146   : > { %v612_v41 = vadd.f32 %v1220_v39, %v1836_v38  ;;  %v740_v42 = vadd.f32 %v1252_v40, %v1836_v38  ;;  %v603_v43 = vpop.f32.mrb[1].mxu0  ;;  %v731_v44 = vpop.f32.mrb[1].mxu1 }
 0x147   : > { %v604_v45 = vadd.f32 %v1836_v38, %v603_v43  ;;  %v732_v46 = vadd.f32 %v1836_v38, %v731_v44  ;;  %v1221_v47 = vpop.f32.mrb[2].mxu0  ;;  %v1253_v48 = vpop.f32.mrb[2].mxu1 }
 0x148   : > { %v860_v49 = vmax.f32 %v612_v41, 0.0  ;;  %v892_v50 = vmax.f32 %v740_v42, 0.0  ;;  %v615_v51 = vadd.f32 %v1221_v47, %v1836_v38  ;;  %v743_v52 = vadd.f32 %v1253_v48, %v1836_v38  ;;  %v606_v53 = vpop.f32.mrb[3].mxu0  ;;  %v734_v54 = vpop.f32.mrb[3].mxu1 }
 0x149   : > { %v858_v55 = vmax.f32 %v604_v45, 0.0  ;;  %v890_v56 = vmax.f32 %v732_v46, 0.0  ;;  %v607_v57 = vadd.f32 %v1836_v38, %v606_v53  ;;  %v735_v58 = vadd.f32 %v1836_v38, %v734_v54 }
 0x14a   : > { %925 = vst.msk [vmem:[%s1847_s20 + $0x10] sm:$0xff] %vm922_vm3, %v860_v49  ;;  %957 = vst.msk [vmem:[%s1847_s20 + $0x110] sm:$0xff] %vm922_vm3, %v892_v50  ;;  %v861_v59 = vmax.f32 %v615_v51, 0.0  ;;  %v893_v60 = vmax.f32 %v743_v52, 0.0 }
 0x14b   : > { %923 = vst.msk [vmem:[%s1847_s20] sm:$0xff] %vm922_vm3, %v858_v55  ;;  %955 = vst.msk [vmem:[%s1847_s20 + $0x100] sm:$0xff] %vm922_vm3, %v890_v56  ;;  %v859_v61 = vmax.f32 %v607_v57, 0.0  ;;  %v891_v62 = vmax.f32 %v735_v58, 0.0 }
 0x14c   : > { %926 = vst.msk [vmem:[%s1847_s20 + $0x18] sm:$0xff] %vm922_vm3, %v861_v59  ;;  %958 = vst.msk [vmem:[%s1847_s20 + $0x118] sm:$0xff] %vm922_vm3, %v893_v60 }
 0x14d   : > { %924 = vst.msk [vmem:[%s1847_s20 + $0x8] sm:$0xff] %vm922_vm3, %v859_v61  ;;  %956 = vst.msk [vmem:[%s1847_s20 + $0x108] sm:$0xff] %vm922_vm3, %v891_v62  ;;  %v1224_v63 = vpop.f32.mrb[4].mxu0  ;;  %v1256_v0 = vpop.f32.mrb[4].mxu1 }
 0x14e   : > { %v628_v1 = vadd.f32 %v1224_v63, %v1836_v38  ;;  %v756_v2 = vadd.f32 %v1256_v0, %v1836_v38  ;;  %v619_v3 = vpop.f32.mrb[5].mxu0  ;;  %v747_v4 = vpop.f32.mrb[5].mxu1 }
 0x14f   : > { %v620_v5 = vadd.f32 %v1836_v38, %v619_v3  ;;  %v748_v6 = vadd.f32 %v1836_v38, %v747_v4  ;;  %v1225_v7 = vpop.f32.mrb[6].mxu0  ;;  %v1257_v8 = vpop.f32.mrb[6].mxu1 }
 0x150   : > { %v864_v9 = vmax.f32 %v628_v1, 0.0  ;;  %v896_v10 = vmax.f32 %v756_v2, 0.0  ;;  %v631_v11 = vadd.f32 %v1225_v7, %v1836_v38  ;;  %v759_v12 = vadd.f32 %v1257_v8, %v1836_v38  ;;  %v622_v13 = vpop.f32.mrb[7].mxu0  ;;  %v750_v14 = vpop.f32.mrb[7].mxu1 }
 0x151   : > { %v862_v15 = vmax.f32 %v620_v5, 0.0  ;;  %v894_v16 = vmax.f32 %v748_v6, 0.0  ;;  %v623_v17 = vadd.f32 %v1836_v38, %v622_v13  ;;  %v751_v18 = vadd.f32 %v1836_v38, %v750_v14 }
 0x152   : > { %929 = vst.msk [vmem:[%s1847_s20 + $0x30] sm:$0xff] %vm922_vm3, %v864_v9  ;;  %961 = vst.msk [vmem:[%s1847_s20 + $0x130] sm:$0xff] %vm922_vm3, %v896_v10  ;;  %v865_v19 = vmax.f32 %v631_v11, 0.0  ;;  %v897_v20 = vmax.f32 %v759_v12, 0.0 }
 0x153   : > { %927 = vst.msk [vmem:[%s1847_s20 + $0x20] sm:$0xff] %vm922_vm3, %v862_v15  ;;  %959 = vst.msk [vmem:[%s1847_s20 + $0x120] sm:$0xff] %vm922_vm3, %v894_v16  ;;  %v863_v21 = vmax.f32 %v623_v17, 0.0  ;;  %v895_v22 = vmax.f32 %v751_v18, 0.0 }
 0x154   : > { %930 = vst.msk [vmem:[%s1847_s20 + $0x38] sm:$0xff] %vm922_vm3, %v865_v19  ;;  %962 = vst.msk [vmem:[%s1847_s20 + $0x138] sm:$0xff] %vm922_vm3, %v897_v20 }
 0x155   : > { %928 = vst.msk [vmem:[%s1847_s20 + $0x28] sm:$0xff] %vm922_vm3, %v863_v21  ;;  %960 = vst.msk [vmem:[%s1847_s20 + $0x128] sm:$0xff] %vm922_vm3, %v895_v22  ;;  %v1228_v23 = vpop.f32.mrb[8].mxu0  ;;  %v1260_v24 = vpop.f32.mrb[8].mxu1 }
 0x156   : > { %v644_v25 = vadd.f32 %v1228_v23, %v1836_v38  ;;  %v772_v26 = vadd.f32 %v1260_v24, %v1836_v38  ;;  %v635_v27 = vpop.f32.mrb[9].mxu0  ;;  %v763_v28 = vpop.f32.mrb[9].mxu1 }
 0x157   : > { %v636_v29 = vadd.f32 %v1836_v38, %v635_v27  ;;  %v764_v30 = vadd.f32 %v1836_v38, %v763_v28  ;;  %v1229_v31 = vpop.f32.mrb[10].mxu0  ;;  %v1261_v32 = vpop.f32.mrb[10].mxu1 }
 0x158   : > { %v868_v33 = vmax.f32 %v644_v25, 0.0  ;;  %v900_v34 = vmax.f32 %v772_v26, 0.0  ;;  %v647_v35 = vadd.f32 %v1229_v31, %v1836_v38  ;;  %v775_v36 = vadd.f32 %v1261_v32, %v1836_v38  ;;  %v638_v37 = vpop.f32.mrb[11].mxu0  ;;  %v766_v39 = vpop.f32.mrb[11].mxu1 }
 0x159   : > { %v866_v40 = vmax.f32 %v636_v29, 0.0  ;;  %v898_v41 = vmax.f32 %v764_v30, 0.0  ;;  %v639_v42 = vadd.f32 %v1836_v38, %v638_v37  ;;  %v767_v43 = vadd.f32 %v1836_v38, %v766_v39 }
 0x15a   : > { %933 = vst.msk [vmem:[%s1847_s20 + $0x50] sm:$0xff] %vm922_vm3, %v868_v33  ;;  %965 = vst.msk [vmem:[%s1847_s20 + $0x150] sm:$0xff] %vm922_vm3, %v900_v34  ;;  %v869_v44 = vmax.f32 %v647_v35, 0.0  ;;  %v901_v45 = vmax.f32 %v775_v36, 0.0 }
 0x15b   : > { %931 = vst.msk [vmem:[%s1847_s20 + $0x40] sm:$0xff] %vm922_vm3, %v866_v40  ;;  %963 = vst.msk [vmem:[%s1847_s20 + $0x140] sm:$0xff] %vm922_vm3, %v898_v41  ;;  %v867_v46 = vmax.f32 %v639_v42, 0.0  ;;  %v899_v47 = vmax.f32 %v767_v43, 0.0 }
 0x15c   : > { %934 = vst.msk [vmem:[%s1847_s20 + $0x58] sm:$0xff] %vm922_vm3, %v869_v44  ;;  %966 = vst.msk [vmem:[%s1847_s20 + $0x158] sm:$0xff] %vm922_vm3, %v901_v45 }
 0x15d   : > { %932 = vst.msk [vmem:[%s1847_s20 + $0x48] sm:$0xff] %vm922_vm3, %v867_v46  ;;  %964 = vst.msk [vmem:[%s1847_s20 + $0x148] sm:$0xff] %vm922_vm3, %v899_v47  ;;  %v1232_v48 = vpop.f32.mrb[12].mxu0  ;;  %v1264_v49 = vpop.f32.mrb[12].mxu1 }
 0x15e   : > { %v660_v50 = vadd.f32 %v1232_v48, %v1836_v38  ;;  %v788_v51 = vadd.f32 %v1264_v49, %v1836_v38  ;;  %v651_v52 = vpop.f32.mrb[13].mxu0  ;;  %v779_v53 = vpop.f32.mrb[13].mxu1 }
 0x15f   : > { %v652_v54 = vadd.f32 %v1836_v38, %v651_v52  ;;  %v780_v55 = vadd.f32 %v1836_v38, %v779_v53  ;;  %v1233_v56 = vpop.f32.mrb[14].mxu0  ;;  %v1265_v57 = vpop.f32.mrb[14].mxu1 }
 0x160   : > { %v872_v58 = vmax.f32 %v660_v50, 0.0  ;;  %v904_v59 = vmax.f32 %v788_v51, 0.0  ;;  %v663_v60 = vadd.f32 %v1233_v56, %v1836_v38  ;;  %v791_v61 = vadd.f32 %v1265_v57, %v1836_v38  ;;  %v654_v62 = vpop.f32.mrb[15].mxu0  ;;  %v782_v63 = vpop.f32.mrb[15].mxu1 }
 0x161   : > { %v870_v0 = vmax.f32 %v652_v54, 0.0  ;;  %v902_v1 = vmax.f32 %v780_v55, 0.0  ;;  %v655_v2 = vadd.f32 %v1836_v38, %v654_v62  ;;  %v783_v3 = vadd.f32 %v1836_v38, %v782_v63 }
 0x162   : > { %937 = vst.msk [vmem:[%s1847_s20 + $0x70] sm:$0xff] %vm922_vm3, %v872_v58  ;;  %969 = vst.msk [vmem:[%s1847_s20 + $0x170] sm:$0xff] %vm922_vm3, %v904_v59  ;;  %v873_v4 = vmax.f32 %v663_v60, 0.0  ;;  %v905_v5 = vmax.f32 %v791_v61, 0.0 }
 0x163   : > { %935 = vst.msk [vmem:[%s1847_s20 + $0x60] sm:$0xff] %vm922_vm3, %v870_v0  ;;  %967 = vst.msk [vmem:[%s1847_s20 + $0x160] sm:$0xff] %vm922_vm3, %v902_v1  ;;  %v871_v6 = vmax.f32 %v655_v2, 0.0  ;;  %v903_v7 = vmax.f32 %v783_v3, 0.0 }
 0x164   : > { %938 = vst.msk [vmem:[%s1847_s20 + $0x78] sm:$0xff] %vm922_vm3, %v873_v4  ;;  %970 = vst.msk [vmem:[%s1847_s20 + $0x178] sm:$0xff] %vm922_vm3, %v905_v5 }
 0x165   : > { %936 = vst.msk [vmem:[%s1847_s20 + $0x68] sm:$0xff] %vm922_vm3, %v871_v6  ;;  %968 = vst.msk [vmem:[%s1847_s20 + $0x168] sm:$0xff] %vm922_vm3, %v903_v7  ;;  %v1236_v8 = vpop.f32.mrb[16].mxu0  ;;  %v1268_v9 = vpop.f32.mrb[16].mxu1 }
 0x166   : > { %v676_v10 = vadd.f32 %v1236_v8, %v1836_v38  ;;  %v804_v11 = vadd.f32 %v1268_v9, %v1836_v38  ;;  %v667_v12 = vpop.f32.mrb[17].mxu0  ;;  %v795_v13 = vpop.f32.mrb[17].mxu1 }
 0x167   : > { %v668_v14 = vadd.f32 %v1836_v38, %v667_v12  ;;  %v796_v15 = vadd.f32 %v1836_v38, %v795_v13  ;;  %v1237_v16 = vpop.f32.mrb[18].mxu0  ;;  %v1269_v17 = vpop.f32.mrb[18].mxu1 }
 0x168   : > { %v876_v18 = vmax.f32 %v676_v10, 0.0  ;;  %v908_v19 = vmax.f32 %v804_v11, 0.0  ;;  %v679_v20 = vadd.f32 %v1237_v16, %v1836_v38  ;;  %v807_v21 = vadd.f32 %v1269_v17, %v1836_v38  ;;  %v670_v22 = vpop.f32.mrb[19].mxu0  ;;  %v798_v23 = vpop.f32.mrb[19].mxu1 }
 0x169   : > { %v874_v24 = vmax.f32 %v668_v14, 0.0  ;;  %v906_v25 = vmax.f32 %v796_v15, 0.0  ;;  %v671_v26 = vadd.f32 %v1836_v38, %v670_v22  ;;  %v799_v27 = vadd.f32 %v1836_v38, %v798_v23 }
 0x16a   : > { %941 = vst.msk [vmem:[%s1847_s20 + $0x90] sm:$0xff] %vm922_vm3, %v876_v18  ;;  %973 = vst.msk [vmem:[%s1847_s20 + $0x190] sm:$0xff] %vm922_vm3, %v908_v19  ;;  %v877_v28 = vmax.f32 %v679_v20, 0.0  ;;  %v909_v29 = vmax.f32 %v807_v21, 0.0 }
 0x16b   : > { %939 = vst.msk [vmem:[%s1847_s20 + $0x80] sm:$0xff] %vm922_vm3, %v874_v24  ;;  %971 = vst.msk [vmem:[%s1847_s20 + $0x180] sm:$0xff] %vm922_vm3, %v906_v25  ;;  %v875_v30 = vmax.f32 %v671_v26, 0.0  ;;  %v907_v31 = vmax.f32 %v799_v27, 0.0 }
 0x16c   : > { %942 = vst.msk [vmem:[%s1847_s20 + $0x98] sm:$0xff] %vm922_vm3, %v877_v28  ;;  %974 = vst.msk [vmem:[%s1847_s20 + $0x198] sm:$0xff] %vm922_vm3, %v909_v29 }
 0x16d   : > { %940 = vst.msk [vmem:[%s1847_s20 + $0x88] sm:$0xff] %vm922_vm3, %v875_v30  ;;  %972 = vst.msk [vmem:[%s1847_s20 + $0x188] sm:$0xff] %vm922_vm3, %v907_v31  ;;  %v1240_v32 = vpop.f32.mrb[20].mxu0  ;;  %v1272_v33 = vpop.f32.mrb[20].mxu1 }
 0x16e   : > { %v692_v34 = vadd.f32 %v1240_v32, %v1836_v38  ;;  %v820_v35 = vadd.f32 %v1272_v33, %v1836_v38  ;;  %v683_v36 = vpop.f32.mrb[21].mxu0  ;;  %v811_v37 = vpop.f32.mrb[21].mxu1 }
 0x16f   : > { %v684_v39 = vadd.f32 %v1836_v38, %v683_v36  ;;  %v812_v40 = vadd.f32 %v1836_v38, %v811_v37  ;;  %v1241_v41 = vpop.f32.mrb[22].mxu0  ;;  %v1273_v42 = vpop.f32.mrb[22].mxu1 }
 0x170   : > { %v880_v43 = vmax.f32 %v692_v34, 0.0  ;;  %v912_v44 = vmax.f32 %v820_v35, 0.0  ;;  %v695_v45 = vadd.f32 %v1241_v41, %v1836_v38  ;;  %v823_v46 = vadd.f32 %v1273_v42, %v1836_v38  ;;  %v686_v47 = vpop.f32.mrb[23].mxu0  ;;  %v814_v48 = vpop.f32.mrb[23].mxu1 }
 0x171   : > { %v878_v49 = vmax.f32 %v684_v39, 0.0  ;;  %v910_v50 = vmax.f32 %v812_v40, 0.0  ;;  %v687_v51 = vadd.f32 %v1836_v38, %v686_v47  ;;  %v815_v52 = vadd.f32 %v1836_v38, %v814_v48 }
 0x172   : > { %945 = vst.msk [vmem:[%s1847_s20 + $0xb0] sm:$0xff] %vm922_vm3, %v880_v43  ;;  %977 = vst.msk [vmem:[%s1847_s20 + $0x1b0] sm:$0xff] %vm922_vm3, %v912_v44  ;;  %v881_v53 = vmax.f32 %v695_v45, 0.0  ;;  %v913_v54 = vmax.f32 %v823_v46, 0.0 }
 0x173   : > { %943 = vst.msk [vmem:[%s1847_s20 + $0xa0] sm:$0xff] %vm922_vm3, %v878_v49  ;;  %975 = vst.msk [vmem:[%s1847_s20 + $0x1a0] sm:$0xff] %vm922_vm3, %v910_v50  ;;  %v879_v55 = vmax.f32 %v687_v51, 0.0  ;;  %v911_v56 = vmax.f32 %v815_v52, 0.0 }
 0x174   : > { %946 = vst.msk [vmem:[%s1847_s20 + $0xb8] sm:$0xff] %vm922_vm3, %v881_v53  ;;  %978 = vst.msk [vmem:[%s1847_s20 + $0x1b8] sm:$0xff] %vm922_vm3, %v913_v54 }
 0x175   : > { %944 = vst.msk [vmem:[%s1847_s20 + $0xa8] sm:$0xff] %vm922_vm3, %v879_v55  ;;  %976 = vst.msk [vmem:[%s1847_s20 + $0x1a8] sm:$0xff] %vm922_vm3, %v911_v56  ;;  %v1244_v57 = vpop.f32.mrb[24].mxu0  ;;  %v1276_v58 = vpop.f32.mrb[24].mxu1 }
 0x176   : > { %v708_v59 = vadd.f32 %v1244_v57, %v1836_v38  ;;  %v836_v60 = vadd.f32 %v1276_v58, %v1836_v38  ;;  %v699_v61 = vpop.f32.mrb[25].mxu0  ;;  %v827_v62 = vpop.f32.mrb[25].mxu1 }
 0x177   : > { %v700_v63 = vadd.f32 %v1836_v38, %v699_v61  ;;  %v828_v0 = vadd.f32 %v1836_v38, %v827_v62  ;;  %v1245_v1 = vpop.f32.mrb[26].mxu0  ;;  %v1277_v2 = vpop.f32.mrb[26].mxu1 }
 0x178   : > { %v884_v3 = vmax.f32 %v708_v59, 0.0  ;;  %v916_v4 = vmax.f32 %v836_v60, 0.0  ;;  %v711_v5 = vadd.f32 %v1245_v1, %v1836_v38  ;;  %v839_v6 = vadd.f32 %v1277_v2, %v1836_v38  ;;  %v702_v7 = vpop.f32.mrb[27].mxu0  ;;  %v830_v8 = vpop.f32.mrb[27].mxu1 }
 0x179   : > { %v882_v9 = vmax.f32 %v700_v63, 0.0  ;;  %v914_v10 = vmax.f32 %v828_v0, 0.0  ;;  %v703_v11 = vadd.f32 %v1836_v38, %v702_v7  ;;  %v831_v12 = vadd.f32 %v1836_v38, %v830_v8 }
 0x17a   : > { %949 = vst.msk [vmem:[%s1847_s20 + $0xd0] sm:$0xff] %vm922_vm3, %v884_v3  ;;  %981 = vst.msk [vmem:[%s1847_s20 + $0x1d0] sm:$0xff] %vm922_vm3, %v916_v4  ;;  %v885_v13 = vmax.f32 %v711_v5, 0.0  ;;  %v917_v14 = vmax.f32 %v839_v6, 0.0 }
 0x17b   : > { %947 = vst.msk [vmem:[%s1847_s20 + $0xc0] sm:$0xff] %vm922_vm3, %v882_v9  ;;  %979 = vst.msk [vmem:[%s1847_s20 + $0x1c0] sm:$0xff] %vm922_vm3, %v914_v10  ;;  %v883_v15 = vmax.f32 %v703_v11, 0.0  ;;  %v915_v16 = vmax.f32 %v831_v12, 0.0 }
 0x17c   : > { %950 = vst.msk [vmem:[%s1847_s20 + $0xd8] sm:$0xff] %vm922_vm3, %v885_v13  ;;  %982 = vst.msk [vmem:[%s1847_s20 + $0x1d8] sm:$0xff] %vm922_vm3, %v917_v14 }
 0x17d   : > { %948 = vst.msk [vmem:[%s1847_s20 + $0xc8] sm:$0xff] %vm922_vm3, %v883_v15  ;;  %980 = vst.msk [vmem:[%s1847_s20 + $0x1c8] sm:$0xff] %vm922_vm3, %v915_v16  ;;  %v1248_v17 = vpop.f32.mrb[28].mxu0  ;;  %v1280_v18 = vpop.f32.mrb[28].mxu1 }
 0x17e   : > { %v724_v19 = vadd.f32 %v1248_v17, %v1836_v38  ;;  %v852_v20 = vadd.f32 %v1280_v18, %v1836_v38  ;;  %v715_v21 = vpop.f32.mrb[29].mxu0  ;;  %v843_v22 = vpop.f32.mrb[29].mxu1 }
 0x17f   : > { %v716_v23 = vadd.f32 %v1836_v38, %v715_v21  ;;  %v844_v24 = vadd.f32 %v1836_v38, %v843_v22  ;;  %v1249_v25 = vpop.f32.mrb[30].mxu0  ;;  %v1281_v26 = vpop.f32.mrb[30].mxu1 }
 0x180   : > { %v888_v27 = vmax.f32 %v724_v19, 0.0  ;;  %v920_v28 = vmax.f32 %v852_v20, 0.0  ;;  %v727_v29 = vadd.f32 %v1249_v25, %v1836_v38  ;;  %v855_v30 = vadd.f32 %v1281_v26, %v1836_v38  ;;  %v718_v31 = vpop.f32.mrb[31].mxu0  ;;  %v846_v32 = vpop.f32.mrb[31].mxu1 }
 0x181   : > { %v886_v33 = vmax.f32 %v716_v23, 0.0  ;;  %v918_v34 = vmax.f32 %v844_v24, 0.0  ;;  %v719_v35 = vadd.f32 %v1836_v38, %v718_v31  ;;  %v847_v36 = vadd.f32 %v1836_v38, %v846_v32 }
 0x182   : > { %953 = vst.msk [vmem:[%s1847_s20 + $0xf0] sm:$0xff] %vm922_vm3, %v888_v27  ;;  %985 = vst.msk [vmem:[%s1847_s20 + $0x1f0] sm:$0xff] %vm922_vm3, %v920_v28  ;;  %v889_v37 = vmax.f32 %v727_v29, 0.0  ;;  %v921_v39 = vmax.f32 %v855_v30, 0.0 }
 0x183   : > { %951 = vst.msk [vmem:[%s1847_s20 + $0xe0] sm:$0xff] %vm922_vm3, %v886_v33  ;;  %983 = vst.msk [vmem:[%s1847_s20 + $0x1e0] sm:$0xff] %vm922_vm3, %v918_v34  ;;  %v887_v38 = vmax.f32 %v719_v35, 0.0  ;;  %v919_v40 = vmax.f32 %v847_v36, 0.0 }
 0x184   : > { %954 = vst.msk [vmem:[%s1847_s20 + $0xf8] sm:$0xff] %vm922_vm3, %v889_v37  ;;  %986 = vst.msk [vmem:[%s1847_s20 + $0x1f8] sm:$0xff] %vm922_vm3, %v921_v39 }
 0x185   : > { %952 = vst.msk [vmem:[%s1847_s20 + $0xe8] sm:$0xff] %vm922_vm3, %v887_v38  ;;  %984 = vst.msk [vmem:[%s1847_s20 + $0x1e8] sm:$0xff] %vm922_vm3, %v919_v40 }
 0x186   : > { %1491 = shalt.err (!%p1488_p1)
}
 0x187   : > { %s1492_s21 = scalar_lea.hbm %s2026_s28, 8192  ;;  %s1496_s4 = scalar_lea.hbm %s2087_s3, 16384 }
 0x188   : > { %p1493_p13 = scmp.ne.s32.totalorder %s2026_s28, %s1492_s21  ;;  %p1497_p4 = scmp.lt.u32.totalorder %s2026_s28, %s2087_s3 }
 0x189   : > { %p1498_p5 = scmp.lt.u32.totalorder %s1496_s4, %s1492_s21  ;;  %p1500_p11 = scmp.lt.u32.totalorder %s1492_s21, %s2026_s28 }
 0x18a   : > { %p1494_p6 = pnand %p1493_p13, %p2101_p0 }
 0x18b   : > { %p1499_p8 = por %p1498_p5, %p1497_p4 }
 0x18c   : > { %p1495_p10 = pneg %p1494_p6 }
 0x18d   : > { %p1501_p2 = por %p1500_p11, %p1499_p8 }
 0x18f   : > { %p1502_p3 = pnand %p1501_p2, %p1495_p10 }
 0x191   : > { %1505 = shalt.err (!%p1502_p3)
}
 0x192   : > { %s1557_s18 = smov 128   ;;  %s1558_s20 = smov 8  }
 0x193   : > { %1296 = dma.vmem_to_hbm [thread:$0]  (%p2101_p0), %s2028_s8, 8192, %s2026_s28, %s988_s22, %s1557_s18, %s1557_s18, %s1558_s20  }
 0x194 PF: > { %s1016_s7 = sand.u32 1, %s1536_s12   ;;  %p2102_p7 = scmp.ne.s32.totalorder %s2092_s19, 0 }
 0x195   : > { %p2103_p9 = scmp.ge.s32.totalorder %s1548_s15, 2  ;;  %s1017_s16 = scalar_lea.sflag [#allocation4], %s1016_s7 }
 0x197   : > { %p1310_p12 = pnand %p2103_p9, %p2102_p7 }
 0x199   : > { %1531 = dma.done.wait (!%p1310_p12), %s1017_s16, 8192  }
 0x19a   : > { %1533 = vsyncadd (!%p1310_p12), %s1017_s16, 4294959104  ;;  %p17_p1 = scmp.ge.s32.totalorder %s1693_s5, 4   ;;  %s2104_s12 = smov %s1540_s13 }
 0x19b   : > { %s2105_s13 = smov %s1544_s14  ;;  %s2106_s14 = smov %s1709_s10 }
 0x19c   : > { %s2107_s15 = smov %s1693_s5  ;;  %19 = sbr.rel (!%p17_p1) target bundleno = 6 (0x6), region = 85 }
 0x1a3   :  { %1022 = vsyncpa [#allocation3], 1 }
 0x1a4   :  { %1024 = vsyncpa [#allocation3 + $0x1], 1 }
 0x1a5   :  { %1025 = vsyncpa [#allocation6], 1 }
 0x1a6   :  { %1026 = vsyncpa [#allocation4], 1 }
 0x1a7   :  { %1028 = vsyncpa [#allocation4 + $0x1], 1 }

// kernel: combined_loss.4
= control target key start
LH: loop header
LB: loop body
LE: loop exit
PB: predicated region body
PF: predicated region fallthrough
CT: control target
= control target key end

     0   :  { %8 = vsyncpa [#allocation3], 0  ;;  %s2075_s0 = inlined_call_operand.hbm [shape: bf16[3584,27], index: 0, kind: input, shape index: {}]   ;;  %s2076_s1 = inlined_call_operand.hbm [shape: bf16[27,16], index: 1, kind: input, shape index: {}]   ;;  %s2077_s2 = inlined_call_operand.hbm [shape: f32[1,16], index: 2, kind: input, shape index: {}]   ;;  %s2078_s3 = inlined_call_operand.hbm [shape: f32[3584,16], index: 3, kind: output, shape index: {}]  }
   0x1   :  { %10 = vsyncpa [#allocation3 + $0x1], 0 }
   0x2   :  { %11 = vsyncpa [#allocation6], 0 }
   0x3   :  { %12 = vsyncpa [#allocation4], 0 }
   0x4   :  { %14 = vsyncpa [#allocation4 + $0x1], 0  ;;  %s1579_s12 = smov 0   ;;  %s1581_s13 = smov 0  }
   0x5   :  { %s1583_s14 = smov 0   ;;  %s1585_s15 = smov 0  }
   0x6 LB: > { %s1600_s16 = sadd.s32 4294967295, %s1548_s15   ;;  %s1093_s17 = sadd.s32 4294967294, %s1548_s15   ;;  %s1548_s15 = sphi %s1585_s15, %s2097_s15   ;;  %s1544_s14 = sphi %s1583_s14, %s2096_s14   ;;  %s1540_s13 = sphi %s1581_s13, %s2095_s13   ;;  %s1536_s12 = sphi %s1579_s12, %s2094_s12  }
   0x7   : > { %p40_p0 = scmp.ne.s32.totalorder %s1540_s13, %s1536_s12  ;;  %p2079_p1 = scmp.eq.s32.totalorder %s1600_s16, 0 }
   0x8   : > { %p112_p3 = scmp.eq.s32.totalorder %s1093_s17, 6  ;;  %p1094_p5 = scmp.ge.s32.totalorder %s1548_s15, 1 }
   0x9   : > { %p1609_p4 = por %p2079_p1, %p40_p0  ;;  %p119_p7 = scmp.lt.s32.totalorder %s1548_s15, 8 }
   0xa   : > { %p1614_p6 = por %p112_p3, %p40_p0  ;;  %s1550_s21 = smov [#allocation5]  }
   0xb   : > { %s2082_s18 = scalar_select %p1609_p4, 1, 0 }
   0xc   : > { %s2083_s19 = scalar_select %p1614_p6, 1, 0 }
   0xd   : > { %p1619_p8 = pnand %p1094_p5, %p119_p7  ;;  %s131_s22 = sshll.u32 %s1550_s21, 4  ;;  %s132_s22 = int_to_ptr.vmem [resolvable:$true] %s131_s22 }
   0xe   : > { %s1551_s24 = smov [#allocation7]   ;;  %s1392_s28 = scalar_lea.hbm %s2076_s1, 256 }
   0xf   : > { %s2084_s20 = scalar_select %p1619_p8, 1, 0 }
  0x10   : > { %p1298_p9 = pneg %p1619_p8  ;;  %s145_s25 = sshll.u32 %s1551_s24, 4  ;;  %s1631_s25 = int_to_ptr.vmem [resolvable:$true] %s145_s25 }
  0x11   : > { %p1393_p11 = scmp.ne.s32.totalorder %s2076_s1, %s1392_s28  ;;  %p1399_p3 = scmp.lt.u32.totalorder %s1392_s28, %s2076_s1 }
  0x12   : > { %p1627_p10 = pnand %p1298_p9, %p2079_p1 }
  0x14   : > { %p1394_p12 = pneg %p1627_p10 }
  0x16   : > { %p1395_p13 = pnand %p1394_p12, %p1393_p11 }
  0x18   : > { %p1396_p0 = pneg %p1395_p13 }
  0x1a   : > { %p1401_p5 = pnand %p1399_p3, %p1396_p0 }
  0x1c   : > { %1404 = shalt.err (!%p1401_p5)
}
  0x1d   : > { %s1405_s6 = scalar_lea.vmem %s132_s22, 256  ;;  %p1413_p2 = scmp.lt.s32.totalorder %s132_s22, %s132_s22 }
  0x1e   : > { %p1406_p7 = scmp.ne.s32.totalorder %s132_s22, %s1405_s6  ;;  %p1414_p6 = scmp.lt.s32.totalorder %s1405_s6, %s1405_s6 }
  0x20   : > { %p1408_p9 = pnand %p1406_p7, %p1394_p12  ;;  %p1415_p4 = por %p1414_p6, %p1413_p2 }
  0x22   : > { %p1409_p1 = pneg %p1408_p9 }
  0x24   : > { %p1416_p8 = pnand %p1415_p4, %p1409_p1 }
  0x26   : > { %1419 = shalt.err (!%p1416_p8)
}
  0x27   : > { %s1552_s7 = smov 64   ;;  %s1553_s8 = smov 4  }
  0x28   : > { %1301 = dma.hbm_to_vmem [thread:$0]  (!%p1627_p10), %s2076_s1, 256, %s132_s22, [#allocation6], %s1552_s7, %s1552_s7, %s1553_s8  }
  0x29   : > { %s1420_s21 = scalar_lea.hbm %s2077_s2, 16 }
  0x2a   : > { %p1421_p1 = scmp.ne.s32.totalorder %s2077_s2, %s1420_s21  ;;  %p1427_p6 = scmp.lt.u32.totalorder %s1420_s21, %s2077_s2 }
  0x2c   : > { %p1423_p2 = pnand %p1421_p1, %p1394_p12 }
  0x2e   : > { %p1424_p4 = pneg %p1423_p2 }
  0x30   : > { %p1429_p8 = pnand %p1427_p6, %p1424_p4 }
  0x32   : > { %1432 = shalt.err (!%p1429_p8)
}
  0x33   : > { %s1433_s22 = scalar_lea.vmem %s1631_s25, 16  ;;  %s1440_s29 = scalar_lea.vmem %s1631_s25, 32 }
  0x34   : > { %p1434_p11 = scmp.ne.s32.totalorder %s1631_s25, %s1433_s22  ;;  %p1441_p3 = scmp.lt.s32.totalorder %s1631_s25, %s1631_s25 }
  0x35   : > { %p1442_p5 = scmp.lt.s32.totalorder %s1440_s29, %s1433_s22 }
  0x36   : > { %p1436_p13 = pnand %p1434_p11, %p1394_p12 }
  0x37   : > { %p1443_p7 = por %p1442_p5, %p1441_p3 }
  0x38   : > { %p1437_p0 = pneg %p1436_p13 }
  0x3a   : > { %p1444_p9 = pnand %p1443_p7, %p1437_p0 }
  0x3c   : > { %1447 = shalt.err (!%p1444_p9)
}
  0x3d   : > { %1304 = dma.hbm_to_vmem [thread:$0]  (!%p1627_p10), %s2077_s2, 16, %s1631_s25, [#allocation6]  }
  0x3e   : > { %s1685_s5 = sadd.s32 1, %s1548_s15   ;;  %s27_s23 = sadd.s32 1, %s1544_s14 }
  0x3f   : > { %s24_s6 = ssub.s32 %s1548_s15, %s1685_s5  ;;  %p34_p12 = scmp.ne.s32.totalorder %s1544_s14, %s1540_s13 }
  0x40   : > { %p25_p1 = scmp.eq.s32.totalorder %s24_s6, 0  ;;  %p35_p2 = scmp.eq.s32.totalorder %s1548_s15, 0 }
  0x41   : > { %p2086_p4 = scmp.eq.s32.totalorder %s1600_s16, 6  ;;  %p1315_p8 = scmp.lt.s32.totalorder %s1548_s15, 7 }
  0x42   : > { %s1701_s10 = scalar_select %p25_p1, %s1544_s14, %s27_s23  }
  0x43   : > { %p1695_p6 = por %p2086_p4, %p34_p12  ;;  %p36_p11 = por %p35_p2, %p34_p12 }
  0x44   : > { %s156_s11 = sand.u32 1, %s1544_s14   ;;  %s1178_s25 = sshll.u32 %s1548_s15, 12 }
  0x45   : > { %s1098_s17 = sshll.u32 %s156_s11, 8  ;;  %s1708_s26 = scalar_lea.hbm %s2075_s0, %s1178_s25 }
  0x46   : > { %s160_s27 = scalar_lea.vmem [#allocation2], %s1098_s17  ;;  %p1712_p10 = pnand %p1315_p8, %p36_p11 }
  0x47   : > { %s167_s28 = sshll.u32 %s160_s27, 4  ;;  %s1716_s29 = scalar_lea.sflag [#allocation3], %s156_s11  ;;  %s1710_s28 = int_to_ptr.vmem [resolvable:$true] %s167_s28 }
  0x48   : > { %s1448_s30 = scalar_lea.hbm %s1708_s26, 4096  ;;  %p1450_p0 = pneg %p1712_p10 }
  0x49   : > { %p1449_p13 = scmp.ne.s32.totalorder %s1708_s26, %s1448_s30  ;;  %s1453_s6 = scalar_lea.hbm %s2075_s0, 28672 }
  0x4a   : > { %p1454_p7 = scmp.lt.u32.totalorder %s1708_s26, %s2075_s0  ;;  %p1455_p9 = scmp.lt.u32.totalorder %s1453_s6, %s1448_s30 }
  0x4b   : > { %p1451_p3 = pnand %p1450_p0, %p1449_p13  ;;  %p1457_p1 = scmp.lt.u32.totalorder %s1448_s30, %s1708_s26 }
  0x4c   : > { %p1456_p12 = por %p1455_p9, %p1454_p7 }
  0x4d   : > { %p1452_p5 = pneg %p1451_p3 }
  0x4e   : > { %p1458_p2 = por %p1457_p1, %p1456_p12 }
  0x50   : > { %p1459_p4 = pnand %p1458_p2, %p1452_p5 }
  0x52   : > { %1462 = shalt.err (!%p1459_p4)
}
  0x53   : > { %s1463_s11 = scalar_lea.vmem %s1710_s28, 4096  ;;  %s1554_s21 = smov [#allocation2]  }
  0x54   : > { %p1464_p8 = scmp.ne.s32.totalorder %s1710_s28, %s1463_s11  ;;  %s1468_s24 = sshll.u32 %s1554_s21, 4  ;;  %s1469_s24 = int_to_ptr.vmem [resolvable:$false] %s1468_s24 }
  0x55   : > { %s1470_s27 = scalar_lea.vmem %s1469_s24, 8192  ;;  %p1471_p3 = scmp.lt.s32.totalorder %s1710_s28, %s1469_s24 }
  0x56   : > { %p1466_p11 = pnand %p1464_p8, %p1450_p0  ;;  %p1472_p7 = scmp.lt.s32.totalorder %s1470_s27, %s1463_s11 }
  0x58   : > { %p1467_p13 = pneg %p1466_p11  ;;  %p1473_p9 = por %p1472_p7, %p1471_p3 }
  0x5a   : > { %p1474_p12 = pnand %p1473_p9, %p1467_p13 }
  0x5c   : > { %1477 = shalt.err (!%p1474_p12)
}
  0x5d   : > { %1308 = dma.hbm_to_vmem [thread:$0]  (!%p1712_p10), %s1708_s26, 4096, %s1710_s28, %s1716_s29, %s1552_s7, %s1552_s7, %s1553_s8  }
  0x5e   : > { %p2089_p0 = scmp.ne.s32.totalorder %s2084_s20, 0 }
  0x5f   : > { %s1750_s30 = sand.u32 (!%p2089_p0), 1, %s1540_s13   ;;  %p2090_p5 = scmp.ne.s32.totalorder (!%p2089_p0), %s2082_s18, 0 }
  0x60   : > { %179 = sbr.rel (%p2089_p0) target bundleno = 406 (0x196), region = 32  ;;  %s1102_s4 = sshll.u32 (!%p2089_p0), %s1750_s30, 8 }
  0x61   : > { %s182_s23 = scalar_lea.sflag (!%p2089_p0), [#allocation3], %s1750_s30  ;;  %s1754_s6 = scalar_lea.vmem (!%p2089_p0), [#allocation2], %s1102_s4 }
  0x67   : > { %1523 = dma.done.wait (%p2090_p5), %s182_s23, 4096  }
  0x68   : > { %1525 = vsyncadd (%p2090_p5), %s182_s23, 4294963200  ;;  %p2091_p10 = scmp.eq.s32.totalorder %s1600_s16, 0 }
  0x6a   : > { %1527 = dma.done.wait (%p2091_p10), [#allocation6], 272   ;;  %p2092_p1 = pmov %p2091_p10 }
  0x6b   : > { %vm562_vm0 = vcmask 1044480   ;;  %vm563_vm1 = vcmask 1045504   ;;  %v1555_v0 = vmov 65535   ;;  %vm465_vm2 = vcmask 220160   ;;  %v1358_v2 = vld [vmem:[#allocation5] sm:$0xff]   ;;  %v1362_v8 = vld [vmem:[%s1754_s6 + $0x8] sm:$0xff]  }
  0x6c   : > { %1529 = vsyncadd (%p2092_p1), [#allocation6], 4294967024  ;;  %v564_v1 = vsel %vm562_vm0, 4294967295, %v1555_v0  ;;  %v1359_v4 = vld [vmem:[#allocation5 + $0x8] sm:$0x3f]   ;;  %1214 = vmatprep.subr.bf16.mxu0 %v1358_v2  ;;  %1282 = vmatprep.subr.bf16.mxu1 %v1358_v2  ;;  %v1360_v5 = vld [vmem:[%s1754_s6] sm:$0xff]  }
  0x6d   : > { %v565_v3 = vsel %vm563_vm1, %v564_v1, 0  ;;  %1215 = vmatpush3.bf16.msra.mxu0 %v1358_v2  ;;  %1284 = vmatpush3.bf16.msra.mxu1 %v1358_v2  ;;  %v1361_v7 = vld [vmem:[%s1754_s6 + $0x80] sm:$0xff]   ;;  %v1363_v9 = vld [vmem:[%s1754_s6 + $0x88] sm:$0xff]   ;;  %v1364_v10 = vld [vmem:[%s1754_s6 + $0x10] sm:$0xff]   ;;  %s1105_s18 = sshll.u32 %s1750_s30, 9  ;;  %vm922_vm3 = vcmask 130048  }
  0x6e   : > { %v567_v6 = vand.u32 %v1359_v4, %v565_v3  ;;  %1218 = vmatprep.mubr.msk.bf16.mxu0 %vm465_vm2, %v1360_v5  ;;  %1250 = vmatprep.mubr.msk.bf16.mxu1 %vm465_vm2, %v1361_v7  ;;  %v1365_v11 = vld [vmem:[%s1754_s6 + $0x90] sm:$0xff]   ;;  %v1366_v12 = vld [vmem:[%s1754_s6 + $0x18] sm:$0xff]   ;;  %v1368_v14 = vld [vmem:[%s1754_s6 + $0x20] sm:$0xff]   ;;  %s1839_s20 = scalar_lea.vmem [#allocation8], %s1105_s18  ;;  %s1179_s7 = sshll.u32 %s1600_s16, 13 }
  0x6f   : > { %v1367_v13 = vld [vmem:[%s1754_s6 + $0x98] sm:$0xff]   ;;  %v1369_v15 = vld [vmem:[%s1754_s6 + $0xa0] sm:$0xff]   ;;  %v1370_v16 = vld [vmem:[%s1754_s6 + $0x28] sm:$0xff]   ;;  %s1001_s8 = sshll.u32 %s1839_s20, 4  ;;  %s2018_s28 = scalar_lea.hbm %s2078_s3, %s1179_s7  ;;  %s2020_s8 = int_to_ptr.vmem [resolvable:$true] %s1001_s8 }
  0x70   : > { %1216 = vmatprep.subr.bf16.mxu0 %v567_v6  ;;  %1283 = vmatprep.subr.bf16.mxu1 %v567_v6  ;;  %v1371_v17 = vld [vmem:[%s1754_s6 + $0xa8] sm:$0xff]   ;;  %v1372_v18 = vld [vmem:[%s1754_s6 + $0x30] sm:$0xff]   ;;  %v1374_v20 = vld [vmem:[%s1754_s6 + $0x38] sm:$0xff]   ;;  %s988_s22 = scalar_lea.sflag [#allocation4], %s1750_s30  ;;  %s1478_s29 = scalar_lea.vmem %s2020_s8, 8192 }
  0x71   : > { %1217 = vmatpush3.bf16.msra.mxu0 %v567_v6  ;;  %1285 = vmatpush3.bf16.msra.mxu1 %v567_v6  ;;  %v1373_v19 = vld [vmem:[%s1754_s6 + $0xb0] sm:$0xff]   ;;  %v1375_v21 = vld [vmem:[%s1754_s6 + $0xb8] sm:$0xff]   ;;  %v1376_v22 = vld [vmem:[%s1754_s6 + $0x40] sm:$0xff]   ;;  %p1479_p2 = scmp.ne.s32.totalorder %s2020_s8, %s1478_s29  ;;  %s1556_s17 = smov [#allocation8]  }
  0x72   : > { %v1377_v23 = vld [vmem:[%s1754_s6 + $0xc0] sm:$0xff]   ;;  %v1378_v24 = vld [vmem:[%s1754_s6 + $0x48] sm:$0xff]   ;;  %v1380_v26 = vld [vmem:[%s1754_s6 + $0x50] sm:$0xff]   ;;  %s1482_s25 = sshll.u32 %s1556_s17, 4  ;;  %s1483_s25 = int_to_ptr.vmem [resolvable:$false] %s1482_s25 }
  0x73   : > { %v1379_v25 = vld [vmem:[%s1754_s6 + $0xc8] sm:$0xff]   ;;  %v1381_v27 = vld [vmem:[%s1754_s6 + $0xd0] sm:$0xff]   ;;  %v1382_v28 = vld [vmem:[%s1754_s6 + $0x58] sm:$0xff]   ;;  %p1480_p4 = pnand %p1479_p2, %p1695_p6  ;;  %s1484_s11 = scalar_lea.vmem %s1483_s25, 16384 }
  0x74   : > { %1219 = vmatmul.mubr.msk.bf16.vlgmr.msra.gmra.mrb[0].mxu0 %vm465_vm2, %v1362_v8  ;;  %1251 = vmatmul.mubr.msk.bf16.vlgmr.msra.gmra.mrb[0].mxu1 %vm465_vm2, %v1363_v9  ;;  %v1383_v29 = vld [vmem:[%s1754_s6 + $0xd8] sm:$0xff]   ;;  %v1384_v30 = vld [vmem:[%s1754_s6 + $0x60] sm:$0xff]   ;;  %v1386_v32 = vld [vmem:[%s1754_s6 + $0x68] sm:$0xff]   ;;  %p1485_p11 = scmp.lt.s32.totalorder %s2020_s8, %s1483_s25  ;;  %p1486_p13 = scmp.lt.s32.totalorder %s1484_s11, %s1478_s29 }
  0x75   : > { %1222 = vmatprep.mubr.msk.bf16.mxu0 %vm465_vm2, %v1364_v10  ;;  %1254 = vmatprep.mubr.msk.bf16.mxu1 %vm465_vm2, %v1365_v11  ;;  %v1385_v31 = vld [vmem:[%s1754_s6 + $0xe0] sm:$0xff]   ;;  %v1387_v33 = vld [vmem:[%s1754_s6 + $0xe8] sm:$0xff]   ;;  %v1388_v34 = vld [vmem:[%s1754_s6 + $0x70] sm:$0xff]   ;;  %p1481_p8 = pneg %p1480_p4 }
  0x76   : > { %v1389_v35 = vld [vmem:[%s1754_s6 + $0xf0] sm:$0xff]   ;;  %v1390_v36 = vld [vmem:[%s1754_s6 + $0x78] sm:$0xff]   ;;  %p1487_p3 = por %p1486_p13, %p1485_p11 }
  0x77   : > { %v1391_v37 = vld [vmem:[%s1754_s6 + $0xf8] sm:$0xff]   ;;  %v1828_v38 = vld [vmem:[#allocation7] ss:$0 sm:$0xff] }
  0x78   : > { %p1488_p7 = pnand %p1487_p3, %p1481_p8 }
  0x7c   : > { %1223 = vmatmul.mubr.msk.bf16.gmra.mrb[4].mxu0 %vm465_vm2, %v1366_v12  ;;  %1255 = vmatmul.mubr.msk.bf16.gmra.mrb[4].mxu1 %vm465_vm2, %v1367_v13 }
  0x7d   : > { %1226 = vmatprep.mubr.msk.bf16.mxu0 %vm465_vm2, %v1368_v14  ;;  %1258 = vmatprep.mubr.msk.bf16.mxu1 %vm465_vm2, %v1369_v15 }
  0x84   : > { %1227 = vmatmul.mubr.msk.bf16.gmra.mrb[8].mxu0 %vm465_vm2, %v1370_v16  ;;  %1259 = vmatmul.mubr.msk.bf16.gmra.mrb[8].mxu1 %vm465_vm2, %v1371_v17 }
  0x85   : > { %1230 = vmatprep.mubr.msk.bf16.mxu0 %vm465_vm2, %v1372_v18  ;;  %1262 = vmatprep.mubr.msk.bf16.mxu1 %vm465_vm2, %v1373_v19 }
  0x8c   : > { %1231 = vmatmul.mubr.msk.bf16.gmra.mrb[12].mxu0 %vm465_vm2, %v1374_v20  ;;  %1263 = vmatmul.mubr.msk.bf16.gmra.mrb[12].mxu1 %vm465_vm2, %v1375_v21 }
  0x8d   : > { %1234 = vmatprep.mubr.msk.bf16.mxu0 %vm465_vm2, %v1376_v22  ;;  %1266 = vmatprep.mubr.msk.bf16.mxu1 %vm465_vm2, %v1377_v23 }
  0x94   : > { %1235 = vmatmul.mubr.msk.bf16.gmra.mrb[16].mxu0 %vm465_vm2, %v1378_v24  ;;  %1267 = vmatmul.mubr.msk.bf16.gmra.mrb[16].mxu1 %vm465_vm2, %v1379_v25 }
  0x95   : > { %1238 = vmatprep.mubr.msk.bf16.mxu0 %vm465_vm2, %v1380_v26  ;;  %1270 = vmatprep.mubr.msk.bf16.mxu1 %vm465_vm2, %v1381_v27 }
  0x9c   : > { %1239 = vmatmul.mubr.msk.bf16.gmra.mrb[20].mxu0 %vm465_vm2, %v1382_v28  ;;  %1271 = vmatmul.mubr.msk.bf16.gmra.mrb[20].mxu1 %vm465_vm2, %v1383_v29 }
  0x9d   : > { %1242 = vmatprep.mubr.msk.bf16.mxu0 %vm465_vm2, %v1384_v30  ;;  %1274 = vmatprep.mubr.msk.bf16.mxu1 %vm465_vm2, %v1385_v31 }
  0xa4   : > { %1243 = vmatmul.mubr.msk.bf16.gmra.mrb[24].mxu0 %vm465_vm2, %v1386_v32  ;;  %1275 = vmatmul.mubr.msk.bf16.gmra.mrb[24].mxu1 %vm465_vm2, %v1387_v33 }
  0xa5   : > { %1246 = vmatprep.mubr.msk.bf16.mxu0 %vm465_vm2, %v1388_v34  ;;  %1278 = vmatprep.mubr.msk.bf16.mxu1 %vm465_vm2, %v1389_v35 }
  0xac   : > { %1247 = vmatmul.mubr.msk.bf16.gmra.mrb[28].mxu0 %vm465_vm2, %v1390_v36  ;;  %1279 = vmatmul.mubr.msk.bf16.gmra.mrb[28].mxu1 %vm465_vm2, %v1391_v37 }
 0x147   : > { %v1220_v39 = vpop.f32.mrb[0].mxu0  ;;  %v1252_v40 = vpop.f32.mrb[0].mxu1 }
 0x148   : > { %v612_v41 = vadd.f32 %v1220_v39, %v1828_v38  ;;  %v740_v42 = vadd.f32 %v1252_v40, %v1828_v38  ;;  %v603_v43 = vpop.f32.mrb[1].mxu0  ;;  %v731_v44 = vpop.f32.mrb[1].mxu1 }
 0x149   : > { %v604_v45 = vadd.f32 %v1828_v38, %v603_v43  ;;  %v732_v46 = vadd.f32 %v1828_v38, %v731_v44  ;;  %v1221_v47 = vpop.f32.mrb[2].mxu0  ;;  %v1253_v48 = vpop.f32.mrb[2].mxu1 }
 0x14a   : > { %v860_v49 = vmax.f32 %v612_v41, 0.0  ;;  %v892_v50 = vmax.f32 %v740_v42, 0.0  ;;  %v615_v51 = vadd.f32 %v1221_v47, %v1828_v38  ;;  %v743_v52 = vadd.f32 %v1253_v48, %v1828_v38  ;;  %v606_v53 = vpop.f32.mrb[3].mxu0  ;;  %v734_v54 = vpop.f32.mrb[3].mxu1 }
 0x14b   : > { %v858_v55 = vmax.f32 %v604_v45, 0.0  ;;  %v890_v56 = vmax.f32 %v732_v46, 0.0  ;;  %v607_v57 = vadd.f32 %v1828_v38, %v606_v53  ;;  %v735_v58 = vadd.f32 %v1828_v38, %v734_v54 }
 0x14c   : > { %925 = vst.msk [vmem:[%s1839_s20 + $0x10] sm:$0xff] %vm922_vm3, %v860_v49  ;;  %957 = vst.msk [vmem:[%s1839_s20 + $0x110] sm:$0xff] %vm922_vm3, %v892_v50  ;;  %v861_v59 = vmax.f32 %v615_v51, 0.0  ;;  %v893_v60 = vmax.f32 %v743_v52, 0.0 }
 0x14d   : > { %923 = vst.msk [vmem:[%s1839_s20] sm:$0xff] %vm922_vm3, %v858_v55  ;;  %955 = vst.msk [vmem:[%s1839_s20 + $0x100] sm:$0xff] %vm922_vm3, %v890_v56  ;;  %v859_v61 = vmax.f32 %v607_v57, 0.0  ;;  %v891_v62 = vmax.f32 %v735_v58, 0.0 }
 0x14e   : > { %926 = vst.msk [vmem:[%s1839_s20 + $0x18] sm:$0xff] %vm922_vm3, %v861_v59  ;;  %958 = vst.msk [vmem:[%s1839_s20 + $0x118] sm:$0xff] %vm922_vm3, %v893_v60 }
 0x14f   : > { %924 = vst.msk [vmem:[%s1839_s20 + $0x8] sm:$0xff] %vm922_vm3, %v859_v61  ;;  %956 = vst.msk [vmem:[%s1839_s20 + $0x108] sm:$0xff] %vm922_vm3, %v891_v62  ;;  %v1224_v63 = vpop.f32.mrb[4].mxu0  ;;  %v1256_v0 = vpop.f32.mrb[4].mxu1 }
 0x150   : > { %v628_v1 = vadd.f32 %v1224_v63, %v1828_v38  ;;  %v756_v2 = vadd.f32 %v1256_v0, %v1828_v38  ;;  %v619_v3 = vpop.f32.mrb[5].mxu0  ;;  %v747_v4 = vpop.f32.mrb[5].mxu1 }
 0x151   : > { %v620_v5 = vadd.f32 %v1828_v38, %v619_v3  ;;  %v748_v6 = vadd.f32 %v1828_v38, %v747_v4  ;;  %v1225_v7 = vpop.f32.mrb[6].mxu0  ;;  %v1257_v8 = vpop.f32.mrb[6].mxu1 }
 0x152   : > { %v864_v9 = vmax.f32 %v628_v1, 0.0  ;;  %v896_v10 = vmax.f32 %v756_v2, 0.0  ;;  %v631_v11 = vadd.f32 %v1225_v7, %v1828_v38  ;;  %v759_v12 = vadd.f32 %v1257_v8, %v1828_v38  ;;  %v622_v13 = vpop.f32.mrb[7].mxu0  ;;  %v750_v14 = vpop.f32.mrb[7].mxu1 }
 0x153   : > { %v862_v15 = vmax.f32 %v620_v5, 0.0  ;;  %v894_v16 = vmax.f32 %v748_v6, 0.0  ;;  %v623_v17 = vadd.f32 %v1828_v38, %v622_v13  ;;  %v751_v18 = vadd.f32 %v1828_v38, %v750_v14 }
 0x154   : > { %929 = vst.msk [vmem:[%s1839_s20 + $0x30] sm:$0xff] %vm922_vm3, %v864_v9  ;;  %961 = vst.msk [vmem:[%s1839_s20 + $0x130] sm:$0xff] %vm922_vm3, %v896_v10  ;;  %v865_v19 = vmax.f32 %v631_v11, 0.0  ;;  %v897_v20 = vmax.f32 %v759_v12, 0.0 }
 0x155   : > { %927 = vst.msk [vmem:[%s1839_s20 + $0x20] sm:$0xff] %vm922_vm3, %v862_v15  ;;  %959 = vst.msk [vmem:[%s1839_s20 + $0x120] sm:$0xff] %vm922_vm3, %v894_v16  ;;  %v863_v21 = vmax.f32 %v623_v17, 0.0  ;;  %v895_v22 = vmax.f32 %v751_v18, 0.0 }
 0x156   : > { %930 = vst.msk [vmem:[%s1839_s20 + $0x38] sm:$0xff] %vm922_vm3, %v865_v19  ;;  %962 = vst.msk [vmem:[%s1839_s20 + $0x138] sm:$0xff] %vm922_vm3, %v897_v20 }
 0x157   : > { %928 = vst.msk [vmem:[%s1839_s20 + $0x28] sm:$0xff] %vm922_vm3, %v863_v21  ;;  %960 = vst.msk [vmem:[%s1839_s20 + $0x128] sm:$0xff] %vm922_vm3, %v895_v22  ;;  %v1228_v23 = vpop.f32.mrb[8].mxu0  ;;  %v1260_v24 = vpop.f32.mrb[8].mxu1 }
 0x158   : > { %v644_v25 = vadd.f32 %v1228_v23, %v1828_v38  ;;  %v772_v26 = vadd.f32 %v1260_v24, %v1828_v38  ;;  %v635_v27 = vpop.f32.mrb[9].mxu0  ;;  %v763_v28 = vpop.f32.mrb[9].mxu1 }
 0x159   : > { %v636_v29 = vadd.f32 %v1828_v38, %v635_v27  ;;  %v764_v30 = vadd.f32 %v1828_v38, %v763_v28  ;;  %v1229_v31 = vpop.f32.mrb[10].mxu0  ;;  %v1261_v32 = vpop.f32.mrb[10].mxu1 }
 0x15a   : > { %v868_v33 = vmax.f32 %v644_v25, 0.0  ;;  %v900_v34 = vmax.f32 %v772_v26, 0.0  ;;  %v647_v35 = vadd.f32 %v1229_v31, %v1828_v38  ;;  %v775_v36 = vadd.f32 %v1261_v32, %v1828_v38  ;;  %v638_v37 = vpop.f32.mrb[11].mxu0  ;;  %v766_v39 = vpop.f32.mrb[11].mxu1 }
 0x15b   : > { %v866_v40 = vmax.f32 %v636_v29, 0.0  ;;  %v898_v41 = vmax.f32 %v764_v30, 0.0  ;;  %v639_v42 = vadd.f32 %v1828_v38, %v638_v37  ;;  %v767_v43 = vadd.f32 %v1828_v38, %v766_v39 }
 0x15c   : > { %933 = vst.msk [vmem:[%s1839_s20 + $0x50] sm:$0xff] %vm922_vm3, %v868_v33  ;;  %965 = vst.msk [vmem:[%s1839_s20 + $0x150] sm:$0xff] %vm922_vm3, %v900_v34  ;;  %v869_v44 = vmax.f32 %v647_v35, 0.0  ;;  %v901_v45 = vmax.f32 %v775_v36, 0.0 }
 0x15d   : > { %931 = vst.msk [vmem:[%s1839_s20 + $0x40] sm:$0xff] %vm922_vm3, %v866_v40  ;;  %963 = vst.msk [vmem:[%s1839_s20 + $0x140] sm:$0xff] %vm922_vm3, %v898_v41  ;;  %v867_v46 = vmax.f32 %v639_v42, 0.0  ;;  %v899_v47 = vmax.f32 %v767_v43, 0.0 }
 0x15e   : > { %934 = vst.msk [vmem:[%s1839_s20 + $0x58] sm:$0xff] %vm922_vm3, %v869_v44  ;;  %966 = vst.msk [vmem:[%s1839_s20 + $0x158] sm:$0xff] %vm922_vm3, %v901_v45 }
 0x15f   : > { %932 = vst.msk [vmem:[%s1839_s20 + $0x48] sm:$0xff] %vm922_vm3, %v867_v46  ;;  %964 = vst.msk [vmem:[%s1839_s20 + $0x148] sm:$0xff] %vm922_vm3, %v899_v47  ;;  %v1232_v48 = vpop.f32.mrb[12].mxu0  ;;  %v1264_v49 = vpop.f32.mrb[12].mxu1 }
 0x160   : > { %v660_v50 = vadd.f32 %v1232_v48, %v1828_v38  ;;  %v788_v51 = vadd.f32 %v1264_v49, %v1828_v38  ;;  %v651_v52 = vpop.f32.mrb[13].mxu0  ;;  %v779_v53 = vpop.f32.mrb[13].mxu1 }
 0x161   : > { %v652_v54 = vadd.f32 %v1828_v38, %v651_v52  ;;  %v780_v55 = vadd.f32 %v1828_v38, %v779_v53  ;;  %v1233_v56 = vpop.f32.mrb[14].mxu0  ;;  %v1265_v57 = vpop.f32.mrb[14].mxu1 }
 0x162   : > { %v872_v58 = vmax.f32 %v660_v50, 0.0  ;;  %v904_v59 = vmax.f32 %v788_v51, 0.0  ;;  %v663_v60 = vadd.f32 %v1233_v56, %v1828_v38  ;;  %v791_v61 = vadd.f32 %v1265_v57, %v1828_v38  ;;  %v654_v62 = vpop.f32.mrb[15].mxu0  ;;  %v782_v63 = vpop.f32.mrb[15].mxu1 }
 0x163   : > { %v870_v0 = vmax.f32 %v652_v54, 0.0  ;;  %v902_v1 = vmax.f32 %v780_v55, 0.0  ;;  %v655_v2 = vadd.f32 %v1828_v38, %v654_v62  ;;  %v783_v3 = vadd.f32 %v1828_v38, %v782_v63 }
 0x164   : > { %937 = vst.msk [vmem:[%s1839_s20 + $0x70] sm:$0xff] %vm922_vm3, %v872_v58  ;;  %969 = vst.msk [vmem:[%s1839_s20 + $0x170] sm:$0xff] %vm922_vm3, %v904_v59  ;;  %v873_v4 = vmax.f32 %v663_v60, 0.0  ;;  %v905_v5 = vmax.f32 %v791_v61, 0.0 }
 0x165   : > { %935 = vst.msk [vmem:[%s1839_s20 + $0x60] sm:$0xff] %vm922_vm3, %v870_v0  ;;  %967 = vst.msk [vmem:[%s1839_s20 + $0x160] sm:$0xff] %vm922_vm3, %v902_v1  ;;  %v871_v6 = vmax.f32 %v655_v2, 0.0  ;;  %v903_v7 = vmax.f32 %v783_v3, 0.0 }
 0x166   : > { %938 = vst.msk [vmem:[%s1839_s20 + $0x78] sm:$0xff] %vm922_vm3, %v873_v4  ;;  %970 = vst.msk [vmem:[%s1839_s20 + $0x178] sm:$0xff] %vm922_vm3, %v905_v5 }
 0x167   : > { %936 = vst.msk [vmem:[%s1839_s20 + $0x68] sm:$0xff] %vm922_vm3, %v871_v6  ;;  %968 = vst.msk [vmem:[%s1839_s20 + $0x168] sm:$0xff] %vm922_vm3, %v903_v7  ;;  %v1236_v8 = vpop.f32.mrb[16].mxu0  ;;  %v1268_v9 = vpop.f32.mrb[16].mxu1 }
 0x168   : > { %v676_v10 = vadd.f32 %v1236_v8, %v1828_v38  ;;  %v804_v11 = vadd.f32 %v1268_v9, %v1828_v38  ;;  %v667_v12 = vpop.f32.mrb[17].mxu0  ;;  %v795_v13 = vpop.f32.mrb[17].mxu1 }
 0x169   : > { %v668_v14 = vadd.f32 %v1828_v38, %v667_v12  ;;  %v796_v15 = vadd.f32 %v1828_v38, %v795_v13  ;;  %v1237_v16 = vpop.f32.mrb[18].mxu0  ;;  %v1269_v17 = vpop.f32.mrb[18].mxu1 }
 0x16a   : > { %v876_v18 = vmax.f32 %v676_v10, 0.0  ;;  %v908_v19 = vmax.f32 %v804_v11, 0.0  ;;  %v679_v20 = vadd.f32 %v1237_v16, %v1828_v38  ;;  %v807_v21 = vadd.f32 %v1269_v17, %v1828_v38  ;;  %v670_v22 = vpop.f32.mrb[19].mxu0  ;;  %v798_v23 = vpop.f32.mrb[19].mxu1 }
 0x16b   : > { %v874_v24 = vmax.f32 %v668_v14, 0.0  ;;  %v906_v25 = vmax.f32 %v796_v15, 0.0  ;;  %v671_v26 = vadd.f32 %v1828_v38, %v670_v22  ;;  %v799_v27 = vadd.f32 %v1828_v38, %v798_v23 }
 0x16c   : > { %941 = vst.msk [vmem:[%s1839_s20 + $0x90] sm:$0xff] %vm922_vm3, %v876_v18  ;;  %973 = vst.msk [vmem:[%s1839_s20 + $0x190] sm:$0xff] %vm922_vm3, %v908_v19  ;;  %v877_v28 = vmax.f32 %v679_v20, 0.0  ;;  %v909_v29 = vmax.f32 %v807_v21, 0.0 }
 0x16d   : > { %939 = vst.msk [vmem:[%s1839_s20 + $0x80] sm:$0xff] %vm922_vm3, %v874_v24  ;;  %971 = vst.msk [vmem:[%s1839_s20 + $0x180] sm:$0xff] %vm922_vm3, %v906_v25  ;;  %v875_v30 = vmax.f32 %v671_v26, 0.0  ;;  %v907_v31 = vmax.f32 %v799_v27, 0.0 }
 0x16e   : > { %942 = vst.msk [vmem:[%s1839_s20 + $0x98] sm:$0xff] %vm922_vm3, %v877_v28  ;;  %974 = vst.msk [vmem:[%s1839_s20 + $0x198] sm:$0xff] %vm922_vm3, %v909_v29 }
 0x16f   : > { %940 = vst.msk [vmem:[%s1839_s20 + $0x88] sm:$0xff] %vm922_vm3, %v875_v30  ;;  %972 = vst.msk [vmem:[%s1839_s20 + $0x188] sm:$0xff] %vm922_vm3, %v907_v31  ;;  %v1240_v32 = vpop.f32.mrb[20].mxu0  ;;  %v1272_v33 = vpop.f32.mrb[20].mxu1 }
 0x170   : > { %v692_v34 = vadd.f32 %v1240_v32, %v1828_v38  ;;  %v820_v35 = vadd.f32 %v1272_v33, %v1828_v38  ;;  %v683_v36 = vpop.f32.mrb[21].mxu0  ;;  %v811_v37 = vpop.f32.mrb[21].mxu1 }
 0x171   : > { %v684_v39 = vadd.f32 %v1828_v38, %v683_v36  ;;  %v812_v40 = vadd.f32 %v1828_v38, %v811_v37  ;;  %v1241_v41 = vpop.f32.mrb[22].mxu0  ;;  %v1273_v42 = vpop.f32.mrb[22].mxu1 }
 0x172   : > { %v880_v43 = vmax.f32 %v692_v34, 0.0  ;;  %v912_v44 = vmax.f32 %v820_v35, 0.0  ;;  %v695_v45 = vadd.f32 %v1241_v41, %v1828_v38  ;;  %v823_v46 = vadd.f32 %v1273_v42, %v1828_v38  ;;  %v686_v47 = vpop.f32.mrb[23].mxu0  ;;  %v814_v48 = vpop.f32.mrb[23].mxu1 }
 0x173   : > { %v878_v49 = vmax.f32 %v684_v39, 0.0  ;;  %v910_v50 = vmax.f32 %v812_v40, 0.0  ;;  %v687_v51 = vadd.f32 %v1828_v38, %v686_v47  ;;  %v815_v52 = vadd.f32 %v1828_v38, %v814_v48 }
 0x174   : > { %945 = vst.msk [vmem:[%s1839_s20 + $0xb0] sm:$0xff] %vm922_vm3, %v880_v43  ;;  %977 = vst.msk [vmem:[%s1839_s20 + $0x1b0] sm:$0xff] %vm922_vm3, %v912_v44  ;;  %v881_v53 = vmax.f32 %v695_v45, 0.0  ;;  %v913_v54 = vmax.f32 %v823_v46, 0.0 }
 0x175   : > { %943 = vst.msk [vmem:[%s1839_s20 + $0xa0] sm:$0xff] %vm922_vm3, %v878_v49  ;;  %975 = vst.msk [vmem:[%s1839_s20 + $0x1a0] sm:$0xff] %vm922_vm3, %v910_v50  ;;  %v879_v55 = vmax.f32 %v687_v51, 0.0  ;;  %v911_v56 = vmax.f32 %v815_v52, 0.0 }
 0x176   : > { %946 = vst.msk [vmem:[%s1839_s20 + $0xb8] sm:$0xff] %vm922_vm3, %v881_v53  ;;  %978 = vst.msk [vmem:[%s1839_s20 + $0x1b8] sm:$0xff] %vm922_vm3, %v913_v54 }
 0x177   : > { %944 = vst.msk [vmem:[%s1839_s20 + $0xa8] sm:$0xff] %vm922_vm3, %v879_v55  ;;  %976 = vst.msk [vmem:[%s1839_s20 + $0x1a8] sm:$0xff] %vm922_vm3, %v911_v56  ;;  %v1244_v57 = vpop.f32.mrb[24].mxu0  ;;  %v1276_v58 = vpop.f32.mrb[24].mxu1 }
 0x178   : > { %v708_v59 = vadd.f32 %v1244_v57, %v1828_v38  ;;  %v836_v60 = vadd.f32 %v1276_v58, %v1828_v38  ;;  %v699_v61 = vpop.f32.mrb[25].mxu0  ;;  %v827_v62 = vpop.f32.mrb[25].mxu1 }
 0x179   : > { %v700_v63 = vadd.f32 %v1828_v38, %v699_v61  ;;  %v828_v0 = vadd.f32 %v1828_v38, %v827_v62  ;;  %v1245_v1 = vpop.f32.mrb[26].mxu0  ;;  %v1277_v2 = vpop.f32.mrb[26].mxu1 }
 0x17a   : > { %v884_v3 = vmax.f32 %v708_v59, 0.0  ;;  %v916_v4 = vmax.f32 %v836_v60, 0.0  ;;  %v711_v5 = vadd.f32 %v1245_v1, %v1828_v38  ;;  %v839_v6 = vadd.f32 %v1277_v2, %v1828_v38  ;;  %v702_v7 = vpop.f32.mrb[27].mxu0  ;;  %v830_v8 = vpop.f32.mrb[27].mxu1 }
 0x17b   : > { %v882_v9 = vmax.f32 %v700_v63, 0.0  ;;  %v914_v10 = vmax.f32 %v828_v0, 0.0  ;;  %v703_v11 = vadd.f32 %v1828_v38, %v702_v7  ;;  %v831_v12 = vadd.f32 %v1828_v38, %v830_v8 }
 0x17c   : > { %949 = vst.msk [vmem:[%s1839_s20 + $0xd0] sm:$0xff] %vm922_vm3, %v884_v3  ;;  %981 = vst.msk [vmem:[%s1839_s20 + $0x1d0] sm:$0xff] %vm922_vm3, %v916_v4  ;;  %v885_v13 = vmax.f32 %v711_v5, 0.0  ;;  %v917_v14 = vmax.f32 %v839_v6, 0.0 }
 0x17d   : > { %947 = vst.msk [vmem:[%s1839_s20 + $0xc0] sm:$0xff] %vm922_vm3, %v882_v9  ;;  %979 = vst.msk [vmem:[%s1839_s20 + $0x1c0] sm:$0xff] %vm922_vm3, %v914_v10  ;;  %v883_v15 = vmax.f32 %v703_v11, 0.0  ;;  %v915_v16 = vmax.f32 %v831_v12, 0.0 }
 0x17e   : > { %950 = vst.msk [vmem:[%s1839_s20 + $0xd8] sm:$0xff] %vm922_vm3, %v885_v13  ;;  %982 = vst.msk [vmem:[%s1839_s20 + $0x1d8] sm:$0xff] %vm922_vm3, %v917_v14 }
 0x17f   : > { %948 = vst.msk [vmem:[%s1839_s20 + $0xc8] sm:$0xff] %vm922_vm3, %v883_v15  ;;  %980 = vst.msk [vmem:[%s1839_s20 + $0x1c8] sm:$0xff] %vm922_vm3, %v915_v16  ;;  %v1248_v17 = vpop.f32.mrb[28].mxu0  ;;  %v1280_v18 = vpop.f32.mrb[28].mxu1 }
 0x180   : > { %v724_v19 = vadd.f32 %v1248_v17, %v1828_v38  ;;  %v852_v20 = vadd.f32 %v1280_v18, %v1828_v38  ;;  %v715_v21 = vpop.f32.mrb[29].mxu0  ;;  %v843_v22 = vpop.f32.mrb[29].mxu1 }
 0x181   : > { %v716_v23 = vadd.f32 %v1828_v38, %v715_v21  ;;  %v844_v24 = vadd.f32 %v1828_v38, %v843_v22  ;;  %v1249_v25 = vpop.f32.mrb[30].mxu0  ;;  %v1281_v26 = vpop.f32.mrb[30].mxu1 }
 0x182   : > { %v888_v27 = vmax.f32 %v724_v19, 0.0  ;;  %v920_v28 = vmax.f32 %v852_v20, 0.0  ;;  %v727_v29 = vadd.f32 %v1249_v25, %v1828_v38  ;;  %v855_v30 = vadd.f32 %v1281_v26, %v1828_v38  ;;  %v718_v31 = vpop.f32.mrb[31].mxu0  ;;  %v846_v32 = vpop.f32.mrb[31].mxu1 }
 0x183   : > { %v886_v33 = vmax.f32 %v716_v23, 0.0  ;;  %v918_v34 = vmax.f32 %v844_v24, 0.0  ;;  %v719_v35 = vadd.f32 %v1828_v38, %v718_v31  ;;  %v847_v36 = vadd.f32 %v1828_v38, %v846_v32 }
 0x184   : > { %953 = vst.msk [vmem:[%s1839_s20 + $0xf0] sm:$0xff] %vm922_vm3, %v888_v27  ;;  %985 = vst.msk [vmem:[%s1839_s20 + $0x1f0] sm:$0xff] %vm922_vm3, %v920_v28  ;;  %v889_v37 = vmax.f32 %v727_v29, 0.0  ;;  %v921_v39 = vmax.f32 %v855_v30, 0.0 }
 0x185   : > { %951 = vst.msk [vmem:[%s1839_s20 + $0xe0] sm:$0xff] %vm922_vm3, %v886_v33  ;;  %983 = vst.msk [vmem:[%s1839_s20 + $0x1e0] sm:$0xff] %vm922_vm3, %v918_v34  ;;  %v887_v38 = vmax.f32 %v719_v35, 0.0  ;;  %v919_v40 = vmax.f32 %v847_v36, 0.0 }
 0x186   : > { %954 = vst.msk [vmem:[%s1839_s20 + $0xf8] sm:$0xff] %vm922_vm3, %v889_v37  ;;  %986 = vst.msk [vmem:[%s1839_s20 + $0x1f8] sm:$0xff] %vm922_vm3, %v921_v39 }
 0x187   : > { %952 = vst.msk [vmem:[%s1839_s20 + $0xe8] sm:$0xff] %vm922_vm3, %v887_v38  ;;  %984 = vst.msk [vmem:[%s1839_s20 + $0x1e8] sm:$0xff] %vm922_vm3, %v919_v40 }
 0x188   : > { %1491 = shalt.err (!%p1488_p7)
}
 0x189   : > { %s1492_s21 = scalar_lea.hbm %s2018_s28, 8192  ;;  %s1496_s4 = scalar_lea.hbm %s2078_s3, 57344 }
 0x18a   : > { %p1493_p9 = scmp.ne.s32.totalorder %s2018_s28, %s1492_s21  ;;  %p1497_p5 = scmp.lt.u32.totalorder %s2018_s28, %s2078_s3 }
 0x18b   : > { %p1498_p10 = scmp.lt.u32.totalorder %s1496_s4, %s1492_s21  ;;  %p1500_p2 = scmp.lt.u32.totalorder %s1492_s21, %s2018_s28 }
 0x18c   : > { %p1494_p12 = pnand %p1493_p9, %p1695_p6 }
 0x18d   : > { %p1499_p1 = por %p1498_p10, %p1497_p5 }
 0x18e   : > { %p1495_p0 = pneg %p1494_p12 }
 0x18f   : > { %p1501_p4 = por %p1500_p2, %p1499_p1 }
 0x191   : > { %p1502_p8 = pnand %p1501_p4, %p1495_p0 }
 0x193   : > { %1505 = shalt.err (!%p1502_p8)
}
 0x194   : > { %s1557_s18 = smov 128   ;;  %s1558_s20 = smov 8  }
 0x195   : > { %1296 = dma.vmem_to_hbm [thread:$0]  (%p1695_p6), %s2020_s8, 8192, %s2018_s28, %s988_s22, %s1557_s18, %s1557_s18, %s1558_s20  }
 0x196 PF: > { %p1318_p11 = scmp.ge.s32.totalorder %s1548_s15, 2  ;;  %s1016_s7 = sand.u32 1, %s1536_s12  }
 0x197   : > { %p2093_p13 = scmp.ne.s32.totalorder %s2083_s19, 0  ;;  %s1017_s16 = scalar_lea.sflag [#allocation4], %s1016_s7 }
 0x199   : > { %p1310_p3 = pnand %p1318_p11, %p2093_p13 }
 0x19b   : > { %1531 = dma.done.wait (!%p1310_p3), %s1017_s16, 8192  }
 0x19c   : > { %1533 = vsyncadd (!%p1310_p3), %s1017_s16, 4294959104  ;;  %p17_p7 = scmp.ge.s32.totalorder %s1685_s5, 9   ;;  %s2094_s12 = smov %s1540_s13 }
 0x19d   : > { %s2095_s13 = smov %s1544_s14  ;;  %s2096_s14 = smov %s1701_s10 }
 0x19e   : > { %s2097_s15 = smov %s1685_s5  ;;  %19 = sbr.rel (!%p17_p7) target bundleno = 6 (0x6), region = 85 }
 0x1a5   :  { %1022 = vsyncpa [#allocation3], 1 }
 0x1a6   :  { %1024 = vsyncpa [#allocation3 + $0x1], 1 }
 0x1a7   :  { %1025 = vsyncpa [#allocation6], 1 }
 0x1a8   :  { %1026 = vsyncpa [#allocation4], 1 }
 0x1a9   :  { %1028 = vsyncpa [#allocation4 + $0x1], 1 }

// kernel: combined_loss.7
= control target key start
LH: loop header
LB: loop body
LE: loop exit
PB: predicated region body
PF: predicated region fallthrough
CT: control target
= control target key end

     0   :  { %s1006_s0 = inlined_call_operand.hbm [shape: f32[2,1568], index: 0, kind: input, shape index: {}]   ;;  %s1007_s1 = inlined_call_operand.hbm [shape: f32[2,1568], index: 1, kind: input, shape index: {}]   ;;  %s1008_s2 = inlined_call_operand.hbm [shape: f32[3,2,784], index: 2, kind: input, shape index: {}]   ;;  %s1009_s3 = inlined_call_operand.vmem [shape: f32[4,32], index: 3, kind: input, shape index: {}]   ;;  %s1010_s4 = inlined_call_operand.hbm [shape: f32[4,16], index: 4, kind: input, shape index: {}]   ;;  %s1011_s5 = inlined_call_operand.hbm [shape: f32[1,16], index: 5, kind: input, shape index: {}]   ;;  %s1012_s6 = inlined_call_operand.<no memory space> [shape: f32[1,1], index: 6, kind: input, shape index: {}]   ;;  %s1013_s7 = inlined_call_operand.hbm [shape: f32[1,1], index: 7, kind: output, shape index: {}]  }
   0x1   :  { %v12_v0 = vstv %s1012_s6 }
   0x2   :  { %13 = vst [vmem:[#allocation2] sm:$0x1] %v12_v0 }
   0x3   :  { %14 = vsyncpa [#allocation4], 0 }
   0x4   :  { %15 = vsyncpa [#allocation7], 0 }
   0x5   :  { %16 = vsyncpa [#allocation10], 0 }
   0x6   :  { %17 = vsyncpa [#allocation5], 0  ;;  %s804_s26 = smov [#allocation6]   ;;  %s805_s28 = smov [#allocation9]  }
   0x7   :  { %s34_s27 = sshll.u32 %s804_s26, 4  ;;  %s58_s29 = sshll.u32 %s805_s28, 4  ;;  %s35_s27 = int_to_ptr.vmem [resolvable:$true] %s34_s27  ;;  %s59_s29 = int_to_ptr.vmem [resolvable:$true] %s58_s29 }
   0x8   :  { %s676_s9 = scalar_lea.hbm %s1007_s1, 416 }
   0x9   :  { %p677_p0 = scmp.ne.s32.totalorder %s1007_s1, %s676_s9  ;;  %p680_p1 = scmp.lt.u32.totalorder %s676_s9, %s1007_s1 }
   0xb   :  { %p682_p2 = pnand %p680_p1, %p677_p0 }
   0xd   :  { %685 = shalt.err (!%p682_p2)
}
   0xe   :  { %s686_s13 = scalar_lea.vmem %s35_s27, 416  ;;  %p691_p4 = scmp.lt.s32.totalorder %s35_s27, %s35_s27 }
   0xf   :  { %p687_p3 = scmp.ne.s32.totalorder %s35_s27, %s686_s13  ;;  %p692_p5 = scmp.lt.s32.totalorder %s686_s13, %s686_s13 }
  0x11   :  { %p693_p6 = por %p692_p5, %p691_p4 }
  0x13   :  { %p694_p7 = pnand %p693_p6, %p687_p3 }
  0x15   :  { %697 = shalt.err (!%p694_p7)
}
  0x16   :  { %37 = dma.hbm_to_vmem [thread:$0]  %s1007_s1, 416, %s35_s27, [#allocation7]  }
  0x17   :  { %s698_s18 = scalar_lea.hbm %s1010_s4, 64 }
  0x18   :  { %p699_p8 = scmp.ne.s32.totalorder %s1010_s4, %s698_s18  ;;  %p702_p9 = scmp.lt.u32.totalorder %s698_s18, %s1010_s4 }
  0x1a   :  { %p704_p10 = pnand %p702_p9, %p699_p8 }
  0x1c   :  { %707 = shalt.err (!%p704_p10)
}
  0x1d   :  { %s708_s23 = scalar_lea.vmem %s59_s29, 64  ;;  %p713_p12 = scmp.lt.s32.totalorder %s59_s29, %s59_s29 }
  0x1e   :  { %p709_p11 = scmp.ne.s32.totalorder %s59_s29, %s708_s23  ;;  %p714_p13 = scmp.lt.s32.totalorder %s708_s23, %s708_s23 }
  0x20   :  { %p715_p0 = por %p714_p13, %p713_p12 }
  0x22   :  { %p716_p1 = pnand %p715_p0, %p709_p11 }
  0x24   :  { %719 = shalt.err (!%p716_p1)
}
  0x25   :  { %61 = dma.hbm_to_vmem [thread:$0]  %s1010_s4, 64, %s59_s29, [#allocation10]  }
  0x26   :  { %s806_s25 = smov [#allocation3]   ;;  %s807_s27 = smov [#allocation8]  }
  0x27   :  { %s24_s26 = sshll.u32 %s806_s25, 4  ;;  %s43_s28 = sshll.u32 %s807_s27, 4  ;;  %s25_s26 = int_to_ptr.vmem [resolvable:$true] %s24_s26  ;;  %s880_s28 = int_to_ptr.vmem [resolvable:$true] %s43_s28 }
  0x28   :  { %s720_s9 = scalar_lea.hbm %s1006_s0, 416 }
  0x29   :  { %p721_p2 = scmp.ne.s32.totalorder %s1006_s0, %s720_s9  ;;  %p724_p3 = scmp.lt.u32.totalorder %s720_s9, %s1006_s0 }
  0x2b   :  { %p726_p4 = pnand %p724_p3, %p721_p2 }
  0x2d   :  { %729 = shalt.err (!%p726_p4)
}
  0x2e   :  { %s730_s4 = scalar_lea.vmem %s25_s26, 416  ;;  %p735_p6 = scmp.lt.s32.totalorder %s25_s26, %s25_s26 }
  0x2f   :  { %p731_p5 = scmp.ne.s32.totalorder %s25_s26, %s730_s4  ;;  %p736_p7 = scmp.lt.s32.totalorder %s730_s4, %s730_s4 }
  0x31   :  { %p737_p8 = por %p736_p7, %p735_p6 }
  0x33   :  { %p738_p9 = pnand %p737_p8, %p731_p5 }
  0x35   :  { %741 = shalt.err (!%p738_p9)
}
  0x36   :  { %27 = dma.hbm_to_vmem [thread:$0]  %s1006_s0, 416, %s25_s26, [#allocation4]  }
  0x37   :  { %s742_s16 = scalar_lea.hbm %s1008_s2, 672 }
  0x38   :  { %p743_p10 = scmp.ne.s32.totalorder %s1008_s2, %s742_s16  ;;  %p746_p11 = scmp.lt.u32.totalorder %s742_s16, %s1008_s2 }
  0x3a   :  { %p748_p12 = pnand %p746_p11, %p743_p10 }
  0x3c   :  { %751 = shalt.err (!%p748_p12)
}
  0x3d   :  { %s752_s21 = scalar_lea.vmem %s880_s28, 672  ;;  %p757_p0 = scmp.lt.s32.totalorder %s880_s28, %s880_s28 }
  0x3e   :  { %p753_p13 = scmp.ne.s32.totalorder %s880_s28, %s752_s21  ;;  %p758_p1 = scmp.lt.s32.totalorder %s752_s21, %s752_s21 }
  0x40   :  { %p759_p2 = por %p758_p1, %p757_p0 }
  0x42   :  { %p760_p3 = pnand %p759_p2, %p753_p13 }
  0x44   :  { %763 = shalt.err (!%p760_p3)
}
  0x45   :  { %s808_s0 = smov 224   ;;  %s809_s22 = smov 14  }
  0x46   :  { %49 = dma.hbm_to_vmem [thread:$0]  %s1008_s2, 672, %s880_s28, [#allocation7], %s808_s0, %s808_s0, %s809_s22  }
  0x47   :  { %s810_s24 = smov [#allocation11]   ;;  %s764_s30 = scalar_lea.hbm %s1011_s5, 16 }
  0x48   :  { %s68_s25 = sshll.u32 %s810_s24, 4  ;;  %p765_p4 = scmp.ne.s32.totalorder %s1011_s5, %s764_s30  ;;  %s69_s25 = int_to_ptr.vmem [resolvable:$true] %s68_s25 }
  0x49   :  { %p768_p5 = scmp.lt.u32.totalorder %s764_s30, %s1011_s5 }
  0x4b   :  { %p770_p6 = pnand %p768_p5, %p765_p4 }
  0x4d   :  { %773 = shalt.err (!%p770_p6)
}
  0x4e   :  { %s774_s6 = scalar_lea.vmem %s69_s25, 16  ;;  %s778_s2 = scalar_lea.vmem %s69_s25, 32 }
  0x4f   :  { %p775_p7 = scmp.ne.s32.totalorder %s69_s25, %s774_s6  ;;  %p779_p8 = scmp.lt.s32.totalorder %s69_s25, %s69_s25 }
  0x50   :  { %p780_p9 = scmp.lt.s32.totalorder %s778_s2, %s774_s6 }
  0x52   :  { %p781_p10 = por %p780_p9, %p779_p8 }
  0x54   :  { %p782_p11 = pnand %p781_p10, %p775_p7 }
  0x56   :  { %785 = shalt.err (!%p782_p11)
}
  0x57   :  { %71 = dma.hbm_to_vmem [thread:$0]  %s1011_s5, 16, %s69_s25, [#allocation10]  }
  0x58   :  { %796 = dma.done.wait [#allocation4], 416  }
  0x59   :  { %797 = vsyncadd [#allocation4], 4294966880 }
  0x5a   :  { %798 = dma.done.wait [#allocation7], 1088  }
  0x5b   :  { %799 = vsyncadd [#allocation7], 4294966208 }
  0x5c   :  { %800 = dma.done.wait [#allocation10], 80  }
  0x5d   :  { %801 = vsyncadd [#allocation10], 4294967216  ;;  %v113_v1 = vlaneseq  ;;  %v811_v2 = vmov 1983009808   ;;  %v238_v6 = vld [vmem:[#allocation9] sm:$0xf] }
  0x5e   :  { %v111_v3 = vunpack.c.l.s4 %v811_v2  ;;  %v643_v7 = vld [vmem:[#allocation11] ss:$0 sm:$0xff]  ;;  %vm247_vm0 = vcmask 125952   ;;  %v325_v11 = vld [vmem:[#allocation8 + $0x16] sm:$0x3f]  ;;  %v326_v12 = vld [vmem:[#allocation8 + $0x1c] sm:$0xff] }
  0x5f   :  { %v114_v5 = vshrl.u32 %v113_v1, 7  ;;  %v324_v9 = vld [vmem:[#allocation8 + $0xe] sm:$0xff]  ;;  %v246_v10 = vmul.f32 %v643_v7, %v238_v6  ;;  %v327_v13 = vld [vmem:[#allocation8 + $0x24] sm:$0x3f]  ;;  %vm180_vm1 = vcmask 1041408   ;;  %vm389_vm2 = vcmask 123904  }
  0x60   :  { %v112_v4 = vunpack.c.0.s8 %v111_v3  ;;  %v328_v14 = vsub.f32 %v326_v12, %v324_v9  ;;  %v329_v15 = vsub.f32 %v327_v13, %v325_v11  ;;  %v330_v16 = vadd.f32 %v326_v12, %v324_v9  ;;  %v322_v23 = vld [vmem:[#allocation8] sm:$0xff]  ;;  %v323_v24 = vld [vmem:[#allocation8 + $0x8] sm:$0x3f]  ;;  %s786_s9 = scalar_lea.hbm %s1013_s7, 16 }
  0x61   :  { %v331_v17 = vadd.f32 %v327_v13, %v325_v11  ;;  %v248_v18 = vsel %vm247_vm0, %v246_v10, 0.0  ;;  %vm204_vm3 = vcmask 254976   ;;  %vm278_vm4 = vcmask 1024   ;;  %p787_p12 = scmp.ne.s32.totalorder %s1013_s7, %s786_s9  ;;  %p790_p13 = scmp.lt.u32.totalorder %s786_s9, %s1013_s7 }
  0x62   :  { %v923_v8 = vsub.s32 %v112_v4, %v114_v5  ;;  %249 = vadd.xlane.f32.xlu0 %v248_v18  ;;  %v338_v19 = vcombine.high %v328_v14, %v328_v14  ;;  %v355_v21 = vcombine.high %v329_v15, %v329_v15  ;;  %v332_v25 = vmul.f32 0.5, %v330_v16 }
  0x63   :  { %v333_v26 = vmul.f32 0.5, %v331_v17  ;;  %v451_v29 = vmul.f32 %v328_v14, %v328_v14  ;;  %v452_v41 = vmul.f32 %v329_v15, %v329_v15  ;;  %p792_p0 = pnand %p790_p13, %p787_p12 }
  0x64   :  { %v345_v20 = vrot.slane %v328_v14, %v923_v8  ;;  %v362_v22 = vrot.slane %v329_v15, %v923_v8  ;;  %v352_v27 = vrot.slane %v338_v19, %v923_v8  ;;  %v369_v30 = vrot.slane %v355_v21, %v923_v8 }
  0x65   :  { %v334_v32 = vsub.f32 %v332_v25, %v322_v23  ;;  %v335_v33 = vsub.f32 %v333_v26, %v323_v24  ;;  %v455_v45 = vcombine.high %v451_v29, %v451_v29  ;;  %v462_v53 = vrot.slane %v451_v29, %v923_v8 }
  0x66   :  { %v353_v28 = vcombine.high %v345_v20, %v345_v20  ;;  %v378_v31 = vsel %vm180_vm1, %v345_v20, 0.0  ;;  %v354_v34 = vcombine.high %v352_v27, %v352_v27  ;;  %v370_v35 = vcombine.high %v362_v22, %v362_v22 }
  0x67   :  { %v381_v37 = vsel %vm180_vm1, %v352_v27, 0.0  ;;  %v396_v39 = vcombine.high %v334_v32, %v334_v32  ;;  %v403_v40 = vrot.slane %v334_v32, %v923_v8  ;;  %v413_v43 = vcombine.high %v335_v33, %v335_v33 }
  0x68   :  { %v379_v36 = vsel %vm180_vm1, %v353_v28, 0.0  ;;  %v383_v42 = vsel %vm180_vm1, %v354_v34, 0.0  ;;  %v420_v44 = vrot.slane %v335_v33, %v923_v8  ;;  %v385_v50 = vsel %vm180_vm1, %v362_v22, 0.0 }
  0x69   :  { %v380_v38 = vadd.f32 %v379_v36, %v378_v31  ;;  %v410_v47 = vrot.slane %v396_v39, %v923_v8  ;;  %v411_v48 = vcombine.high %v403_v40, %v403_v40  ;;  %v436_v49 = vsel %vm180_vm1, %v403_v40, 0.0 }
  0x6a   :  { %v387_v51 = vsel %vm180_vm1, %v370_v35, 0.0  ;;  %v390_v52 = vsel %vm389_vm2, %v369_v30, 0.0  ;;  %v427_v58 = vrot.slane %v413_v43, %v923_v8  ;;  %v428_v59 = vcombine.high %v420_v44, %v420_v44 }
  0x6b   :  { %v382_v46 = vadd.f32 %v381_v37, %v380_v38  ;;  %v412_v55 = vcombine.high %v410_v47, %v410_v47  ;;  %v437_v56 = vsel %vm180_vm1, %v411_v48, 0.0  ;;  %v439_v57 = vsel %vm180_vm1, %v410_v47, 0.0 }
  0x6c   :  { %v438_v60 = vadd.f32 %v437_v56, %v436_v49  ;;  %v469_v61 = vrot.slane %v455_v45, %v923_v8  ;;  %v470_v0 = vcombine.high %v462_v53, %v462_v53  ;;  %v472_v1 = vcombine.high %v452_v41, %v452_v41  ;;  %v89_v49 = vld [vmem:[#allocation3] sm:$0xff] }
  0x6d   :  { %v384_v54 = vadd.f32 %v383_v42, %v382_v46  ;;  %v441_v63 = vsel %vm180_vm1, %v412_v55, 0.0  ;;  %v479_v4 = vrot.slane %v452_v41, %v923_v8  ;;  %v495_v5 = vsel %vm180_vm1, %v462_v53, 0.0 }
  0x6e   :  { %v440_v2 = vadd.f32 %v439_v57, %v438_v60  ;;  %v471_v3 = vcombine.high %v469_v61, %v469_v61  ;;  %v443_v7 = vsel %vm180_vm1, %v420_v44, 0.0  ;;  %v496_v9 = vsel %vm180_vm1, %v470_v0, 0.0 }
  0x6f   :  { %v386_v62 = vadd.f32 %v385_v50, %v384_v54  ;;  %v498_v10 = vsel %vm180_vm1, %v469_v61, 0.0  ;;  %v487_v12 = vcombine.high %v479_v4, %v479_v4  ;;  %v497_v13 = vadd.f32 %v496_v9, %v495_v5  ;;  %v93_v50 = vld [vmem:[#allocation6] sm:$0xff]  ;;  %v90_v61 = vld [vmem:[#allocation3 + $0x8] sm:$0xff] }
  0x70   :  { %v442_v11 = vadd.f32 %v441_v63, %v440_v2  ;;  %v445_v15 = vsel %vm180_vm1, %v428_v59, 0.0  ;;  %v500_v16 = vsel %vm180_vm1, %v471_v3, 0.0  ;;  %v510_v17 = vmul.f32 %v334_v32, %v334_v32 }
  0x71   :  { %v388_v6 = vadd.f32 %v387_v51, %v386_v62  ;;  %v486_v19 = vrot.slane %v472_v1, %v923_v8  ;;  %v499_v20 = vadd.f32 %v498_v10, %v497_v13  ;;  %v511_v21 = vmul.f32 %v335_v33, %v335_v33  ;;  %v94_v62 = vld [vmem:[#allocation6 + $0x8] sm:$0xff] }
  0x72   :  { %v444_v18 = vadd.f32 %v443_v7, %v442_v11  ;;  %v447_v22 = vsel %vm389_vm2, %v427_v58, 0.0  ;;  %v502_v23 = vsel %vm180_vm1, %v479_v4, 0.0  ;;  %v514_v24 = vcombine.high %v510_v17, %v510_v17 }
  0x73   :  { %v391_v14 = vadd.f32 %v390_v52, %v388_v6  ;;  %v521_v25 = vrot.slane %v510_v17, %v923_v8  ;;  %v501_v27 = vadd.f32 %v500_v16, %v499_v20  ;;  %v504_v28 = vsel %vm180_vm1, %v487_v12, 0.0  ;;  %v95_v16 = vld [vmem:[#allocation6 + $0x10] sm:$0xff] }
  0x74   :  { %v446_v26 = vadd.f32 %v445_v15, %v444_v18  ;;  %v528_v29 = vrot.slane %v514_v24, %v923_v8  ;;  %v538_v31 = vrot.slane %v511_v21, %v923_v8  ;;  %v506_v35 = vsel %vm389_vm2, %v486_v19, 0.0  ;;  %v91_v15 = vld [vmem:[#allocation3 + $0x10] sm:$0xff] }
  0x75   :  { %392 = vadd.xlane.f32.xlu0 %v391_v14  ;;  %v529_v30 = vcombine.high %v521_v25, %v521_v25  ;;  %v554_v32 = vsel %vm180_vm1, %v521_v25, 0.0  ;;  %v503_v34 = vadd.f32 %v502_v23, %v501_v27  ;;  %v531_v37 = vcombine.high %v511_v21, %v511_v21 }
  0x76   :  { %v448_v33 = vadd.f32 %v447_v22, %v446_v26  ;;  %v530_v36 = vcombine.high %v528_v29, %v528_v29  ;;  %v557_v39 = vsel %vm180_vm1, %v528_v29, 0.0  ;;  %v546_v42 = vcombine.high %v538_v31, %v538_v31 }
  0x77   :  { %v555_v38 = vsel %vm180_vm1, %v529_v30, 0.0  ;;  %v505_v40 = vadd.f32 %v504_v28, %v503_v34  ;;  %v545_v46 = vrot.slane %v531_v37, %v923_v8  ;;  %v561_v47 = vsel %vm180_vm1, %v538_v31, 0.0  ;;  %v219_v28 = vld [vmem:[%s1009_s3] sm:$0xf]  ;;  %v92_v34 = vld [vmem:[#allocation3 + $0x18] sm:$0x3] }
  0x78   :  { %449 = vadd.xlane.f32.xlu1 %v448_v33  ;;  %v556_v41 = vadd.f32 %v555_v38, %v554_v32  ;;  %v559_v43 = vsel %vm180_vm1, %v530_v36, 0.0  ;;  %v563_v51 = vsel %vm180_vm1, %v546_v42, 0.0  ;;  %v97_v52 = vsub.f32 %v89_v49, %v93_v50 }
  0x79   :  { %v507_v44 = vadd.f32 %v506_v35, %v505_v40  ;;  %v565_v54 = vsel %vm389_vm2, %v545_v46, 0.0  ;;  %v98_v63 = vsub.f32 %v90_v61, %v94_v62  ;;  %v99_v18 = vsub.f32 %v91_v15, %v95_v16  ;;  %v96_v35 = vld [vmem:[#allocation6 + $0x18] sm:$0x3] }
  0x7a   :  { %v558_v45 = vadd.f32 %v557_v39, %v556_v41  ;;  %v101_v55 = vand.u32 2147483647, %v97_v52  ;;  %v221_v30 = vrot.slane %v219_v28, 2  ;;  %v100_v38 = vsub.f32 %v92_v34, %v96_v35 }
  0x7b   :  { %v102_v4 = vand.u32 2147483647, %v98_v63  ;;  %v103_v22 = vand.u32 2147483647, %v99_v18 }
  0x7c   :  { %508 = vadd.xlane.f32.xlu1 %v507_v44  ;;  %v560_v48 = vadd.f32 %v559_v43, %v558_v45  ;;  %v116_v57 = vrot.slane %v101_v55, %v923_v8  ;;  %v109_v59 = vcombine.high %v101_v55, %v101_v55  ;;  %v223_v37 = vsub.f32 %v219_v28, %v221_v30 }
  0x7d   :  { %v133_v9 = vrot.slane %v102_v4, %v923_v8  ;;  %v126_v12 = vcombine.high %v102_v4, %v102_v4  ;;  %v150_v26 = vrot.slane %v103_v22, %v923_v8  ;;  %v143_v31 = vcombine.high %v103_v22, %v103_v22 }
  0x7e   :  { %v562_v53 = vadd.f32 %v561_v47, %v560_v48  ;;  %v124_v60 = vcombine.high %v116_v57, %v116_v57  ;;  %v123_v0 = vrot.slane %v109_v59, %v923_v8  ;;  %v181_v1 = vsel %vm180_vm1, %v116_v57, 0.0 }
  0x7f   :  { %v141_v13 = vcombine.high %v133_v9, %v133_v9  ;;  %v188_v14 = vsel %vm180_vm1, %v133_v9, 0.0  ;;  %v140_v19 = vrot.slane %v126_v12, %v923_v8  ;;  %v158_v32 = vcombine.high %v150_v26, %v150_v26 }
  0x80   :  { %v564_v56 = vadd.f32 %v563_v51, %v562_v53  ;;  %v182_v2 = vsel %vm180_vm1, %v124_v60, 0.0  ;;  %v125_v5 = vcombine.high %v123_v0, %v123_v0  ;;  %v184_v6 = vsel %vm180_vm1, %v123_v0, 0.0  ;;  %v644_v53 = vld [vmem:[#allocation2] ss:$0 sm:$0xff] }
  0x81   :  { %v183_v3 = vadd.f32 %v182_v2, %v181_v1  ;;  %v190_v20 = vsel %vm180_vm1, %v141_v13, 0.0  ;;  %v142_v23 = vcombine.high %v140_v19, %v140_v19  ;;  %v192_v24 = vsel %vm180_vm1, %v140_v19, 0.0 }
  0x82   :  { %v566_v58 = vadd.f32 %v565_v54, %v564_v56  ;;  %v186_v10 = vsel %vm180_vm1, %v125_v5, 0.0  ;;  %v196_v33 = vsel %vm180_vm1, %v150_v26, 0.0  ;;  %v157_v39 = vrot.slane %v143_v31, %v923_v8 }
  0x83   :  { %v185_v7 = vadd.f32 %v184_v6, %v183_v3  ;;  %v194_v27 = vsel %vm180_vm1, %v142_v23, 0.0  ;;  %v198_v40 = vsel %vm180_vm1, %v158_v32, 0.0  ;;  %v224_v42 = vand.u32 2147483647, %v223_v37 }
  0x84   :  { %567 = vadd.xlane.f32.xlu0 %v566_v58  ;;  %v104_v43 = vand.u32 2147483647, %v100_v38  ;;  %v159_v44 = vcombine.high %v157_v39, %v157_v39  ;;  %v200_v45 = vsel %vm180_vm1, %v157_v39, 0.0 }
  0x85   :  { %v187_v11 = vadd.f32 %v186_v10, %v185_v7  ;;  %v225_v47 = vsel %vm204_vm3, %v224_v42, 0.0 }
  0x86   :  { %v166_v48 = vrot.slane %v104_v43, %v923_v8  ;;  %v202_v49 = vsel %vm180_vm1, %v159_v44, 0.0 }
  0x87   :  { %v189_v17 = vadd.f32 %v188_v14, %v187_v11 }
  0x88   :  { %226 = vadd.xlane.f32.xlu0 %v225_v47  ;;  %v205_v51 = vsel %vm204_vm3, %v166_v48, 0.0 }
  0x89   :  { %v191_v21 = vadd.f32 %v190_v20, %v189_v17 }
  0x8b   :  { %v193_v25 = vadd.f32 %v192_v24, %v191_v21 }
  0x8d   :  { %v195_v29 = vadd.f32 %v194_v27, %v193_v25 }
  0x8f   :  { %v197_v36 = vadd.f32 %v196_v33, %v195_v29 }
  0x91   :  { %v199_v41 = vadd.f32 %v198_v40, %v197_v36 }
  0x93   :  { %v201_v46 = vadd.f32 %v200_v45, %v199_v41 }
  0x95   :  { %v203_v50 = vadd.f32 %v202_v49, %v201_v46 }
  0x97   :  { %v206_v52 = vadd.f32 %v205_v51, %v203_v50 }
  0x99   :  { %207 = vadd.xlane.f32.xlu1 %v206_v52 }
  0xef   :  { %v250_v54 = vpop.xlane.xlu0 %249 }
  0xf0   :  { %v258_v55 = vadd.f32 %v644_v53, %v250_v54 }
  0xf2   :  { %v259_v56 = vsub.f32 0.0, %v258_v55  ;;  %v293_v57 = vand.u32 2147483647, %v258_v55  ;;  %v292_v27 = vmax.f32 %v258_v55, 0.0 }
  0xf4   :  { %v261_v58 = vand.u32 2147483647, %v259_v56  ;;  %v294_v59 = vsub.f32 0.0, %v293_v57  ;;  %v260_v34 = vmax.f32 %v259_v56, 0.0 }
  0xf6   :  { %v262_v60 = vsub.f32 0.0, %v261_v58  ;;  %v295_v61 = vmul.f32 1.442695, %v294_v59 }
  0xf8   :  { %v263_v62 = vmul.f32 1.442695, %v262_v60  ;;  %664 = vpow2.f32 %v295_v61 }
  0xfa   :  { %666 = vpow2.f32 %v263_v62 }
 0x102   :  { %v393_v8 = vpop.xlane.xlu0 %392  ;;  %v665_v63 = vpop.eup %664 }
 0x103   :  { %v570_v0 = vmul.f32 0.0012755102, %v393_v8  ;;  %v297_v1 = vadd.f32 1.0, %v665_v63  ;;  %v300_v10 = vmul.f32 -0.5, %v665_v63  ;;  %v303_v17 = vand.u32 2147483647, %v665_v63 }
 0x104   :  { %v667_v2 = vpop.eup %666 }
 0x105   :  { %v450_v3 = vpop.xlane.xlu1 %449  ;;  %668 = vlog2.f32 %v297_v1  ;;  %v265_v4 = vadd.f32 1.0, %v667_v2  ;;  %v572_v6 = vmul.f32 784.0, %v570_v0  ;;  %v591_v7 = vmul.f32 %v570_v0, %v570_v0 }
 0x106   :  { %v571_v5 = vmul.f32 0.0012755102, %v450_v3  ;;  %v268_v11 = vmul.f32 -0.5, %v667_v2  ;;  %v301_v16 = vadd.f32 1.0, %v300_v10  ;;  %v271_v22 = vand.u32 2147483647, %v667_v2 }
 0x107   :  { %670 = vlog2.f32 %v265_v4  ;;  %v573_v12 = vmul.f32 %v572_v6, %v570_v0  ;;  %vm304_vm5 = vcmp.lt.f32.partialorder %v303_v17, 0.0004427343 }
 0x108   :  { %v592_v9 = vmul.f32 %v571_v5, %v571_v5  ;;  %v578_v13 = vmul.f32 784.0, %v571_v5  ;;  %v269_v18 = vadd.f32 1.0, %v268_v11  ;;  %v302_v24 = vmul.f32 %v665_v63, %v301_v16 }
 0x109   :  { %v509_v14 = vpop.xlane.xlu1 %508  ;;  %vm272_vm6 = vcmp.lt.f32.partialorder %v271_v22, 0.0004427343 }
 0x10a   :  { %v593_v15 = vadd.f32 %v592_v9, %v591_v7  ;;  %v574_v19 = vsub.f32 %v509_v14, %v573_v12  ;;  %v579_v20 = vmul.f32 %v578_v13, %v571_v5  ;;  %v270_v28 = vmul.f32 %v667_v2, %v269_v18 }
 0x10c   :  { %672 = vrsqrt.f32 %v593_v15  ;;  %v575_v29 = vmax.f32 %v574_v19, 0.0  ;;  %vm596_vm7 = vcmp.eq.f32.partialorder %v593_v15, inf  ;;  %v599_v47 = vand.u32 2147483648, %v593_v15 }
 0x10d   :  { %vm598_vm8 = vcmp.eq.f32.partialorder %v593_v15, 0.0 }
 0x10e   :  { %v577_v39 = vmul.f32 0.0012771392, %v575_v29 }
 0x10f   :  { %v669_v21 = vpop.eup %668 }
 0x110   :  { %v299_v23 = vmul.f32 0.6931472, %v669_v21 }
 0x111   :  { %v671_v25 = vpop.eup %670  ;;  %v568_v26 = vpop.xlane.xlu0 %567 }
 0x112   :  { %v580_v30 = vsub.f32 %v568_v26, %v579_v20  ;;  %v305_v31 = vsel %vm304_vm5, %v302_v24, %v299_v23  ;;  %v267_v32 = vmul.f32 0.6931472, %v671_v25 }
 0x113   :  { %v306_v33 = vadd.f32 %v305_v31, %v292_v27 }
 0x114   :  { %v581_v35 = vmax.f32 %v580_v30, 0.0  ;;  %v273_v36 = vsel %vm272_vm6, %v270_v28, %v267_v32 }
 0x115   :  { %v307_v37 = vsel %vm278_vm4, %v306_v33, 0.0  ;;  %v274_v38 = vadd.f32 %v273_v36, %v260_v34  ;;  %v227_v54 = vpop.xlane.xlu0 %226 }
 0x116   :  { %v582_v40 = vmul.f32 0.0012771392, %v581_v35  ;;  %308 = vadd.xlane.f32.xlu0 %v307_v37  ;;  %v673_v44 = vpop.eup %672  ;;  %v228_v56 = vrot.slane %v227_v54, 4 }
 0x117   :  { %v276_v41 = vrot.slane %v274_v38, 2  ;;  %v595_v45 = vmul.f32 %v673_v44, %v593_v15 }
 0x118   :  { %v583_v42 = vadd.f32 %v582_v40, %v577_v39  ;;  %v229_v58 = vadd.f32 %v228_v56, %v227_v54 }
 0x119   :  { %v279_v43 = vsel %vm278_vm4, %v276_v41, 0.0  ;;  %v597_v46 = vsel %vm596_vm7, %v593_v15, %v595_v45 }
 0x11a   :  { %674 = vrsqrt.f32 %v583_v42  ;;  %280 = vadd.xlane.f32.xlu1 %v279_v43  ;;  %v600_v49 = vsel %vm598_vm8, %v599_v47, %v597_v46  ;;  %vm586_vm9 = vcmp.eq.f32.partialorder %v583_v42, inf  ;;  %v589_v51 = vand.u32 2147483648, %v583_v42 }
 0x11b   :  { %vm588_vm10 = vcmp.eq.f32.partialorder %v583_v42, 0.0  ;;  %v601_v53 = vmul.f32 0.3, %v600_v49  ;;  %v230_v61 = vrot.slane %v229_v58, 2 }
 0x11d   :  { %v231_v0 = vadd.f32 %v230_v61, %v229_v58 }
 0x11f   :  { %v232_v2 = vrot.slane %v231_v0, 1 }
 0x121   :  { %v233_v5 = vadd.f32 %v232_v2, %v231_v0 }
 0x124   :  { %v675_v48 = vpop.eup %674 }
 0x125   :  { %v585_v50 = vmul.f32 %v675_v48, %v583_v42 }
 0x126   :  { %v208_v60 = vpop.xlane.xlu1 %207 }
 0x127   :  { %v587_v52 = vsel %vm586_vm9, %v583_v42, %v585_v50  ;;  %v209_v62 = vrot.slane %v208_v60, 4 }
 0x128   :  { %v590_v55 = vsel %vm588_vm10, %v589_v51, %v587_v52 }
 0x129   :  { %v602_v57 = vadd.f32 %v601_v53, %v590_v55  ;;  %v210_v63 = vadd.f32 %v209_v62, %v208_v60 }
 0x12b   :  { %v604_v59 = vmul.f32 0.0091743115, %v602_v57  ;;  %v211_v1 = vrot.slane %v210_v63, 2 }
 0x12d   :  { %v605_v8 = vsel %vm278_vm4, %v604_v59, 0.0  ;;  %v212_v3 = vadd.f32 %v211_v1, %v210_v63 }
 0x12e   :  { %606 = vadd.xlane.f32.xlu1 %v605_v8 }
 0x12f   :  { %v213_v4 = vrot.slane %v212_v3, 1 }
 0x131   :  { %v214_v6 = vadd.f32 %v213_v4, %v212_v3 }
 0x133   :  { %645 = vpush %v214_v6 }
 0x134   :  { %647 = vpush %v233_v5 }
 0x164   :  { %s646_s3 = spop %645 }
 0x165   :  { %s648_s29 = spop %647  ;;  %s218_s17 = smul.f32 0.00031887754, %s646_s3 }
 0x166   :  { %s237_s18 = smul.f32 0.015625, %s648_s29 }
 0x167   :  { %s619_s20 = smul.f32 0.1, %s218_s17 }
 0x168   :  { %s620_s21 = smul.f32 5.0, %s237_s18 }
 0x16a   :  { %s621_s1 = sadd.f32 %s620_s21, %s619_s20 }
 0x1a3   :  { %v309_v7 = vpop.xlane.xlu0 %308 }
 0x1a4   :  { %v310_v9 = vrot.slane %v309_v7, 4 }
 0x1a6   :  { %v311_v10 = vadd.f32 %v310_v9, %v309_v7 }
 0x1a7   :  { %v281_v11 = vpop.xlane.xlu1 %280 }
 0x1a8   :  { %v312_v12 = vrot.slane %v311_v10, 2  ;;  %v282_v13 = vrot.slane %v281_v11, 4 }
 0x1aa   :  { %v283_v14 = vadd.f32 %v282_v13, %v281_v11  ;;  %v313_v15 = vadd.f32 %v312_v12, %v311_v10 }
 0x1ac   :  { %v284_v16 = vrot.slane %v283_v14, 2  ;;  %v314_v18 = vrot.slane %v313_v15, 1 }
 0x1ae   :  { %v285_v17 = vadd.f32 %v284_v16, %v283_v14  ;;  %v315_v21 = vadd.f32 %v314_v18, %v313_v15 }
 0x1b0   :  { %v286_v19 = vrot.slane %v285_v17, 1 }
 0x1b2   :  { %v287_v20 = vadd.f32 %v286_v19, %v285_v17 }
 0x1b4   :  { %649 = vpush %v287_v20 }
 0x1b5   :  { %651 = vpush %v315_v21 }
 0x1bb   :  { %v607_v22 = vpop.xlane.xlu1 %606 }
 0x1bc   :  { %v608_v23 = vrot.slane %v607_v22, 4 }
 0x1be   :  { %v609_v24 = vadd.f32 %v608_v23, %v607_v22 }
 0x1c0   :  { %v610_v25 = vrot.slane %v609_v24, 2 }
 0x1c2   :  { %v611_v26 = vadd.f32 %v610_v25, %v609_v24 }
 0x1c4   :  { %v612_v27 = vrot.slane %v611_v26, 1 }
 0x1c6   :  { %v613_v28 = vadd.f32 %v612_v27, %v611_v26 }
 0x1c8   :  { %653 = vpush %v613_v28 }
 0x1e5   :  { %s650_s13 = spop %649 }
 0x1e6   :  { %s652_s14 = spop %651  ;;  %s291_s15 = smul.f32 0.5, %s650_s13 }
 0x1e7   :  { %s319_s16 = smul.f32 0.5, %s652_s14 }
 0x1e9   :  { %s320_s19 = sadd.f32 %s319_s16, %s291_s15 }
 0x1eb   :  { %s321_s0 = smul.f32 0.5, %s320_s19 }
 0x1ed   :  { %s622_s25 = sadd.f32 %s621_s1, %s321_s0 }
 0x1f9   :  { %s654_s22 = spop %653 }
 0x1fa   :  { %s617_s23 = smul.f32 0.5, %s654_s22 }
 0x1fc   :  { %s618_s24 = ssub.f32 1.0, %s617_s23 }
 0x1fe   :  { %s623_s26 = smul.f32 0.5, %s618_s24 }
 0x200   :  { %s624_s27 = sadd.f32 %s623_s26, %s622_s25 }
 0x202   :  { %626 = sst [smem:[#allocation12]] %s624_s27 }
 0x203   :  { %795 = shalt.err (!%p792_p0)
}
 0x204   :  { %s812_s28 = smov [#allocation12]  }
 0x205   :  { %634 = dma.smem_to_hbm %s812_s28, 16, %s1013_s7, [#allocation5]  }
 0x206   :  { %802 = dma.done.wait [#allocation5], 16  }
 0x207   :  { %803 = vsyncadd [#allocation5], 4294967280 }
 0x208   :  { %638 = sfence }
 0x209   :  { %639 = vsyncpa [#allocation4], 1 }
 0x20a   :  { %640 = vsyncpa [#allocation7], 1 }
 0x20b   :  { %641 = vsyncpa [#allocation10], 1 }
 0x20c   :  { %642 = vsyncpa [#allocation5], 1 }

// kernel: combined_loss.5
= control target key start
LH: loop header
LB: loop body
LE: loop exit
PB: predicated region body
PF: predicated region fallthrough
CT: control target
= control target key end

     0   :  { %8 = vsyncpa [#allocation3], 0  ;;  %s2320_s0 = inlined_call_operand.hbm [shape: bf16[1024,144], index: 0, kind: input, shape index: {}]   ;;  %s2321_s1 = inlined_call_operand.hbm [shape: bf16[144,32], index: 1, kind: input, shape index: {}]   ;;  %s2322_s2 = inlined_call_operand.hbm [shape: f32[1,32], index: 2, kind: input, shape index: {}]   ;;  %s2323_s3 = inlined_call_operand.hbm [shape: f32[1024,32], index: 3, kind: output, shape index: {}]  }
   0x1   :  { %10 = vsyncpa [#allocation3 + $0x1], 0 }
   0x2   :  { %11 = vsyncpa [#allocation6], 0 }
   0x3   :  { %12 = vsyncpa [#allocation4], 0 }
   0x4   :  { %14 = vsyncpa [#allocation4 + $0x1], 0  ;;  %s1786_s12 = smov 0   ;;  %s1788_s13 = smov 0  }
   0x5   :  { %s1790_s14 = smov 0   ;;  %s1792_s15 = smov 0  }
   0x6 LB: > { %s1807_s16 = sadd.s32 4294967295, %s1753_s15   ;;  %s1272_s17 = sadd.s32 4294967294, %s1753_s15   ;;  %s1753_s15 = sphi %s1792_s15, %s2343_s15   ;;  %s1749_s14 = sphi %s1790_s14, %s2342_s14   ;;  %s1745_s13 = sphi %s1788_s13, %s2341_s13   ;;  %s1741_s12 = sphi %s1786_s12, %s2340_s12  }
   0x7   : > { %p40_p0 = scmp.ne.s32.totalorder %s1745_s13, %s1741_s12  ;;  %p2324_p1 = scmp.eq.s32.totalorder %s1807_s16, 0 }
   0x8   : > { %p112_p3 = scmp.eq.s32.totalorder %s1272_s17, 1  ;;  %p1273_p5 = scmp.ge.s32.totalorder %s1753_s15, 1 }
   0x9   : > { %p1816_p4 = por %p2324_p1, %p40_p0  ;;  %p119_p7 = scmp.lt.s32.totalorder %s1753_s15, 3 }
   0xa   : > { %p1821_p6 = por %p112_p3, %p40_p0  ;;  %s1755_s21 = smov [#allocation5]  }
   0xb   : > { %s2327_s18 = scalar_select %p1816_p4, 1, 0 }
   0xc   : > { %s2328_s19 = scalar_select %p1821_p6, 1, 0 }
   0xd   : > { %p1826_p8 = pnand %p1273_p5, %p119_p7  ;;  %s131_s22 = sshll.u32 %s1755_s21, 4  ;;  %s1830_s22 = int_to_ptr.vmem [resolvable:$true] %s131_s22 }
   0xe   : > { %s1756_s24 = smov [#allocation7]   ;;  %s1597_s28 = scalar_lea.hbm %s2321_s1, 1152 }
   0xf   : > { %p1430_p9 = pneg %p1826_p8  ;;  %s145_s25 = sshll.u32 %s1756_s24, 4  ;;  %s1841_s25 = int_to_ptr.vmem [resolvable:$true] %s145_s25 }
  0x10   : > { %p1598_p12 = scmp.ne.s32.totalorder %s2321_s1, %s1597_s28  ;;  %p1604_p5 = scmp.lt.u32.totalorder %s1597_s28, %s2321_s1 }
  0x11   : > { %p1837_p11 = pnand %p1430_p9, %p2324_p1 }
  0x13   : > { %p1599_p13 = pneg %p1837_p11 }
  0x15   : > { %p1600_p0 = pnand %p1599_p13, %p1598_p12 }
  0x17   : > { %p1601_p3 = pneg %p1600_p0 }
  0x19   : > { %p1606_p7 = pnand %p1604_p5, %p1601_p3 }
  0x1b   : > { %1609 = shalt.err (!%p1606_p7)
}
  0x1c   : > { %s1610_s6 = scalar_lea.vmem %s1830_s22, 1152  ;;  %p1618_p2 = scmp.lt.s32.totalorder %s1830_s22, %s1830_s22 }
  0x1d   : > { %p1611_p9 = scmp.ne.s32.totalorder %s1830_s22, %s1610_s6  ;;  %p1619_p12 = scmp.lt.s32.totalorder %s1610_s6, %s1610_s6 }
  0x1f   : > { %p1613_p10 = pnand %p1611_p9, %p1599_p13  ;;  %p1620_p0 = por %p1619_p12, %p1618_p2 }
  0x21   : > { %p1614_p1 = pneg %p1613_p10 }
  0x23   : > { %p1621_p6 = pnand %p1620_p0, %p1614_p1 }
  0x25   : > { %1624 = shalt.err (!%p1621_p6)
}
  0x26   : > { %s1757_s7 = smov 64   ;;  %s1758_s8 = smov 4  }
  0x27   : > { %1433 = dma.hbm_to_vmem [thread:$0]  (!%p1837_p11), %s2321_s1, 1152, %s1830_s22, [#allocation6], %s1757_s7, %s1757_s7, %s1758_s8  }
  0x28   : > { %s1625_s21 = scalar_lea.hbm %s2322_s2, 16 }
  0x29   : > { %p1626_p2 = scmp.ne.s32.totalorder %s2322_s2, %s1625_s21  ;;  %p1632_p10 = scmp.lt.u32.totalorder %s1625_s21, %s2322_s2 }
  0x2b   : > { %p1628_p1 = pnand %p1626_p2, %p1599_p13 }
  0x2d   : > { %p1629_p6 = pneg %p1628_p1 }
  0x2f   : > { %p1634_p3 = pnand %p1632_p10, %p1629_p6 }
  0x31   : > { %1637 = shalt.err (!%p1634_p3)
}
  0x32   : > { %s1638_s22 = scalar_lea.vmem %s1841_s25, 16  ;;  %s1645_s29 = scalar_lea.vmem %s1841_s25, 32 }
  0x33   : > { %p1639_p5 = scmp.ne.s32.totalorder %s1841_s25, %s1638_s22  ;;  %p1646_p12 = scmp.lt.s32.totalorder %s1841_s25, %s1841_s25 }
  0x34   : > { %p1647_p0 = scmp.lt.s32.totalorder %s1645_s29, %s1638_s22 }
  0x35   : > { %p1641_p7 = pnand %p1639_p5, %p1599_p13 }
  0x36   : > { %p1648_p2 = por %p1647_p0, %p1646_p12 }
  0x37   : > { %p1642_p9 = pneg %p1641_p7 }
  0x39   : > { %p1649_p1 = pnand %p1648_p2, %p1642_p9 }
  0x3b   : > { %1652 = shalt.err (!%p1649_p1)
}
  0x3c   : > { %1436 = dma.hbm_to_vmem [thread:$0]  (!%p1837_p11), %s2322_s2, 16, %s1841_s25, [#allocation6]  }
  0x3d   : > { %s1897_s5 = sadd.s32 1, %s1753_s15   ;;  %s27_s23 = sadd.s32 1, %s1749_s14 }
  0x3e   : > { %s24_s6 = ssub.s32 %s1753_s15, %s1897_s5  ;;  %p34_p13 = scmp.ne.s32.totalorder %s1749_s14, %s1745_s13 }
  0x3f   : > { %p25_p6 = scmp.eq.s32.totalorder %s24_s6, 0  ;;  %p35_p10 = scmp.eq.s32.totalorder %s1753_s15, 0 }
  0x40   : > { %p2331_p3 = scmp.eq.s32.totalorder %s1807_s16, 1  ;;  %p1447_p7 = scmp.lt.s32.totalorder %s1753_s15, 2 }
  0x41   : > { %s1913_s8 = scalar_select %p25_p6, %s1749_s14, %s27_s23  }
  0x42   : > { %p1907_p5 = por %p2331_p3, %p34_p13  ;;  %p36_p9 = por %p35_p10, %p34_p13 }
  0x43   : > { %s156_s9 = sand.u32 1, %s1749_s14   ;;  %s1398_s25 = sshll.u32 %s1753_s15, 13 }
  0x44   : > { %s2332_s7 = scalar_select %p1907_p5, 1, 0 }
  0x45   : > { %s1277_s10 = sshll.u32 %s156_s9, 9  ;;  %s1920_s21 = scalar_lea.hbm %s2320_s0, %s1398_s25 }
  0x46   : > { %s160_s24 = scalar_lea.vmem [#allocation2], %s1277_s10  ;;  %p1924_p11 = pnand %p1447_p7, %p36_p9 }
  0x47   : > { %s168_s26 = sshll.u32 %s160_s24, 4  ;;  %s1928_s28 = scalar_lea.sflag [#allocation3], %s156_s9  ;;  %s1922_s26 = int_to_ptr.vmem [resolvable:$true] %s168_s26 }
  0x48   : > { %s1653_s22 = scalar_lea.hbm %s1920_s21, 8192  ;;  %p1655_p0 = pneg %p1924_p11 }
  0x49   : > { %p1654_p12 = scmp.ne.s32.totalorder %s1920_s21, %s1653_s22  ;;  %s1658_s4 = scalar_lea.hbm %s2320_s0, 16384 }
  0x4a   : > { %p1659_p13 = scmp.lt.u32.totalorder %s1920_s21, %s2320_s0  ;;  %p1660_p6 = scmp.lt.u32.totalorder %s1658_s4, %s1653_s22 }
  0x4b   : > { %p1656_p2 = pnand %p1655_p0, %p1654_p12  ;;  %p1662_p3 = scmp.lt.u32.totalorder %s1653_s22, %s1920_s21 }
  0x4c   : > { %p1661_p10 = por %p1660_p6, %p1659_p13 }
  0x4d   : > { %p1657_p1 = pneg %p1656_p2 }
  0x4e   : > { %p1663_p7 = por %p1662_p3, %p1661_p10 }
  0x50   : > { %p1664_p9 = pnand %p1663_p7, %p1657_p1 }
  0x52   : > { %1667 = shalt.err (!%p1664_p9)
}
  0x53   : > { %s1668_s9 = scalar_lea.vmem %s1922_s26, 8192  ;;  %s1759_s10 = smov [#allocation2]  }
  0x54   : > { %p1669_p12 = scmp.ne.s32.totalorder %s1922_s26, %s1668_s9  ;;  %s1673_s25 = sshll.u32 %s1759_s10, 4  ;;  %s1674_s25 = int_to_ptr.vmem [resolvable:$false] %s1673_s25 }
  0x55   : > { %s1675_s11 = scalar_lea.vmem %s1674_s25, 16384  ;;  %p1676_p4 = scmp.lt.s32.totalorder %s1922_s26, %s1674_s25 }
  0x56   : > { %p1671_p2 = pnand %p1669_p12, %p1655_p0  ;;  %p1677_p13 = scmp.lt.s32.totalorder %s1675_s11, %s1668_s9 }
  0x58   : > { %p1672_p5 = pneg %p1671_p2  ;;  %p1678_p6 = por %p1677_p13, %p1676_p4 }
  0x5a   : > { %p1679_p10 = pnand %p1678_p6, %p1672_p5 }
  0x5c   : > { %1682 = shalt.err (!%p1679_p10)
}
  0x5d   : > { %s1760_s17 = smov 128   ;;  %s1761_s24 = smov 8  }
  0x5e   : > { %1440 = dma.hbm_to_vmem [thread:$0]  (!%p1924_p11), %s1920_s21, 8192, %s1922_s26, %s1928_s28, %s1760_s17, %s1760_s17, %s1761_s24  }
  0x5f   : > { %180 = sbr.rel (%p1826_p8) target bundleno = 496 (0x1f0), region = 32  ;;  %s1959_s22 = sand.u32 (!%p1826_p8), 1, %s1745_s13  }
  0x60   : > { %s1282_s29 = sshll.u32 (!%p1826_p8), %s1959_s22, 9  ;;  %s183_s30 = scalar_lea.sflag (!%p1826_p8), [#allocation3], %s1959_s22 }
  0x61   : > { %s1965_s4 = scalar_lea.vmem (!%p1826_p8), [#allocation2], %s1282_s29  ;;  %p2334_p4 = scmp.ne.s32.totalorder (!%p1826_p8), %s2327_s18, 0 }
  0x66   : > { %1728 = dma.done.wait (%p2334_p4), %s183_s30, 8192  }
  0x67   : > { %1730 = vsyncadd (%p2334_p4), %s183_s30, 4294959104  ;;  %p2335_p5 = scmp.eq.s32.totalorder %s1807_s16, 0 }
  0x69   : > { %1732 = dma.done.wait (%p2335_p5), [#allocation6], 1168   ;;  %p2336_p8 = pmov %p2335_p5 }
  0x6a   : > { %v1762_v0 = vmov 0   ;;  %v1492_v1 = vld [vmem:[#allocation5] sm:$0xff]   ;;  %v1493_v2 = vld [vmem:[#allocation5 + $0x8] sm:$0xff]   ;;  %v1494_v3 = vld [vmem:[#allocation5 + $0x10] sm:$0xff]   ;;  %vm651_vm0 = vcmask 130048   ;;  %vm1101_vm1 = vcmask 261120  }
  0x6b   : > { %1734 = vsyncadd (%p2336_p8), [#allocation6], 4294966128  ;;  %748 = vmatprep.subr.bf16.mxu0 %v1762_v0  ;;  %1400 = vmatprep.subr.bf16.mxu1 %v1762_v0  ;;  %v1495_v4 = vld [vmem:[#allocation5 + $0x18] sm:$0xff]   ;;  %v1503_v5 = vld [vmem:[%s1965_s4 + $0x4] ss:$8 sps:$4 sm:$0xff]   ;;  %s2079_s18 = scalar_lea.vmem [#allocation8], %s1282_s29 }
  0x6c   : > { %749 = vmatpush1.bf16.msra.mxu0 %v1492_v1  ;;  %1409 = vmatpush1.bf16.msra.mxu1 %v1492_v1  ;;  %v1506_v6 = vld [vmem:[%s1965_s4 + $0x104] ss:$8 sps:$4 sm:$0xff]   ;;  %v1498_v9 = vld [vmem:[#allocation5 + $0x30] sm:$0xff]   ;;  %v1499_v10 = vld [vmem:[#allocation5 + $0x38] sm:$0xff]   ;;  %s1399_s20 = sshll.u32 %s1807_s16, 13  ;;  %s1180_s21 = sshll.u32 %s2079_s18, 4  ;;  %s2268_s21 = int_to_ptr.vmem [resolvable:$true] %s1180_s21 }
  0x6d   : > { %750 = vmatprep.subr.bf16.mxu0 %v1762_v0  ;;  %1401 = vmatprep.subr.bf16.mxu1 %v1762_v0  ;;  %v1496_v7 = vld [vmem:[#allocation5 + $0x20] sm:$0xff]   ;;  %v1497_v8 = vld [vmem:[#allocation5 + $0x28] sm:$0xff]   ;;  %v1507_v14 = vld [vmem:[%s1965_s4 + $0x14] ss:$8 sps:$4 sm:$0xff]   ;;  %s2266_s28 = scalar_lea.hbm %s2323_s3, %s1399_s20  ;;  %s1167_s16 = scalar_lea.sflag [#allocation4], %s1959_s22 }
  0x6e   : > { %1360 = vmatprep.mubr.msk.bf16.mxu0 %vm651_vm0, %v1503_v5  ;;  %1376 = vmatprep.mubr.msk.bf16.mxu1 %vm651_vm0, %v1506_v6  ;;  %v1500_v11 = vld [vmem:[#allocation5 + $0x40] sm:$0xff]   ;;  %v1509_v15 = vld [vmem:[%s1965_s4 + $0x114] ss:$8 sps:$4 sm:$0xff]   ;;  %v1511_v16 = vld [vmem:[%s1965_s4 + $0x10] ss:$8 sps:$4 sm:$0xff]   ;;  %s1683_s23 = scalar_lea.vmem %s2268_s21, 8192 }
  0x6f   : > { %v1501_v12 = vld [vmem:[%s1965_s4] ss:$8 sps:$4 sm:$0xff]   ;;  %v1512_v17 = vld [vmem:[%s1965_s4 + $0x110] ss:$8 sps:$4 sm:$0xff]   ;;  %v1513_v18 = vld [vmem:[%s1965_s4 + $0x24] ss:$8 sps:$4 sm:$0xff]   ;;  %p1684_p11 = scmp.ne.s32.totalorder %s2268_s21, %s1683_s23 }
  0x70   : > { %751 = vmatpush1.bf16.msra.mxu0 %v1493_v2  ;;  %1410 = vmatpush1.bf16.msra.mxu1 %v1493_v2  ;;  %v1504_v13 = vld [vmem:[%s1965_s4 + $0x100] ss:$8 sps:$4 sm:$0xff]   ;;  %v1515_v19 = vld [vmem:[%s1965_s4 + $0x124] ss:$8 sps:$4 sm:$0xff]   ;;  %v1519_v22 = vld [vmem:[%s1965_s4 + $0x34] ss:$8 sps:$4 sm:$0xff]  }
  0x71   : > { %752 = vmatprep.subr.bf16.mxu0 %v1762_v0  ;;  %1402 = vmatprep.subr.bf16.mxu1 %v1762_v0  ;;  %v1517_v20 = vld [vmem:[%s1965_s4 + $0x20] ss:$8 sps:$4 sm:$0xff]   ;;  %v1521_v23 = vld [vmem:[%s1965_s4 + $0x134] ss:$8 sps:$4 sm:$0xff]   ;;  %v1523_v24 = vld [vmem:[%s1965_s4 + $0x30] ss:$8 sps:$4 sm:$0xff]  }
  0x72   : > { %v1518_v21 = vld [vmem:[%s1965_s4 + $0x120] ss:$8 sps:$4 sm:$0xff]   ;;  %v1524_v25 = vld [vmem:[%s1965_s4 + $0x130] ss:$8 sps:$4 sm:$0xff]   ;;  %v1525_v26 = vld [vmem:[%s1965_s4 + $0x44] ss:$8 sps:$4 sm:$0xff]  }
  0x73   : > { %v1527_v27 = vld [vmem:[%s1965_s4 + $0x144] ss:$8 sps:$4 sm:$0xff]   ;;  %v1529_v28 = vld [vmem:[%s1965_s4 + $0x40] ss:$8 sps:$4 sm:$0xff]   ;;  %v1531_v30 = vld [vmem:[%s1965_s4 + $0x54] ss:$8 sps:$4 sm:$0xff]  }
  0x74   : > { %753 = vmatpush1.bf16.msra.mxu0 %v1494_v3  ;;  %1411 = vmatpush1.bf16.msra.mxu1 %v1494_v3  ;;  %v1530_v29 = vld [vmem:[%s1965_s4 + $0x140] ss:$8 sps:$4 sm:$0xff]   ;;  %v1533_v31 = vld [vmem:[%s1965_s4 + $0x154] ss:$8 sps:$4 sm:$0xff]   ;;  %v1535_v32 = vld [vmem:[%s1965_s4 + $0x50] ss:$8 sps:$4 sm:$0xff]  }
  0x75   : > { %754 = vmatprep.subr.bf16.mxu0 %v1762_v0  ;;  %1403 = vmatprep.subr.bf16.mxu1 %v1762_v0  ;;  %v1536_v33 = vld [vmem:[%s1965_s4 + $0x150] ss:$8 sps:$4 sm:$0xff]   ;;  %v1537_v34 = vld [vmem:[%s1965_s4 + $0x64] ss:$8 sps:$4 sm:$0xff]   ;;  %v1541_v36 = vld [vmem:[%s1965_s4 + $0x60] ss:$8 sps:$4 sm:$0xff]  }
  0x76   : > { %v1539_v35 = vld [vmem:[%s1965_s4 + $0x164] ss:$8 sps:$4 sm:$0xff]   ;;  %v1542_v37 = vld [vmem:[%s1965_s4 + $0x160] ss:$8 sps:$4 sm:$0xff]   ;;  %v1543_v38 = vld [vmem:[%s1965_s4 + $0x74] ss:$8 sps:$4 sm:$0xff]  }
  0x77   : > { %v1545_v39 = vld [vmem:[%s1965_s4 + $0x174] ss:$8 sps:$4 sm:$0xff]   ;;  %v1547_v40 = vld [vmem:[%s1965_s4 + $0x70] ss:$8 sps:$4 sm:$0xff]   ;;  %v1549_v42 = vld [vmem:[%s1965_s4 + $0x84] ss:$8 sps:$4 sm:$0xff]  }
  0x78   : > { %755 = vmatpush1.bf16.msra.mxu0 %v1495_v4  ;;  %1412 = vmatpush1.bf16.msra.mxu1 %v1495_v4  ;;  %v1548_v41 = vld [vmem:[%s1965_s4 + $0x170] ss:$8 sps:$4 sm:$0xff]   ;;  %v1551_v43 = vld [vmem:[%s1965_s4 + $0x184] ss:$8 sps:$4 sm:$0xff]   ;;  %v1553_v44 = vld [vmem:[%s1965_s4 + $0x80] ss:$8 sps:$4 sm:$0xff]  }
  0x79   : > { %756 = vmatprep.subr.bf16.mxu0 %v1762_v0  ;;  %1404 = vmatprep.subr.bf16.mxu1 %v1762_v0  ;;  %v1554_v45 = vld [vmem:[%s1965_s4 + $0x180] ss:$8 sps:$4 sm:$0xff]   ;;  %v1555_v46 = vld [vmem:[%s1965_s4 + $0x94] ss:$8 sps:$4 sm:$0xff]   ;;  %v1559_v48 = vld [vmem:[%s1965_s4 + $0x90] ss:$8 sps:$4 sm:$0xff]  }
  0x7a   : > { %v1557_v47 = vld [vmem:[%s1965_s4 + $0x194] ss:$8 sps:$4 sm:$0xff]   ;;  %v1560_v49 = vld [vmem:[%s1965_s4 + $0x190] ss:$8 sps:$4 sm:$0xff]   ;;  %v1561_v50 = vld [vmem:[%s1965_s4 + $0xa4] ss:$8 sps:$4 sm:$0xff]  }
  0x7b   : > { %v1563_v51 = vld [vmem:[%s1965_s4 + $0x1a4] ss:$8 sps:$4 sm:$0xff]   ;;  %v1565_v52 = vld [vmem:[%s1965_s4 + $0xa0] ss:$8 sps:$4 sm:$0xff]   ;;  %v1567_v54 = vld [vmem:[%s1965_s4 + $0xb4] ss:$8 sps:$4 sm:$0xff]  }
  0x7c   : > { %757 = vmatpush1.bf16.msra.mxu0 %v1496_v7  ;;  %1413 = vmatpush1.bf16.msra.mxu1 %v1496_v7  ;;  %v1566_v53 = vld [vmem:[%s1965_s4 + $0x1a0] ss:$8 sps:$4 sm:$0xff]   ;;  %v1569_v55 = vld [vmem:[%s1965_s4 + $0x1b4] ss:$8 sps:$4 sm:$0xff]   ;;  %v1571_v56 = vld [vmem:[%s1965_s4 + $0xb0] ss:$8 sps:$4 sm:$0xff]  }
  0x7d   : > { %758 = vmatprep.subr.bf16.mxu0 %v1762_v0  ;;  %1405 = vmatprep.subr.bf16.mxu1 %v1762_v0  ;;  %v1572_v57 = vld [vmem:[%s1965_s4 + $0x1b0] ss:$8 sps:$4 sm:$0xff]   ;;  %v1573_v58 = vld [vmem:[%s1965_s4 + $0xc4] ss:$8 sps:$4 sm:$0xff]   ;;  %v1577_v60 = vld [vmem:[%s1965_s4 + $0xc0] ss:$8 sps:$4 sm:$0xff]  }
  0x7e   : > { %v1575_v59 = vld [vmem:[%s1965_s4 + $0x1c4] ss:$8 sps:$4 sm:$0xff]   ;;  %v1578_v61 = vld [vmem:[%s1965_s4 + $0x1c0] ss:$8 sps:$4 sm:$0xff]   ;;  %v1579_v62 = vld [vmem:[%s1965_s4 + $0xd4] ss:$8 sps:$4 sm:$0xff]  }
  0x7f   : > { %v1581_v63 = vld [vmem:[%s1965_s4 + $0x1d4] ss:$8 sps:$4 sm:$0xff]   ;;  %v1584_v1 = vld [vmem:[%s1965_s4 + $0x1d0] ss:$8 sps:$4 sm:$0xff]   ;;  %v1585_v2 = vld [vmem:[%s1965_s4 + $0xe4] ss:$8 sps:$4 sm:$0xff]  }
  0x80   : > { %759 = vmatpush1.bf16.msra.mxu0 %v1497_v8  ;;  %1414 = vmatpush1.bf16.msra.mxu1 %v1497_v8  ;;  %v1587_v3 = vld [vmem:[%s1965_s4 + $0x1e4] ss:$8 sps:$4 sm:$0xff]   ;;  %v1589_v4 = vld [vmem:[%s1965_s4 + $0xe0] ss:$8 sps:$4 sm:$0xff]   ;;  %v1591_v6 = vld [vmem:[%s1965_s4 + $0xf4] ss:$8 sps:$4 sm:$0xff]  }
  0x81   : > { %760 = vmatprep.subr.bf16.mxu0 %v1762_v0  ;;  %1406 = vmatprep.subr.bf16.mxu1 %v1762_v0  ;;  %v1590_v5 = vld [vmem:[%s1965_s4 + $0x1e0] ss:$8 sps:$4 sm:$0xff]   ;;  %v1593_v7 = vld [vmem:[%s1965_s4 + $0x1f4] ss:$8 sps:$4 sm:$0xff]   ;;  %v1595_v8 = vld [vmem:[%s1965_s4 + $0xf0] ss:$8 sps:$4 sm:$0xff]  }
  0x82   : > { %p2337_p0 = scmp.ne.s32.totalorder %s2332_s7, 0  ;;  %s1763_s6 = smov [#allocation8]  }
  0x83   : > { %s1687_s9 = sshll.u32 %s1763_s6, 4  ;;  %s1688_s9 = int_to_ptr.vmem [resolvable:$false] %s1687_s9 }
  0x84   : > { %761 = vmatpush1.bf16.msra.mxu0 %v1498_v9  ;;  %1415 = vmatpush1.bf16.msra.mxu1 %v1498_v9  ;;  %v1596_v9 = vld [vmem:[%s1965_s4 + $0x1f0] ss:$8 sps:$4 sm:$0xff]   ;;  %p1685_p1 = pnand %p1684_p11, %p2337_p0  ;;  %s1689_s10 = scalar_lea.vmem %s1688_s9, 16384 }
  0x85   : > { %762 = vmatprep.subr.bf16.mxu0 %v1762_v0  ;;  %1407 = vmatprep.subr.bf16.mxu1 %v1762_v0  ;;  %p1690_p7 = scmp.lt.s32.totalorder %s2268_s21, %s1688_s9  ;;  %p1691_p9 = scmp.lt.s32.totalorder %s1689_s10, %s1683_s23 }
  0x86   : > { %p1686_p3 = pneg %p1685_p1 }
  0x87   : > { %p1692_p12 = por %p1691_p9, %p1690_p7 }
  0x88   : > { %763 = vmatpush1.bf16.msra.mxu0 %v1499_v10  ;;  %1416 = vmatpush1.bf16.msra.mxu1 %v1499_v10  ;;  %v2071_v10 = vld [vmem:[#allocation7] ss:$0 sm:$0xff] }
  0x89   : > { %764 = vmatprep.subr.bf16.mxu0 %v1762_v0  ;;  %1408 = vmatprep.subr.bf16.mxu1 %v1762_v0  ;;  %v1583_v0 = vld [vmem:[%s1965_s4 + $0xd0] ss:$8 sps:$4 sm:$0xff]   ;;  %p1693_p2 = pnand %p1692_p12, %p1686_p3 }
  0x8c   : > { %765 = vmatpush1.bf16.msra.mxu0 %v1500_v11  ;;  %1417 = vmatpush1.bf16.msra.mxu1 %v1500_v11 }
  0x8f   : > { %781 = vmatmul.mubr.bf16.vlgmr.msra.gmra.mrb[0].mxu0 %v1501_v12  ;;  %909 = vmatmul.mubr.bf16.vlgmr.msra.gmra.mrb[0].mxu1 %v1504_v13 }
  0x90   : > { %1361 = vmatprep.mubr.msk.bf16.mxu0 %vm651_vm0, %v1507_v14  ;;  %1377 = vmatprep.mubr.msk.bf16.mxu1 %vm651_vm0, %v1509_v15 }
  0x97   : > { %789 = vmatmul.mubr.bf16.gmra.mrb[4].mxu0 %v1511_v16  ;;  %917 = vmatmul.mubr.bf16.gmra.mrb[4].mxu1 %v1512_v17 }
  0x98   : > { %1362 = vmatprep.mubr.msk.bf16.mxu0 %vm651_vm0, %v1513_v18  ;;  %1378 = vmatprep.mubr.msk.bf16.mxu1 %vm651_vm0, %v1515_v19 }
  0x9f   : > { %797 = vmatmul.mubr.bf16.gmra.mrb[8].mxu0 %v1517_v20  ;;  %925 = vmatmul.mubr.bf16.gmra.mrb[8].mxu1 %v1518_v21 }
  0xa0   : > { %1363 = vmatprep.mubr.msk.bf16.mxu0 %vm651_vm0, %v1519_v22  ;;  %1379 = vmatprep.mubr.msk.bf16.mxu1 %vm651_vm0, %v1521_v23 }
  0xa7   : > { %805 = vmatmul.mubr.bf16.gmra.mrb[12].mxu0 %v1523_v24  ;;  %933 = vmatmul.mubr.bf16.gmra.mrb[12].mxu1 %v1524_v25 }
  0xa8   : > { %1364 = vmatprep.mubr.msk.bf16.mxu0 %vm651_vm0, %v1525_v26  ;;  %1380 = vmatprep.mubr.msk.bf16.mxu1 %vm651_vm0, %v1527_v27 }
  0xaf   : > { %813 = vmatmul.mubr.bf16.gmra.mrb[16].mxu0 %v1529_v28  ;;  %941 = vmatmul.mubr.bf16.gmra.mrb[16].mxu1 %v1530_v29 }
  0xb0   : > { %1365 = vmatprep.mubr.msk.bf16.mxu0 %vm651_vm0, %v1531_v30  ;;  %1381 = vmatprep.mubr.msk.bf16.mxu1 %vm651_vm0, %v1533_v31 }
  0xb7   : > { %821 = vmatmul.mubr.bf16.gmra.mrb[20].mxu0 %v1535_v32  ;;  %949 = vmatmul.mubr.bf16.gmra.mrb[20].mxu1 %v1536_v33 }
  0xb8   : > { %1366 = vmatprep.mubr.msk.bf16.mxu0 %vm651_vm0, %v1537_v34  ;;  %1382 = vmatprep.mubr.msk.bf16.mxu1 %vm651_vm0, %v1539_v35 }
  0xbf   : > { %829 = vmatmul.mubr.bf16.gmra.mrb[24].mxu0 %v1541_v36  ;;  %957 = vmatmul.mubr.bf16.gmra.mrb[24].mxu1 %v1542_v37 }
  0xc0   : > { %1367 = vmatprep.mubr.msk.bf16.mxu0 %vm651_vm0, %v1543_v38  ;;  %1383 = vmatprep.mubr.msk.bf16.mxu1 %vm651_vm0, %v1545_v39 }
  0xc7   : > { %837 = vmatmul.mubr.bf16.gmra.mrb[28].mxu0 %v1547_v40  ;;  %965 = vmatmul.mubr.bf16.gmra.mrb[28].mxu1 %v1548_v41 }
  0xc8   : > { %1368 = vmatprep.mubr.msk.bf16.mxu0 %vm651_vm0, %v1549_v42  ;;  %1384 = vmatprep.mubr.msk.bf16.mxu1 %vm651_vm0, %v1551_v43 }
  0xcf   : > { %845 = vmatmul.mubr.bf16.gmra.mrb[32].mxu0 %v1553_v44  ;;  %973 = vmatmul.mubr.bf16.gmra.mrb[32].mxu1 %v1554_v45 }
  0xd0   : > { %1369 = vmatprep.mubr.msk.bf16.mxu0 %vm651_vm0, %v1555_v46  ;;  %1385 = vmatprep.mubr.msk.bf16.mxu1 %vm651_vm0, %v1557_v47 }
  0xd7   : > { %853 = vmatmul.mubr.bf16.gmra.mrb[36].mxu0 %v1559_v48  ;;  %981 = vmatmul.mubr.bf16.gmra.mrb[36].mxu1 %v1560_v49 }
  0xd8   : > { %1370 = vmatprep.mubr.msk.bf16.mxu0 %vm651_vm0, %v1561_v50  ;;  %1386 = vmatprep.mubr.msk.bf16.mxu1 %vm651_vm0, %v1563_v51 }
  0xdf   : > { %861 = vmatmul.mubr.bf16.gmra.mrb[40].mxu0 %v1565_v52  ;;  %989 = vmatmul.mubr.bf16.gmra.mrb[40].mxu1 %v1566_v53 }
  0xe0   : > { %1371 = vmatprep.mubr.msk.bf16.mxu0 %vm651_vm0, %v1567_v54  ;;  %1387 = vmatprep.mubr.msk.bf16.mxu1 %vm651_vm0, %v1569_v55 }
  0xe7   : > { %869 = vmatmul.mubr.bf16.gmra.mrb[44].mxu0 %v1571_v56  ;;  %997 = vmatmul.mubr.bf16.gmra.mrb[44].mxu1 %v1572_v57 }
  0xe8   : > { %1372 = vmatprep.mubr.msk.bf16.mxu0 %vm651_vm0, %v1573_v58  ;;  %1388 = vmatprep.mubr.msk.bf16.mxu1 %vm651_vm0, %v1575_v59 }
  0xef   : > { %877 = vmatmul.mubr.bf16.gmra.mrb[48].mxu0 %v1577_v60  ;;  %1005 = vmatmul.mubr.bf16.gmra.mrb[48].mxu1 %v1578_v61 }
  0xf0   : > { %1373 = vmatprep.mubr.msk.bf16.mxu0 %vm651_vm0, %v1579_v62  ;;  %1389 = vmatprep.mubr.msk.bf16.mxu1 %vm651_vm0, %v1581_v63 }
  0xf7   : > { %885 = vmatmul.mubr.bf16.gmra.mrb[52].mxu0 %v1583_v0  ;;  %1013 = vmatmul.mubr.bf16.gmra.mrb[52].mxu1 %v1584_v1 }
  0xf8   : > { %1374 = vmatprep.mubr.msk.bf16.mxu0 %vm651_vm0, %v1585_v2  ;;  %1390 = vmatprep.mubr.msk.bf16.mxu1 %vm651_vm0, %v1587_v3 }
  0xff   : > { %893 = vmatmul.mubr.bf16.gmra.mrb[56].mxu0 %v1589_v4  ;;  %1021 = vmatmul.mubr.bf16.gmra.mrb[56].mxu1 %v1590_v5 }
 0x100   : > { %1375 = vmatprep.mubr.msk.bf16.mxu0 %vm651_vm0, %v1591_v6  ;;  %1391 = vmatprep.mubr.msk.bf16.mxu1 %vm651_vm0, %v1593_v7 }
 0x107   : > { %901 = vmatmul.mubr.bf16.gmra.mrb[60].mxu0 %v1595_v8  ;;  %1029 = vmatmul.mubr.bf16.gmra.mrb[60].mxu1 %v1596_v9 }
 0x162   : > { %v782_v11 = vpop.f32.mrb[0].mxu0  ;;  %v910_v12 = vpop.f32.mrb[0].mxu1 }
 0x163   : > { %v783_v13 = vadd.f32 %v2071_v10, %v782_v11  ;;  %v911_v14 = vadd.f32 %v2071_v10, %v910_v12  ;;  %v784_v15 = vpop.f32.mrb[1].mxu0  ;;  %v912_v16 = vpop.f32.mrb[1].mxu1 }
 0x164   : > { %v785_v17 = vpop.f32.mrb[2].mxu0  ;;  %v913_v18 = vpop.f32.mrb[2].mxu1 }
 0x165   : > { %v1037_v19 = vmax.f32 %v783_v13, 0.0  ;;  %v1069_v20 = vmax.f32 %v911_v14, 0.0  ;;  %v786_v21 = vadd.f32 %v2071_v10, %v785_v17  ;;  %v914_v22 = vadd.f32 %v2071_v10, %v913_v18  ;;  %v787_v23 = vpop.f32.mrb[3].mxu0  ;;  %v915_v24 = vpop.f32.mrb[3].mxu1 }
 0x167   : > { %1102 = vst.msk [vmem:[%s2079_s18] sm:$0xff] %vm1101_vm1, %v1037_v19  ;;  %1134 = vst.msk [vmem:[%s2079_s18 + $0x100] sm:$0xff] %vm1101_vm1, %v1069_v20  ;;  %v1038_v25 = vmax.f32 %v786_v21, 0.0  ;;  %v1070_v26 = vmax.f32 %v914_v22, 0.0 }
 0x169   : > { %1103 = vst.msk [vmem:[%s2079_s18 + $0x8] sm:$0xff] %vm1101_vm1, %v1038_v25  ;;  %1135 = vst.msk [vmem:[%s2079_s18 + $0x108] sm:$0xff] %vm1101_vm1, %v1070_v26 }
 0x16a   : > { %v790_v27 = vpop.f32.mrb[4].mxu0  ;;  %v918_v28 = vpop.f32.mrb[4].mxu1 }
 0x16b   : > { %v791_v29 = vadd.f32 %v2071_v10, %v790_v27  ;;  %v919_v30 = vadd.f32 %v2071_v10, %v918_v28  ;;  %v792_v31 = vpop.f32.mrb[5].mxu0  ;;  %v920_v32 = vpop.f32.mrb[5].mxu1 }
 0x16c   : > { %v793_v33 = vpop.f32.mrb[6].mxu0  ;;  %v921_v34 = vpop.f32.mrb[6].mxu1 }
 0x16d   : > { %v1039_v35 = vmax.f32 %v791_v29, 0.0  ;;  %v1071_v36 = vmax.f32 %v919_v30, 0.0  ;;  %v794_v37 = vadd.f32 %v2071_v10, %v793_v33  ;;  %v922_v38 = vadd.f32 %v2071_v10, %v921_v34  ;;  %v795_v39 = vpop.f32.mrb[7].mxu0  ;;  %v923_v40 = vpop.f32.mrb[7].mxu1 }
 0x16f   : > { %1104 = vst.msk [vmem:[%s2079_s18 + $0x10] sm:$0xff] %vm1101_vm1, %v1039_v35  ;;  %1136 = vst.msk [vmem:[%s2079_s18 + $0x110] sm:$0xff] %vm1101_vm1, %v1071_v36  ;;  %v1040_v41 = vmax.f32 %v794_v37, 0.0  ;;  %v1072_v42 = vmax.f32 %v922_v38, 0.0 }
 0x171   : > { %1105 = vst.msk [vmem:[%s2079_s18 + $0x18] sm:$0xff] %vm1101_vm1, %v1040_v41  ;;  %1137 = vst.msk [vmem:[%s2079_s18 + $0x118] sm:$0xff] %vm1101_vm1, %v1072_v42 }
 0x172   : > { %v798_v43 = vpop.f32.mrb[8].mxu0  ;;  %v926_v44 = vpop.f32.mrb[8].mxu1 }
 0x173   : > { %v799_v45 = vadd.f32 %v2071_v10, %v798_v43  ;;  %v927_v46 = vadd.f32 %v2071_v10, %v926_v44  ;;  %v800_v47 = vpop.f32.mrb[9].mxu0  ;;  %v928_v48 = vpop.f32.mrb[9].mxu1 }
 0x174   : > { %v801_v49 = vpop.f32.mrb[10].mxu0  ;;  %v929_v50 = vpop.f32.mrb[10].mxu1 }
 0x175   : > { %v1041_v51 = vmax.f32 %v799_v45, 0.0  ;;  %v1073_v52 = vmax.f32 %v927_v46, 0.0  ;;  %v802_v53 = vadd.f32 %v2071_v10, %v801_v49  ;;  %v930_v54 = vadd.f32 %v2071_v10, %v929_v50  ;;  %v803_v55 = vpop.f32.mrb[11].mxu0  ;;  %v931_v56 = vpop.f32.mrb[11].mxu1 }
 0x177   : > { %1106 = vst.msk [vmem:[%s2079_s18 + $0x20] sm:$0xff] %vm1101_vm1, %v1041_v51  ;;  %1138 = vst.msk [vmem:[%s2079_s18 + $0x120] sm:$0xff] %vm1101_vm1, %v1073_v52  ;;  %v1042_v57 = vmax.f32 %v802_v53, 0.0  ;;  %v1074_v58 = vmax.f32 %v930_v54, 0.0 }
 0x179   : > { %1107 = vst.msk [vmem:[%s2079_s18 + $0x28] sm:$0xff] %vm1101_vm1, %v1042_v57  ;;  %1139 = vst.msk [vmem:[%s2079_s18 + $0x128] sm:$0xff] %vm1101_vm1, %v1074_v58 }
 0x17a   : > { %v806_v59 = vpop.f32.mrb[12].mxu0  ;;  %v934_v60 = vpop.f32.mrb[12].mxu1 }
 0x17b   : > { %v807_v61 = vadd.f32 %v2071_v10, %v806_v59  ;;  %v935_v62 = vadd.f32 %v2071_v10, %v934_v60  ;;  %v808_v63 = vpop.f32.mrb[13].mxu0  ;;  %v936_v0 = vpop.f32.mrb[13].mxu1 }
 0x17c   : > { %v809_v1 = vpop.f32.mrb[14].mxu0  ;;  %v937_v2 = vpop.f32.mrb[14].mxu1 }
 0x17d   : > { %v1043_v3 = vmax.f32 %v807_v61, 0.0  ;;  %v1075_v4 = vmax.f32 %v935_v62, 0.0  ;;  %v810_v5 = vadd.f32 %v2071_v10, %v809_v1  ;;  %v938_v6 = vadd.f32 %v2071_v10, %v937_v2  ;;  %v811_v7 = vpop.f32.mrb[15].mxu0  ;;  %v939_v8 = vpop.f32.mrb[15].mxu1 }
 0x17f   : > { %1108 = vst.msk [vmem:[%s2079_s18 + $0x30] sm:$0xff] %vm1101_vm1, %v1043_v3  ;;  %1140 = vst.msk [vmem:[%s2079_s18 + $0x130] sm:$0xff] %vm1101_vm1, %v1075_v4  ;;  %v1044_v9 = vmax.f32 %v810_v5, 0.0  ;;  %v1076_v11 = vmax.f32 %v938_v6, 0.0 }
 0x181   : > { %1109 = vst.msk [vmem:[%s2079_s18 + $0x38] sm:$0xff] %vm1101_vm1, %v1044_v9  ;;  %1141 = vst.msk [vmem:[%s2079_s18 + $0x138] sm:$0xff] %vm1101_vm1, %v1076_v11 }
 0x182   : > { %v814_v12 = vpop.f32.mrb[16].mxu0  ;;  %v942_v13 = vpop.f32.mrb[16].mxu1 }
 0x183   : > { %v815_v14 = vadd.f32 %v2071_v10, %v814_v12  ;;  %v943_v15 = vadd.f32 %v2071_v10, %v942_v13  ;;  %v816_v16 = vpop.f32.mrb[17].mxu0  ;;  %v944_v17 = vpop.f32.mrb[17].mxu1 }
 0x184   : > { %v817_v18 = vpop.f32.mrb[18].mxu0  ;;  %v945_v19 = vpop.f32.mrb[18].mxu1 }
 0x185   : > { %v1045_v20 = vmax.f32 %v815_v14, 0.0  ;;  %v1077_v21 = vmax.f32 %v943_v15, 0.0  ;;  %v818_v22 = vadd.f32 %v2071_v10, %v817_v18  ;;  %v946_v23 = vadd.f32 %v2071_v10, %v945_v19  ;;  %v819_v24 = vpop.f32.mrb[19].mxu0  ;;  %v947_v25 = vpop.f32.mrb[19].mxu1 }
 0x187   : > { %1110 = vst.msk [vmem:[%s2079_s18 + $0x40] sm:$0xff] %vm1101_vm1, %v1045_v20  ;;  %1142 = vst.msk [vmem:[%s2079_s18 + $0x140] sm:$0xff] %vm1101_vm1, %v1077_v21  ;;  %v1046_v26 = vmax.f32 %v818_v22, 0.0  ;;  %v1078_v27 = vmax.f32 %v946_v23, 0.0 }
 0x189   : > { %1111 = vst.msk [vmem:[%s2079_s18 + $0x48] sm:$0xff] %vm1101_vm1, %v1046_v26  ;;  %1143 = vst.msk [vmem:[%s2079_s18 + $0x148] sm:$0xff] %vm1101_vm1, %v1078_v27 }
 0x18a   : > { %v822_v28 = vpop.f32.mrb[20].mxu0  ;;  %v950_v29 = vpop.f32.mrb[20].mxu1 }
 0x18b   : > { %v823_v30 = vadd.f32 %v2071_v10, %v822_v28  ;;  %v951_v31 = vadd.f32 %v2071_v10, %v950_v29  ;;  %v824_v32 = vpop.f32.mrb[21].mxu0  ;;  %v952_v33 = vpop.f32.mrb[21].mxu1 }
 0x18c   : > { %v825_v34 = vpop.f32.mrb[22].mxu0  ;;  %v953_v35 = vpop.f32.mrb[22].mxu1 }
 0x18d   : > { %v1047_v36 = vmax.f32 %v823_v30, 0.0  ;;  %v1079_v37 = vmax.f32 %v951_v31, 0.0  ;;  %v826_v38 = vadd.f32 %v2071_v10, %v825_v34  ;;  %v954_v39 = vadd.f32 %v2071_v10, %v953_v35  ;;  %v827_v40 = vpop.f32.mrb[23].mxu0  ;;  %v955_v41 = vpop.f32.mrb[23].mxu1 }
 0x18f   : > { %1112 = vst.msk [vmem:[%s2079_s18 + $0x50] sm:$0xff] %vm1101_vm1, %v1047_v36  ;;  %1144 = vst.msk [vmem:[%s2079_s18 + $0x150] sm:$0xff] %vm1101_vm1, %v1079_v37  ;;  %v1048_v42 = vmax.f32 %v826_v38, 0.0  ;;  %v1080_v43 = vmax.f32 %v954_v39, 0.0 }
 0x191   : > { %1113 = vst.msk [vmem:[%s2079_s18 + $0x58] sm:$0xff] %vm1101_vm1, %v1048_v42  ;;  %1145 = vst.msk [vmem:[%s2079_s18 + $0x158] sm:$0xff] %vm1101_vm1, %v1080_v43 }
 0x192   : > { %v830_v44 = vpop.f32.mrb[24].mxu0  ;;  %v958_v45 = vpop.f32.mrb[24].mxu1 }
 0x193   : > { %v831_v46 = vadd.f32 %v2071_v10, %v830_v44  ;;  %v959_v47 = vadd.f32 %v2071_v10, %v958_v45  ;;  %v832_v48 = vpop.f32.mrb[25].mxu0  ;;  %v960_v49 = vpop.f32.mrb[25].mxu1 }
 0x194   : > { %v833_v50 = vpop.f32.mrb[26].mxu0  ;;  %v961_v51 = vpop.f32.mrb[26].mxu1 }
 0x195   : > { %v1049_v52 = vmax.f32 %v831_v46, 0.0  ;;  %v1081_v53 = vmax.f32 %v959_v47, 0.0  ;;  %v834_v54 = vadd.f32 %v2071_v10, %v833_v50  ;;  %v962_v55 = vadd.f32 %v2071_v10, %v961_v51  ;;  %v835_v56 = vpop.f32.mrb[27].mxu0  ;;  %v963_v57 = vpop.f32.mrb[27].mxu1 }
 0x197   : > { %1114 = vst.msk [vmem:[%s2079_s18 + $0x60] sm:$0xff] %vm1101_vm1, %v1049_v52  ;;  %1146 = vst.msk [vmem:[%s2079_s18 + $0x160] sm:$0xff] %vm1101_vm1, %v1081_v53  ;;  %v1050_v58 = vmax.f32 %v834_v54, 0.0  ;;  %v1082_v59 = vmax.f32 %v962_v55, 0.0 }
 0x199   : > { %1115 = vst.msk [vmem:[%s2079_s18 + $0x68] sm:$0xff] %vm1101_vm1, %v1050_v58  ;;  %1147 = vst.msk [vmem:[%s2079_s18 + $0x168] sm:$0xff] %vm1101_vm1, %v1082_v59 }
 0x19a   : > { %v838_v60 = vpop.f32.mrb[28].mxu0  ;;  %v966_v61 = vpop.f32.mrb[28].mxu1 }
 0x19b   : > { %v839_v62 = vadd.f32 %v2071_v10, %v838_v60  ;;  %v967_v63 = vadd.f32 %v2071_v10, %v966_v61  ;;  %v840_v0 = vpop.f32.mrb[29].mxu0  ;;  %v968_v1 = vpop.f32.mrb[29].mxu1 }
 0x19c   : > { %v841_v2 = vpop.f32.mrb[30].mxu0  ;;  %v969_v3 = vpop.f32.mrb[30].mxu1 }
 0x19d   : > { %v1051_v4 = vmax.f32 %v839_v62, 0.0  ;;  %v1083_v5 = vmax.f32 %v967_v63, 0.0  ;;  %v842_v6 = vadd.f32 %v2071_v10, %v841_v2  ;;  %v970_v7 = vadd.f32 %v2071_v10, %v969_v3  ;;  %v843_v8 = vpop.f32.mrb[31].mxu0  ;;  %v971_v9 = vpop.f32.mrb[31].mxu1 }
 0x19f   : > { %1116 = vst.msk [vmem:[%s2079_s18 + $0x70] sm:$0xff] %vm1101_vm1, %v1051_v4  ;;  %1148 = vst.msk [vmem:[%s2079_s18 + $0x170] sm:$0xff] %vm1101_vm1, %v1083_v5  ;;  %v1052_v11 = vmax.f32 %v842_v6, 0.0  ;;  %v1084_v12 = vmax.f32 %v970_v7, 0.0 }
 0x1a1   : > { %1117 = vst.msk [vmem:[%s2079_s18 + $0x78] sm:$0xff] %vm1101_vm1, %v1052_v11  ;;  %1149 = vst.msk [vmem:[%s2079_s18 + $0x178] sm:$0xff] %vm1101_vm1, %v1084_v12 }
 0x1a2   : > { %v846_v13 = vpop.f32.mrb[32].mxu0  ;;  %v974_v14 = vpop.f32.mrb[32].mxu1 }
 0x1a3   : > { %v847_v15 = vadd.f32 %v2071_v10, %v846_v13  ;;  %v975_v16 = vadd.f32 %v2071_v10, %v974_v14  ;;  %v848_v17 = vpop.f32.mrb[33].mxu0  ;;  %v976_v18 = vpop.f32.mrb[33].mxu1 }
 0x1a4   : > { %v849_v19 = vpop.f32.mrb[34].mxu0  ;;  %v977_v20 = vpop.f32.mrb[34].mxu1 }
 0x1a5   : > { %v1053_v21 = vmax.f32 %v847_v15, 0.0  ;;  %v1085_v22 = vmax.f32 %v975_v16, 0.0  ;;  %v850_v23 = vadd.f32 %v2071_v10, %v849_v19  ;;  %v978_v24 = vadd.f32 %v2071_v10, %v977_v20  ;;  %v851_v25 = vpop.f32.mrb[35].mxu0  ;;  %v979_v26 = vpop.f32.mrb[35].mxu1 }
 0x1a7   : > { %1118 = vst.msk [vmem:[%s2079_s18 + $0x80] sm:$0xff] %vm1101_vm1, %v1053_v21  ;;  %1150 = vst.msk [vmem:[%s2079_s18 + $0x180] sm:$0xff] %vm1101_vm1, %v1085_v22  ;;  %v1054_v27 = vmax.f32 %v850_v23, 0.0  ;;  %v1086_v28 = vmax.f32 %v978_v24, 0.0 }
 0x1a9   : > { %1119 = vst.msk [vmem:[%s2079_s18 + $0x88] sm:$0xff] %vm1101_vm1, %v1054_v27  ;;  %1151 = vst.msk [vmem:[%s2079_s18 + $0x188] sm:$0xff] %vm1101_vm1, %v1086_v28 }
 0x1aa   : > { %v854_v29 = vpop.f32.mrb[36].mxu0  ;;  %v982_v30 = vpop.f32.mrb[36].mxu1 }
 0x1ab   : > { %v855_v31 = vadd.f32 %v2071_v10, %v854_v29  ;;  %v983_v32 = vadd.f32 %v2071_v10, %v982_v30  ;;  %v856_v33 = vpop.f32.mrb[37].mxu0  ;;  %v984_v34 = vpop.f32.mrb[37].mxu1 }
 0x1ac   : > { %v857_v35 = vpop.f32.mrb[38].mxu0  ;;  %v985_v36 = vpop.f32.mrb[38].mxu1 }
 0x1ad   : > { %v1055_v37 = vmax.f32 %v855_v31, 0.0  ;;  %v1087_v38 = vmax.f32 %v983_v32, 0.0  ;;  %v858_v39 = vadd.f32 %v2071_v10, %v857_v35  ;;  %v986_v40 = vadd.f32 %v2071_v10, %v985_v36  ;;  %v859_v41 = vpop.f32.mrb[39].mxu0  ;;  %v987_v42 = vpop.f32.mrb[39].mxu1 }
 0x1af   : > { %1120 = vst.msk [vmem:[%s2079_s18 + $0x90] sm:$0xff] %vm1101_vm1, %v1055_v37  ;;  %1152 = vst.msk [vmem:[%s2079_s18 + $0x190] sm:$0xff] %vm1101_vm1, %v1087_v38  ;;  %v1056_v43 = vmax.f32 %v858_v39, 0.0  ;;  %v1088_v44 = vmax.f32 %v986_v40, 0.0 }
 0x1b1   : > { %1121 = vst.msk [vmem:[%s2079_s18 + $0x98] sm:$0xff] %vm1101_vm1, %v1056_v43  ;;  %1153 = vst.msk [vmem:[%s2079_s18 + $0x198] sm:$0xff] %vm1101_vm1, %v1088_v44 }
 0x1b2   : > { %v862_v45 = vpop.f32.mrb[40].mxu0  ;;  %v990_v46 = vpop.f32.mrb[40].mxu1 }
 0x1b3   : > { %v863_v47 = vadd.f32 %v2071_v10, %v862_v45  ;;  %v991_v48 = vadd.f32 %v2071_v10, %v990_v46  ;;  %v864_v49 = vpop.f32.mrb[41].mxu0  ;;  %v992_v50 = vpop.f32.mrb[41].mxu1 }
 0x1b4   : > { %v865_v51 = vpop.f32.mrb[42].mxu0  ;;  %v993_v52 = vpop.f32.mrb[42].mxu1 }
 0x1b5   : > { %v1057_v53 = vmax.f32 %v863_v47, 0.0  ;;  %v1089_v54 = vmax.f32 %v991_v48, 0.0  ;;  %v866_v55 = vadd.f32 %v2071_v10, %v865_v51  ;;  %v994_v56 = vadd.f32 %v2071_v10, %v993_v52  ;;  %v867_v57 = vpop.f32.mrb[43].mxu0  ;;  %v995_v58 = vpop.f32.mrb[43].mxu1 }
 0x1b7   : > { %1122 = vst.msk [vmem:[%s2079_s18 + $0xa0] sm:$0xff] %vm1101_vm1, %v1057_v53  ;;  %1154 = vst.msk [vmem:[%s2079_s18 + $0x1a0] sm:$0xff] %vm1101_vm1, %v1089_v54  ;;  %v1058_v59 = vmax.f32 %v866_v55, 0.0  ;;  %v1090_v60 = vmax.f32 %v994_v56, 0.0 }
 0x1b9   : > { %1123 = vst.msk [vmem:[%s2079_s18 + $0xa8] sm:$0xff] %vm1101_vm1, %v1058_v59  ;;  %1155 = vst.msk [vmem:[%s2079_s18 + $0x1a8] sm:$0xff] %vm1101_vm1, %v1090_v60 }
 0x1ba   : > { %v870_v61 = vpop.f32.mrb[44].mxu0  ;;  %v998_v62 = vpop.f32.mrb[44].mxu1 }
 0x1bb   : > { %v871_v63 = vadd.f32 %v2071_v10, %v870_v61  ;;  %v999_v0 = vadd.f32 %v2071_v10, %v998_v62  ;;  %v872_v1 = vpop.f32.mrb[45].mxu0  ;;  %v1000_v2 = vpop.f32.mrb[45].mxu1 }
 0x1bc   : > { %v873_v3 = vpop.f32.mrb[46].mxu0  ;;  %v1001_v4 = vpop.f32.mrb[46].mxu1 }
 0x1bd   : > { %v1059_v5 = vmax.f32 %v871_v63, 0.0  ;;  %v1091_v6 = vmax.f32 %v999_v0, 0.0  ;;  %v874_v7 = vadd.f32 %v2071_v10, %v873_v3  ;;  %v1002_v8 = vadd.f32 %v2071_v10, %v1001_v4  ;;  %v875_v9 = vpop.f32.mrb[47].mxu0  ;;  %v1003_v11 = vpop.f32.mrb[47].mxu1 }
 0x1bf   : > { %1124 = vst.msk [vmem:[%s2079_s18 + $0xb0] sm:$0xff] %vm1101_vm1, %v1059_v5  ;;  %1156 = vst.msk [vmem:[%s2079_s18 + $0x1b0] sm:$0xff] %vm1101_vm1, %v1091_v6  ;;  %v1060_v12 = vmax.f32 %v874_v7, 0.0  ;;  %v1092_v13 = vmax.f32 %v1002_v8, 0.0 }
 0x1c1   : > { %1125 = vst.msk [vmem:[%s2079_s18 + $0xb8] sm:$0xff] %vm1101_vm1, %v1060_v12  ;;  %1157 = vst.msk [vmem:[%s2079_s18 + $0x1b8] sm:$0xff] %vm1101_vm1, %v1092_v13 }
 0x1c2   : > { %v878_v14 = vpop.f32.mrb[48].mxu0  ;;  %v1006_v15 = vpop.f32.mrb[48].mxu1 }
 0x1c3   : > { %v879_v16 = vadd.f32 %v2071_v10, %v878_v14  ;;  %v1007_v17 = vadd.f32 %v2071_v10, %v1006_v15  ;;  %v880_v18 = vpop.f32.mrb[49].mxu0  ;;  %v1008_v19 = vpop.f32.mrb[49].mxu1 }
 0x1c4   : > { %v881_v20 = vpop.f32.mrb[50].mxu0  ;;  %v1009_v21 = vpop.f32.mrb[50].mxu1 }
 0x1c5   : > { %v1061_v22 = vmax.f32 %v879_v16, 0.0  ;;  %v1093_v23 = vmax.f32 %v1007_v17, 0.0  ;;  %v882_v24 = vadd.f32 %v2071_v10, %v881_v20  ;;  %v1010_v25 = vadd.f32 %v2071_v10, %v1009_v21  ;;  %v883_v26 = vpop.f32.mrb[51].mxu0  ;;  %v1011_v27 = vpop.f32.mrb[51].mxu1 }
 0x1c7   : > { %1126 = vst.msk [vmem:[%s2079_s18 + $0xc0] sm:$0xff] %vm1101_vm1, %v1061_v22  ;;  %1158 = vst.msk [vmem:[%s2079_s18 + $0x1c0] sm:$0xff] %vm1101_vm1, %v1093_v23  ;;  %v1062_v28 = vmax.f32 %v882_v24, 0.0  ;;  %v1094_v29 = vmax.f32 %v1010_v25, 0.0 }
 0x1c9   : > { %1127 = vst.msk [vmem:[%s2079_s18 + $0xc8] sm:$0xff] %vm1101_vm1, %v1062_v28  ;;  %1159 = vst.msk [vmem:[%s2079_s18 + $0x1c8] sm:$0xff] %vm1101_vm1, %v1094_v29 }
 0x1ca   : > { %v886_v30 = vpop.f32.mrb[52].mxu0  ;;  %v1014_v31 = vpop.f32.mrb[52].mxu1 }
 0x1cb   : > { %v887_v32 = vadd.f32 %v2071_v10, %v886_v30  ;;  %v1015_v33 = vadd.f32 %v2071_v10, %v1014_v31  ;;  %v888_v34 = vpop.f32.mrb[53].mxu0  ;;  %v1016_v35 = vpop.f32.mrb[53].mxu1 }
 0x1cc   : > { %v889_v36 = vpop.f32.mrb[54].mxu0  ;;  %v1017_v37 = vpop.f32.mrb[54].mxu1 }
 0x1cd   : > { %v1063_v38 = vmax.f32 %v887_v32, 0.0  ;;  %v1095_v39 = vmax.f32 %v1015_v33, 0.0  ;;  %v890_v40 = vadd.f32 %v2071_v10, %v889_v36  ;;  %v1018_v41 = vadd.f32 %v2071_v10, %v1017_v37  ;;  %v891_v42 = vpop.f32.mrb[55].mxu0  ;;  %v1019_v43 = vpop.f32.mrb[55].mxu1 }
 0x1cf   : > { %1128 = vst.msk [vmem:[%s2079_s18 + $0xd0] sm:$0xff] %vm1101_vm1, %v1063_v38  ;;  %1160 = vst.msk [vmem:[%s2079_s18 + $0x1d0] sm:$0xff] %vm1101_vm1, %v1095_v39  ;;  %v1064_v44 = vmax.f32 %v890_v40, 0.0  ;;  %v1096_v45 = vmax.f32 %v1018_v41, 0.0 }
 0x1d1   : > { %1129 = vst.msk [vmem:[%s2079_s18 + $0xd8] sm:$0xff] %vm1101_vm1, %v1064_v44  ;;  %1161 = vst.msk [vmem:[%s2079_s18 + $0x1d8] sm:$0xff] %vm1101_vm1, %v1096_v45 }
 0x1d2   : > { %v894_v46 = vpop.f32.mrb[56].mxu0  ;;  %v1022_v47 = vpop.f32.mrb[56].mxu1 }
 0x1d3   : > { %v895_v48 = vadd.f32 %v2071_v10, %v894_v46  ;;  %v1023_v49 = vadd.f32 %v2071_v10, %v1022_v47  ;;  %v896_v50 = vpop.f32.mrb[57].mxu0  ;;  %v1024_v51 = vpop.f32.mrb[57].mxu1 }
 0x1d4   : > { %v897_v52 = vpop.f32.mrb[58].mxu0  ;;  %v1025_v53 = vpop.f32.mrb[58].mxu1 }
 0x1d5   : > { %v1065_v54 = vmax.f32 %v895_v48, 0.0  ;;  %v1097_v55 = vmax.f32 %v1023_v49, 0.0  ;;  %v898_v56 = vadd.f32 %v2071_v10, %v897_v52  ;;  %v1026_v57 = vadd.f32 %v2071_v10, %v1025_v53  ;;  %v899_v58 = vpop.f32.mrb[59].mxu0  ;;  %v1027_v59 = vpop.f32.mrb[59].mxu1 }
 0x1d7   : > { %1130 = vst.msk [vmem:[%s2079_s18 + $0xe0] sm:$0xff] %vm1101_vm1, %v1065_v54  ;;  %1162 = vst.msk [vmem:[%s2079_s18 + $0x1e0] sm:$0xff] %vm1101_vm1, %v1097_v55  ;;  %v1066_v60 = vmax.f32 %v898_v56, 0.0  ;;  %v1098_v61 = vmax.f32 %v1026_v57, 0.0 }
 0x1d9   : > { %1131 = vst.msk [vmem:[%s2079_s18 + $0xe8] sm:$0xff] %vm1101_vm1, %v1066_v60  ;;  %1163 = vst.msk [vmem:[%s2079_s18 + $0x1e8] sm:$0xff] %vm1101_vm1, %v1098_v61 }
 0x1da   : > { %v902_v62 = vpop.f32.mrb[60].mxu0  ;;  %v1030_v63 = vpop.f32.mrb[60].mxu1 }
 0x1db   : > { %v903_v0 = vadd.f32 %v2071_v10, %v902_v62  ;;  %v1031_v1 = vadd.f32 %v2071_v10, %v1030_v63  ;;  %v904_v2 = vpop.f32.mrb[61].mxu0  ;;  %v1032_v3 = vpop.f32.mrb[61].mxu1 }
 0x1dc   : > { %v905_v4 = vpop.f32.mrb[62].mxu0  ;;  %v1033_v5 = vpop.f32.mrb[62].mxu1 }
 0x1dd   : > { %v1067_v6 = vmax.f32 %v903_v0, 0.0  ;;  %v1099_v7 = vmax.f32 %v1031_v1, 0.0  ;;  %v906_v8 = vadd.f32 %v2071_v10, %v905_v4  ;;  %v1034_v9 = vadd.f32 %v2071_v10, %v1033_v5  ;;  %v907_v11 = vpop.f32.mrb[63].mxu0  ;;  %v1035_v12 = vpop.f32.mrb[63].mxu1 }
 0x1df   : > { %1132 = vst.msk [vmem:[%s2079_s18 + $0xf0] sm:$0xff] %vm1101_vm1, %v1067_v6  ;;  %1164 = vst.msk [vmem:[%s2079_s18 + $0x1f0] sm:$0xff] %vm1101_vm1, %v1099_v7  ;;  %v1068_v13 = vmax.f32 %v906_v8, 0.0  ;;  %v1100_v14 = vmax.f32 %v1034_v9, 0.0 }
 0x1e1   : > { %1133 = vst.msk [vmem:[%s2079_s18 + $0xf8] sm:$0xff] %vm1101_vm1, %v1068_v13  ;;  %1165 = vst.msk [vmem:[%s2079_s18 + $0x1f8] sm:$0xff] %vm1101_vm1, %v1100_v14 }
 0x1e2   : > { %1696 = shalt.err (!%p1693_p2)
}
 0x1e3   : > { %s1697_s25 = scalar_lea.hbm %s2266_s28, 8192  ;;  %s1701_s24 = scalar_lea.hbm %s2323_s3, 16384 }
 0x1e4   : > { %p1698_p13 = scmp.ne.s32.totalorder %s2266_s28, %s1697_s25  ;;  %p1702_p4 = scmp.lt.u32.totalorder %s2266_s28, %s2323_s3 }
 0x1e5   : > { %p1703_p5 = scmp.lt.u32.totalorder %s1701_s24, %s1697_s25  ;;  %p1705_p11 = scmp.lt.u32.totalorder %s1697_s25, %s2266_s28 }
 0x1e6   : > { %p1699_p6 = pnand %p1698_p13, %p2337_p0 }
 0x1e7   : > { %p1704_p8 = por %p1703_p5, %p1702_p4 }
 0x1e8   : > { %p1700_p10 = pneg %p1699_p6 }
 0x1e9   : > { %p1706_p1 = por %p1705_p11, %p1704_p8 }
 0x1eb   : > { %p1707_p3 = pnand %p1706_p1, %p1700_p10 }
 0x1ed   : > { %1710 = shalt.err (!%p1707_p3)
}
 0x1ee   : > { %s1764_s4 = smov 128   ;;  %s1765_s18 = smov 8  }
 0x1ef   : > { %1428 = dma.vmem_to_hbm [thread:$0]  (%p2337_p0), %s2268_s21, 8192, %s2266_s28, %s1167_s16, %s1764_s4, %s1764_s4, %s1765_s18  }
 0x1f0 PF: > { %s1195_s20 = sand.u32 1, %s1741_s12   ;;  %p2338_p7 = scmp.ne.s32.totalorder %s2328_s19, 0 }
 0x1f1   : > { %p2339_p9 = scmp.ge.s32.totalorder %s1753_s15, 2  ;;  %s1196_s26 = scalar_lea.sflag [#allocation4], %s1195_s20 }
 0x1f3   : > { %p1442_p12 = pnand %p2339_p9, %p2338_p7 }
 0x1f5   : > { %1736 = dma.done.wait (!%p1442_p12), %s1196_s26, 8192  }
 0x1f6   : > { %1738 = vsyncadd (!%p1442_p12), %s1196_s26, 4294959104  ;;  %p17_p2 = scmp.ge.s32.totalorder %s1897_s5, 4   ;;  %s2340_s12 = smov %s1745_s13 }
 0x1f7   : > { %s2341_s13 = smov %s1749_s14  ;;  %s2342_s14 = smov %s1913_s8 }
 0x1f8   : > { %s2343_s15 = smov %s1897_s5  ;;  %19 = sbr.rel (!%p17_p2) target bundleno = 6 (0x6), region = 85 }
 0x1ff   :  { %1201 = vsyncpa [#allocation3], 1 }
 0x200   :  { %1203 = vsyncpa [#allocation3 + $0x1], 1 }
 0x201   :  { %1204 = vsyncpa [#allocation6], 1 }
 0x202   :  { %1205 = vsyncpa [#allocation4], 1 }
 0x203   :  { %1207 = vsyncpa [#allocation4 + $0x1], 1 }

</bundles_post_ra>
